<compile_context>
chip_gen: v7x
topology: tpu7x:2x2x1
jax: 0.10.0
libtpu: 0.0.40
codegen_flags: <defaults>
</compile_context>

<pallas_src>
import functools

import jax
import jax.numpy as jnp
from jax.experimental import pallas as pl
from jax.experimental.pallas import tpu as pltpu

IN_DIM = 784
H1, H2, H3 = 1024, 512, 256


def _cdiv(a, b):
    return -(-a // b)


def _round_up(x, m):
    return ((x + m - 1) // m) * m


def _leaky_relu(x, slope=0.2):
    return jnp.where(x > 0, x, slope * x)


def discriminator_kernel(
    x_ref,                      # (TB, 784) f32
    w1_ref, b1_ref,             # (784, 1024) bf16, (1, 1024) f32
    w2_ref, b2_ref,             # (1024, 512) bf16, (1, 512)  f32
    w3_ref, b3_ref,             # (512, 256)  bf16, (1, 256)  f32
    w4_ref, b4_ref,             # (1, 256)    f32,  (1, 1)    f32
    o_ref,                      # (TB, 1) f32
):
    # Cast the f32 input tile to bf16 in-kernel (VPU work, hidden under MXU).
    x = x_ref[...].astype(jnp.bfloat16)
    # fc1 + LeakyReLU   (bf16 matmul, f32 accumulate)
    h = jnp.dot(x, w1_ref[...], preferred_element_type=jnp.float32)
    h = _leaky_relu(h + b1_ref[...])
    # (dropout: identity in eval mode)
    # fc2 + LeakyReLU
    h = jnp.dot(h.astype(jnp.bfloat16), w2_ref[...],
                preferred_element_type=jnp.float32)
    h = _leaky_relu(h + b2_ref[...])
    # fc3 + LeakyReLU
    h = jnp.dot(h.astype(jnp.bfloat16), w3_ref[...],
                preferred_element_type=jnp.float32)
    h = _leaky_relu(h + b3_ref[...])
    # fc4 (output width 1): VPU multiply + lane reduction instead of a
    # 127/128-wasted MXU pass, then sigmoid (f32, EUP).
    z = jnp.sum(h * w4_ref[...], axis=-1, keepdims=True) + b4_ref[...]
    o_ref[...] = jax.nn.sigmoid(z)


def _const_spec(shape):
    # Weight/bias tiles: whole array, same block every grid step -> resident.
    # Single-buffered: the block index never changes, so a second buffer is
    # pure VMEM waste.
    zeros = (0,) * len(shape)
    return pl.BlockSpec(shape, lambda i: zeros, pipeline_mode=pl.Buffered(1))


@functools.lru_cache(maxsize=None)
def _tiling_budget():
    """(TB cap, vmem_limit_bytes) derived from the chip's physical VMEM."""
    try:
        vmem_cap = int(getattr(pltpu.get_tpu_info(), "vmem_capacity_bytes", 0))
    except Exception:  # be conservative if the query is unavailable
        vmem_cap = 0
    if vmem_cap >= (96 << 20):          # v5e / v6e: 128 MiB VMEM
        return 1024, 64 << 20
    return 512, 48 << 20                # v7x: 64 MiB per TensorCore


def _choose_tiles(B, tb_cap):
    """Balanced batch tiles: multiple of 16, each <= tb_cap, and >= 2 grid
    steps once B >= 32 so v7x's 2 TensorCores both get work; B_pad stays
    close to B (no ~2x padding blow-up)."""
    n_tiles = max(1, _cdiv(B, tb_cap))
    if B >= 32:
        n_tiles = max(n_tiles, 2)
    tb = _round_up(_cdiv(B, n_tiles), 16)
    b_pad = _round_up(B, tb)
    return tb, b_pad


@jax.jit
def discriminator_forward(x, params):
    """x: (B, 1, 28, 28) or (B, 784) float32. Returns (B, 1) float32."""
    w1, b1, w2, b2, w3, b3, w4, b4 = params

    B = x.shape[0]
    x2d = x.reshape(B, IN_DIM).astype(jnp.float32)

    tb_cap, vmem_limit = _tiling_budget()
    TB, B_pad = _choose_tiles(B, tb_cap)

    # Only copy if a batch-row pad is actually needed; no feature-dim pad and
    # no wrapper-side bf16 cast (cast happens inside the kernel).
    if B_pad != B:
        x2d = jnp.pad(x2d, ((0, B_pad - B), (0, 0)))

    grid = (B_pad // TB,)

    flops = 2 * B_pad * (IN_DIM * H1 + H1 * H2 + H2 * H3 + H3)
    bytes_accessed = (
        (w1.size + w2.size + w3.size) * 2
        + (b1.size + b2.size + b3.size + w4.size + b4.size) * 4
        + B_pad * IN_DIM * 4
        + B_pad * 1 * 4
    )

    out = pl.pallas_call(
        discriminator_kernel,
        out_shape=jax.ShapeDtypeStruct((B_pad, 1), jnp.float32),
        grid=grid,
        in_specs=[
            pl.BlockSpec((TB, IN_DIM), lambda i: (i, 0)),
            _const_spec(w1.shape), _const_spec(b1.shape),
            _const_spec(w2.shape), _const_spec(b2.shape),
            _const_spec(w3.shape), _const_spec(b3.shape),
            _const_spec(w4.shape), _const_spec(b4.shape),
        ],
        out_specs=pl.BlockSpec((TB, 1), lambda i: (i, 0)),
        compiler_params=pltpu.CompilerParams(
            dimension_semantics=("parallel",),
            vmem_limit_bytes=vmem_limit,
        ),
        cost_estimate=pl.CostEstimate(
            flops=flops,
            transcendentals=B_pad,
            bytes_accessed=bytes_accessed,
        ),
    )(x2d, w1, b1, w2, b2, w3, b3, w4, b4)

    return out[:B]


def init_params(key):
    """Deterministic synthetic parameters with the module's shapes."""
    ks = jax.random.split(key, 8)

    def linear(kw, kb, fan_in, fan_out):
        # PyTorch default Linear init: U(-1/sqrt(fan_in), 1/sqrt(fan_in))
        bound = 1.0 / jnp.sqrt(jnp.float32(fan_in))
        w = jax.random.uniform(kw, (fan_in, fan_out), jnp.float32, -bound, bound)
        b = jax.random.uniform(kb, (1, fan_out), jnp.float32, -bound, bound)
        return w, b

    w1, b1 = linear(ks[0], ks[1], IN_DIM, H1)
    w2, b2 = linear(ks[2], ks[3], H1, H2)
    w3, b3 = linear(ks[4], ks[5], H2, H3)
    w4, b4 = linear(ks[6], ks[7], H3, 1)

    # Kernel layout: bf16 weights (MXU-native, halves HBM traffic), f32 biases.
    w1_bf = w1.astype(jnp.bfloat16)
    w2_bf = w2.astype(jnp.bfloat16)
    w3_bf = w3.astype(jnp.bfloat16)

    # fc4 kept as a (1, 256) f32 row (used via VPU multiply + reduce).
    w4_row = w4.reshape(1, H3)
    b4_sc = b4.reshape(1, 1)

    kernel_params = (w1_bf, b1, w2_bf, b2, w3_bf, b3, w4_row, b4_sc)

    # Reference params: the exact bf16-rounded weights in f32 math, so the
    # comparison isolates activation-cast error (tolerance ~1e-2).
    ref_params = (w1_bf.astype(jnp.float32), b1,
                  w2_bf.astype(jnp.float32), b2,
                  w3_bf.astype(jnp.float32), b3,
                  w4, b4)
    return kernel_params, ref_params


def reference_forward(x, ref_params):
    """Pure-JAX reference matching the PyTorch forward (eval mode)."""
    w1, b1, w2, b2, w3, b3, w4, b4 = ref_params
    B = x.shape[0]
    h = x.reshape(B, IN_DIM).astype(jnp.float32)
    h = _leaky_relu(h @ w1 + b1)
    h = _leaky_relu(h @ w2 + b2)
    h = _leaky_relu(h @ w3 + b3)
    return jax.nn.sigmoid(h @ w4 + b4)


if __name__ == "__main__":
    key = jax.random.PRNGKey(0)
    kx, kp = jax.random.split(key)

    # Small batch of MNIST-shaped inputs (B, 1, 28, 28) -> flattened to 784.
    x = jax.random.normal(kx, (4, 1, 28, 28), jnp.float32)

    kernel_params, ref_params = init_params(kp)

    out = discriminator_forward(x, kernel_params)
    out = jax.block_until_ready(out)

    ref = reference_forward(x, ref_params)
    assert out.shape == (4, 1), out.shape
    # bf16 matmul path vs f32 reference -> loose tolerance.
    assert jnp.allclose(out, ref, atol=1e-2, rtol=1e-2), (out, ref)

    print("KERNEL_OK")
</pallas_src>

<mosaic_0001>
module attributes {stable_mosaic.version = 11 : i64} {
  func.func @discriminator_kernel(%arg0: i32, %arg1: memref<16x784xf32, #tpu.memory_space<vmem>>, %arg2: memref<784x1024xbf16, #tpu.memory_space<vmem>>, %arg3: memref<1x1024xf32, #tpu.memory_space<vmem>>, %arg4: memref<1024x512xbf16, #tpu.memory_space<vmem>>, %arg5: memref<1x512xf32, #tpu.memory_space<vmem>>, %arg6: memref<512x256xbf16, #tpu.memory_space<vmem>>, %arg7: memref<1x256xf32, #tpu.memory_space<vmem>>, %arg8: memref<1x256xf32, #tpu.memory_space<vmem>>, %arg9: memref<1x1xf32, #tpu.memory_space<vmem>>, %arg10: memref<16x1xf32, #tpu.memory_space<vmem>>) attributes {dimension_semantics = [#tpu.dimension_semantics<parallel>], iteration_bounds = array<i64: 1>, scalar_prefetch = 0 : i64, scratch_operands = 0 : i64, tpu.core_type = #tpu.core_type<tc>, window_params = [{transform_indices = @transform_0, window_bounds = array<i64: 16, 784>}, {pipeline_mode = #tpu.pipeline_mode<synchronous>, transform_indices = @transform_1, window_bounds = array<i64: 784, 1024>}, {pipeline_mode = #tpu.pipeline_mode<synchronous>, transform_indices = @transform_2, window_bounds = array<i64: 1, 1024>}, {pipeline_mode = #tpu.pipeline_mode<synchronous>, transform_indices = @transform_3, window_bounds = array<i64: 1024, 512>}, {pipeline_mode = #tpu.pipeline_mode<synchronous>, transform_indices = @transform_4, window_bounds = array<i64: 1, 512>}, {pipeline_mode = #tpu.pipeline_mode<synchronous>, transform_indices = @transform_5, window_bounds = array<i64: 512, 256>}, {pipeline_mode = #tpu.pipeline_mode<synchronous>, transform_indices = @transform_6, window_bounds = array<i64: 1, 256>}, {pipeline_mode = #tpu.pipeline_mode<synchronous>, transform_indices = @transform_7, window_bounds = array<i64: 1, 256>}, {pipeline_mode = #tpu.pipeline_mode<synchronous>, transform_indices = @transform_8, window_bounds = array<i64: 1, 1>}, {transform_indices = @transform_9, window_bounds = array<i64: 16, 1>}]} {
    %c0 = arith.constant 0 : index
    %c0_0 = arith.constant 0 : index
    %0 = vector.load %arg1[%c0, %c0_0] : memref<16x784xf32, #tpu.memory_space<vmem>>, vector<16x784xf32>
    %1 = arith.truncf %0 : vector<16x784xf32> to vector<16x784xbf16>
    %c0_1 = arith.constant 0 : index
    %c0_2 = arith.constant 0 : index
    %2 = vector.load %arg2[%c0_1, %c0_2] : memref<784x1024xbf16, #tpu.memory_space<vmem>>, vector<784x1024xbf16>
    %cst = arith.constant dense<0.000000e+00> : vector<16x1024xf32>
    %3 = tpu.matmul %1, %2, %cst {dimension_numbers = #tpu.dot_dimension_numbers<[1], [0], [0], [1], [0, 0, 1, 1], [], []>} : vector<16x784xbf16>, vector<784x1024xbf16>, vector<16x1024xf32> -> vector<16x1024xf32>
    %c0_3 = arith.constant 0 : index
    %c0_4 = arith.constant 0 : index
    %4 = vector.load %arg3[%c0_3, %c0_4] : memref<1x1024xf32, #tpu.memory_space<vmem>>, vector<1x1024xf32>
    %5 = vector.broadcast %4 : vector<1x1024xf32> to vector<16x1024xf32>
    %6 = arith.addf %3, %5 : vector<16x1024xf32>
    %cst_5 = arith.constant 0.000000e+00 : f32
    %7 = vector.broadcast %cst_5 : f32 to vector<16x1024xf32>
    %8 = arith.cmpf ogt, %6, %7 : vector<16x1024xf32>
    %cst_6 = arith.constant 2.000000e-01 : f32
    %9 = vector.broadcast %cst_6 : f32 to vector<16x1024xf32>
    %10 = arith.mulf %9, %6 : vector<16x1024xf32>
    %11 = arith.select %8, %6, %10 : vector<16x1024xi1>, vector<16x1024xf32>
    %12 = arith.truncf %11 : vector<16x1024xf32> to vector<16x1024xbf16>
    %c0_7 = arith.constant 0 : index
    %c0_8 = arith.constant 0 : index
    %13 = vector.load %arg4[%c0_7, %c0_8] : memref<1024x512xbf16, #tpu.memory_space<vmem>>, vector<1024x512xbf16>
    %cst_9 = arith.constant dense<0.000000e+00> : vector<16x512xf32>
    %14 = tpu.matmul %12, %13, %cst_9 {dimension_numbers = #tpu.dot_dimension_numbers<[1], [0], [0], [1], [0, 0, 1, 1], [], []>} : vector<16x1024xbf16>, vector<1024x512xbf16>, vector<16x512xf32> -> vector<16x512xf32>
    %c0_10 = arith.constant 0 : index
    %c0_11 = arith.constant 0 : index
    %15 = vector.load %arg5[%c0_10, %c0_11] : memref<1x512xf32, #tpu.memory_space<vmem>>, vector<1x512xf32>
    %16 = vector.broadcast %15 : vector<1x512xf32> to vector<16x512xf32>
    %17 = arith.addf %14, %16 : vector<16x512xf32>
    %cst_12 = arith.constant 0.000000e+00 : f32
    %18 = vector.broadcast %cst_12 : f32 to vector<16x512xf32>
    %19 = arith.cmpf ogt, %17, %18 : vector<16x512xf32>
    %cst_13 = arith.constant 2.000000e-01 : f32
    %20 = vector.broadcast %cst_13 : f32 to vector<16x512xf32>
    %21 = arith.mulf %20, %17 : vector<16x512xf32>
    %22 = arith.select %19, %17, %21 : vector<16x512xi1>, vector<16x512xf32>
    %23 = arith.truncf %22 : vector<16x512xf32> to vector<16x512xbf16>
    %c0_14 = arith.constant 0 : index
    %c0_15 = arith.constant 0 : index
    %24 = vector.load %arg6[%c0_14, %c0_15] : memref<512x256xbf16, #tpu.memory_space<vmem>>, vector<512x256xbf16>
    %cst_16 = arith.constant dense<0.000000e+00> : vector<16x256xf32>
    %25 = tpu.matmul %23, %24, %cst_16 {dimension_numbers = #tpu.dot_dimension_numbers<[1], [0], [0], [1], [0, 0, 1, 1], [], []>} : vector<16x512xbf16>, vector<512x256xbf16>, vector<16x256xf32> -> vector<16x256xf32>
    %c0_17 = arith.constant 0 : index
    %c0_18 = arith.constant 0 : index
    %26 = vector.load %arg7[%c0_17, %c0_18] : memref<1x256xf32, #tpu.memory_space<vmem>>, vector<1x256xf32>
    %27 = vector.broadcast %26 : vector<1x256xf32> to vector<16x256xf32>
    %28 = arith.addf %25, %27 : vector<16x256xf32>
    %cst_19 = arith.constant 0.000000e+00 : f32
    %29 = vector.broadcast %cst_19 : f32 to vector<16x256xf32>
    %30 = arith.cmpf ogt, %28, %29 : vector<16x256xf32>
    %cst_20 = arith.constant 2.000000e-01 : f32
    %31 = vector.broadcast %cst_20 : f32 to vector<16x256xf32>
    %32 = arith.mulf %31, %28 : vector<16x256xf32>
    %33 = arith.select %30, %28, %32 : vector<16x256xi1>, vector<16x256xf32>
    %c0_21 = arith.constant 0 : index
    %c0_22 = arith.constant 0 : index
    %34 = vector.load %arg8[%c0_21, %c0_22] : memref<1x256xf32, #tpu.memory_space<vmem>>, vector<1x256xf32>
    %35 = vector.broadcast %34 : vector<1x256xf32> to vector<16x256xf32>
    %36 = arith.mulf %33, %35 : vector<16x256xf32>
    %cst_23 = arith.constant dense<0.000000e+00> : vector<16xf32>
    %37 = vector.multi_reduction <add>, %36, %cst_23 [1] : vector<16x256xf32> to vector<16xf32>
    %38 = vector.shape_cast %37 : vector<16xf32> to vector<16x1xf32>
    %c0_24 = arith.constant 0 : index
    %c0_25 = arith.constant 0 : index
    %39 = vector.load %arg9[%c0_24, %c0_25] : memref<1x1xf32, #tpu.memory_space<vmem>>, vector<1x1xf32>
    %40 = vector.broadcast %39 : vector<1x1xf32> to vector<16x1xf32>
    %41 = arith.addf %38, %40 : vector<16x1xf32>
    %42 = arith.negf %41 : vector<16x1xf32>
    %43 = math.exp %42 : vector<16x1xf32>
    %cst_26 = arith.constant 1.000000e+00 : f32
    %44 = vector.broadcast %cst_26 : f32 to vector<16x1xf32>
    %45 = arith.addf %44, %43 : vector<16x1xf32>
    %46 = arith.divf %44, %45 : vector<16x1xf32>
    %c0_27 = arith.constant 0 : index
    %c0_28 = arith.constant 0 : index
    %47 = vector.load %arg10[%c0_27, %c0_28] : memref<16x1xf32, #tpu.memory_space<vmem>>, vector<16x1xf32>
    tpu.vector_store %arg10[%c0_27, %c0_28], %46 {strides = array<i32>} : memref<16x1xf32, #tpu.memory_space<vmem>>, vector<16x1xf32>,
    return
  }
  func.func @transform_0(%arg0: i32) -> (i32, i32) {
    %c0_i32 = arith.constant 0 : i32
    %c0_i32_0 = arith.constant 0 : i32
    return %arg0, %c0_i32 : i32, i32
  }
  func.func @transform_1(%arg0: i32) -> (i32, i32) {
    %c0_i32 = arith.constant 0 : i32
    %c0_i32_0 = arith.constant 0 : i32
    %c0_i32_1 = arith.constant 0 : i32
    return %c0_i32, %c0_i32_0 : i32, i32
  }
  func.func @transform_2(%arg0: i32) -> (i32, i32) {
    %c0_i32 = arith.constant 0 : i32
    %c0_i32_0 = arith.constant 0 : i32
    %c0_i32_1 = arith.constant 0 : i32
    return %c0_i32, %c0_i32_0 : i32, i32
  }
  func.func @transform_3(%arg0: i32) -> (i32, i32) {
    %c0_i32 = arith.constant 0 : i32
    %c0_i32_0 = arith.constant 0 : i32
    %c0_i32_1 = arith.constant 0 : i32
    return %c0_i32, %c0_i32_0 : i32, i32
  }
  func.func @transform_4(%arg0: i32) -> (i32, i32) {
    %c0_i32 = arith.constant 0 : i32
    %c0_i32_0 = arith.constant 0 : i32
    %c0_i32_1 = arith.constant 0 : i32
    return %c0_i32, %c0_i32_0 : i32, i32
  }
  func.func @transform_5(%arg0: i32) -> (i32, i32) {
    %c0_i32 = arith.constant 0 : i32
    %c0_i32_0 = arith.constant 0 : i32
    %c0_i32_1 = arith.constant 0 : i32
    return %c0_i32, %c0_i32_0 : i32, i32
  }
  func.func @transform_6(%arg0: i32) -> (i32, i32) {
    %c0_i32 = arith.constant 0 : i32
    %c0_i32_0 = arith.constant 0 : i32
    %c0_i32_1 = arith.constant 0 : i32
    return %c0_i32, %c0_i32_0 : i32, i32
  }
  func.func @transform_7(%arg0: i32) -> (i32, i32) {
    %c0_i32 = arith.constant 0 : i32
    %c0_i32_0 = arith.constant 0 : i32
    %c0_i32_1 = arith.constant 0 : i32
    return %c0_i32, %c0_i32_0 : i32, i32
  }
  func.func @transform_8(%arg0: i32) -> (i32, i32) {
    %c0_i32 = arith.constant 0 : i32
    %c0_i32_0 = arith.constant 0 : i32
    %c0_i32_1 = arith.constant 0 : i32
    return %c0_i32, %c0_i32_0 : i32, i32
  }
  func.func @transform_9(%arg0: i32) -> (i32, i32) {
    %c0_i32 = arith.constant 0 : i32
    %c0_i32_0 = arith.constant 0 : i32
    return %arg0, %c0_i32 : i32, i32
  }
}

</mosaic_0001>

<bundles_post_ra>
// kernel: discriminator_forward.1
= control target key start
LH: loop header
LB: loop body
LE: loop exit
PB: predicated region body
PF: predicated region fallthrough
CT: control target
= control target key end

     0   :  { %s7590_s0 = inlined_call_operand.vmem [shape: f32[16,784], index: 0, kind: input, shape index: {}]   ;;  %s7591_s1 = inlined_call_operand.hbm [shape: bf16[784,1024], index: 1, kind: input, shape index: {}]   ;;  %s7592_s2 = inlined_call_operand.hbm [shape: f32[1,1024], index: 2, kind: input, shape index: {}]   ;;  %s7593_s3 = inlined_call_operand.hbm [shape: bf16[1024,512], index: 3, kind: input, shape index: {}]   ;;  %s7594_s4 = inlined_call_operand.hbm [shape: f32[1,512], index: 4, kind: input, shape index: {}]   ;;  %s7595_s5 = inlined_call_operand.hbm [shape: bf16[512,256], index: 5, kind: input, shape index: {}]   ;;  %s7596_s6 = inlined_call_operand.hbm [shape: f32[1,256], index: 6, kind: input, shape index: {}]   ;;  %s7597_s7 = inlined_call_operand.hbm [shape: f32[1,256], index: 7, kind: input, shape index: {}]   ;;  %s7598_s8 = inlined_call_operand.<no memory space> [shape: f32[1,1], index: 8, kind: input, shape index: {}]   ;;  %s7599_s9 = inlined_call_operand.vmem [shape: f32[16,1], index: 9, kind: output, shape index: {}]  }
   0x1   :  { %v14_v0 = vstv %s7598_s8 }
   0x2   :  { %15 = vst [vmem:[#allocation2] sm:$0x1] %v14_v0 }
   0x3   :  { %16 = vsyncpa [#allocation4], 0 }
   0x4   :  { %17 = vsyncpa [#allocation6], 0 }
   0x5   :  { %18 = vsyncpa [#allocation9], 0 }
   0x6   :  { %19 = vsyncpa [#allocation12], 0  ;;  %s7251_s11 = smov [#allocation5]   ;;  %s7252_s13 = smov [#allocation8]  }
   0x7   :  { %s40_s12 = sshll.u32 %s7251_s11, 4  ;;  %s62_s14 = sshll.u32 %s7252_s13, 4  ;;  %s41_s12 = int_to_ptr.vmem [resolvable:$true] %s40_s12  ;;  %s63_s14 = int_to_ptr.vmem [resolvable:$true] %s62_s14 }
   0x8   :  { %s7089_s17 = scalar_lea.hbm %s7592_s2, 128 }
   0x9   :  { %p7090_p0 = scmp.ne.s32.totalorder %s7592_s2, %s7089_s17  ;;  %p7093_p1 = scmp.lt.u32.totalorder %s7089_s17, %s7592_s2 }
   0xb   :  { %p7095_p2 = pnand %p7093_p1, %p7090_p0 }
   0xd   :  { %7098 = shalt.err (!%p7095_p2)
}
   0xe   :  { %s7099_s21 = scalar_lea.vmem %s41_s12, 128  ;;  %p7104_p4 = scmp.lt.s32.totalorder %s41_s12, %s41_s12 }
   0xf   :  { %p7100_p3 = scmp.ne.s32.totalorder %s41_s12, %s7099_s21  ;;  %p7105_p5 = scmp.lt.s32.totalorder %s7099_s21, %s7099_s21 }
  0x11   :  { %p7106_p6 = por %p7105_p5, %p7104_p4 }
  0x13   :  { %p7107_p7 = pnand %p7106_p6, %p7100_p3 }
  0x15   :  { %7110 = shalt.err (!%p7107_p7)
}
  0x16   :  { %43 = dma.hbm_to_vmem [thread:$0]  %s7592_s2, 128, %s41_s12, [#allocation6]  }
  0x17   :  { %s7111_s26 = scalar_lea.hbm %s7594_s4, 64 }
  0x18   :  { %p7112_p8 = scmp.ne.s32.totalorder %s7594_s4, %s7111_s26  ;;  %p7115_p9 = scmp.lt.u32.totalorder %s7111_s26, %s7594_s4 }
  0x1a   :  { %p7117_p10 = pnand %p7115_p9, %p7112_p8 }
  0x1c   :  { %7120 = shalt.err (!%p7117_p10)
}
  0x1d   :  { %s7121_s10 = scalar_lea.vmem %s63_s14, 64  ;;  %p7126_p12 = scmp.lt.s32.totalorder %s63_s14, %s63_s14 }
  0x1e   :  { %p7122_p11 = scmp.ne.s32.totalorder %s63_s14, %s7121_s10  ;;  %p7127_p13 = scmp.lt.s32.totalorder %s7121_s10, %s7121_s10 }
  0x20   :  { %p7128_p0 = por %p7127_p13, %p7126_p12 }
  0x22   :  { %p7129_p1 = pnand %p7128_p0, %p7122_p11 }
  0x24   :  { %7132 = shalt.err (!%p7129_p1)
}
  0x25   :  { %65 = dma.hbm_to_vmem [thread:$0]  %s7594_s4, 64, %s63_s14, [#allocation9]  }
  0x26   :  { %s7253_s12 = smov [#allocation11]   ;;  %s7254_s15 = smov [#allocation3]  }
  0x27   :  { %s84_s13 = sshll.u32 %s7253_s12, 4  ;;  %s27_s16 = sshll.u32 %s7254_s15, 4  ;;  %s85_s13 = int_to_ptr.vmem [resolvable:$true] %s84_s13  ;;  %s7342_s16 = int_to_ptr.vmem [resolvable:$true] %s27_s16 }
  0x28   :  { %s7133_s19 = scalar_lea.hbm %s7596_s6, 32 }
  0x29   :  { %p7134_p2 = scmp.ne.s32.totalorder %s7596_s6, %s7133_s19  ;;  %p7137_p3 = scmp.lt.u32.totalorder %s7133_s19, %s7596_s6 }
  0x2b   :  { %p7139_p4 = pnand %p7137_p3, %p7134_p2 }
  0x2d   :  { %7142 = shalt.err (!%p7139_p4)
}
  0x2e   :  { %s7143_s4 = scalar_lea.vmem %s85_s13, 32  ;;  %p7148_p6 = scmp.lt.s32.totalorder %s85_s13, %s85_s13 }
  0x2f   :  { %p7144_p5 = scmp.ne.s32.totalorder %s85_s13, %s7143_s4  ;;  %p7149_p7 = scmp.lt.s32.totalorder %s7143_s4, %s7143_s4 }
  0x31   :  { %p7150_p8 = por %p7149_p7, %p7148_p6 }
  0x33   :  { %p7151_p9 = pnand %p7150_p8, %p7144_p5 }
  0x35   :  { %7154 = shalt.err (!%p7151_p9)
}
  0x36   :  { %87 = dma.hbm_to_vmem [thread:$0]  %s7596_s6, 32, %s85_s13, [#allocation12]  }
  0x37   :  { %s7155_s26 = scalar_lea.hbm %s7591_s1, 50176 }
  0x38   :  { %p7156_p10 = scmp.ne.s32.totalorder %s7591_s1, %s7155_s26  ;;  %p7159_p11 = scmp.lt.u32.totalorder %s7155_s26, %s7591_s1 }
  0x3a   :  { %p7161_p12 = pnand %p7159_p11, %p7156_p10 }
  0x3c   :  { %7164 = shalt.err (!%p7161_p12)
}
  0x3d   :  { %s7165_s10 = scalar_lea.vmem %s7342_s16, 50176  ;;  %p7170_p0 = scmp.lt.s32.totalorder %s7342_s16, %s7342_s16 }
  0x3e   :  { %p7166_p13 = scmp.ne.s32.totalorder %s7342_s16, %s7165_s10  ;;  %p7171_p1 = scmp.lt.s32.totalorder %s7165_s10, %s7165_s10 }
  0x40   :  { %p7172_p2 = por %p7171_p1, %p7170_p0 }
  0x42   :  { %p7173_p3 = pnand %p7172_p2, %p7166_p13 }
  0x44   :  { %7176 = shalt.err (!%p7173_p3)
}
  0x45   :  { %s7255_s6 = smov 512   ;;  %s7256_s2 = smov 32  }
  0x46   :  { %33 = dma.hbm_to_vmem [thread:$0]  %s7591_s1, 50176, %s7342_s16, [#allocation4], %s7255_s6, %s7255_s6, %s7256_s2  }
  0x47   :  { %s7257_s13 = smov [#allocation7]   ;;  %s7177_s19 = scalar_lea.hbm %s7593_s3, 32768 }
  0x48   :  { %s49_s15 = sshll.u32 %s7257_s13, 4  ;;  %p7178_p4 = scmp.ne.s32.totalorder %s7593_s3, %s7177_s19  ;;  %s50_s15 = int_to_ptr.vmem [resolvable:$true] %s49_s15 }
  0x49   :  { %p7181_p5 = scmp.lt.u32.totalorder %s7177_s19, %s7593_s3 }
  0x4b   :  { %p7183_p6 = pnand %p7181_p5, %p7178_p4 }
  0x4d   :  { %7186 = shalt.err (!%p7183_p6)
}
  0x4e   :  { %s7187_s4 = scalar_lea.vmem %s50_s15, 32768  ;;  %p7192_p8 = scmp.lt.s32.totalorder %s50_s15, %s50_s15 }
  0x4f   :  { %p7188_p7 = scmp.ne.s32.totalorder %s50_s15, %s7187_s4  ;;  %p7193_p9 = scmp.lt.s32.totalorder %s7187_s4, %s7187_s4 }
  0x51   :  { %p7194_p10 = por %p7193_p9, %p7192_p8 }
  0x53   :  { %p7195_p11 = pnand %p7194_p10, %p7188_p7 }
  0x55   :  { %7198 = shalt.err (!%p7195_p11)
}
  0x56   :  { %s7258_s1 = smov 256   ;;  %s7259_s16 = smov 16  }
  0x57   :  { %55 = dma.hbm_to_vmem [thread:$0]  %s7593_s3, 32768, %s50_s15, [#allocation6], %s7258_s1, %s7258_s1, %s7259_s16  }
  0x58   :  { %s7260_s24 = smov [#allocation10]   ;;  %s7199_s28 = scalar_lea.hbm %s7595_s5, 8192 }
  0x59   :  { %s71_s25 = sshll.u32 %s7260_s24, 4  ;;  %p7200_p12 = scmp.ne.s32.totalorder %s7595_s5, %s7199_s28  ;;  %s72_s25 = int_to_ptr.vmem [resolvable:$true] %s71_s25 }
  0x5a   :  { %p7203_p13 = scmp.lt.u32.totalorder %s7199_s28, %s7595_s5 }
  0x5c   :  { %p7205_p0 = pnand %p7203_p13, %p7200_p12 }
  0x5e   :  { %7208 = shalt.err (!%p7205_p0)
}
  0x5f   :  { %s7209_s2 = scalar_lea.vmem %s72_s25, 8192  ;;  %p7214_p2 = scmp.lt.s32.totalorder %s72_s25, %s72_s25 }
  0x60   :  { %p7210_p1 = scmp.ne.s32.totalorder %s72_s25, %s7209_s2  ;;  %p7215_p3 = scmp.lt.s32.totalorder %s7209_s2, %s7209_s2 }
  0x62   :  { %p7216_p4 = por %p7215_p3, %p7214_p2 }
  0x64   :  { %p7217_p5 = pnand %p7216_p4, %p7210_p1 }
  0x66   :  { %7220 = shalt.err (!%p7217_p5)
}
  0x67   :  { %s7261_s3 = smov 128   ;;  %s7262_s11 = smov 8  }
  0x68   :  { %77 = dma.hbm_to_vmem [thread:$0]  %s7595_s5, 8192, %s72_s25, [#allocation9], %s7261_s3, %s7261_s3, %s7262_s11  }
  0x69   :  { %s7263_s15 = smov [#allocation13]   ;;  %s7221_s8 = scalar_lea.hbm %s7597_s7, 32 }
  0x6a   :  { %s94_s17 = sshll.u32 %s7263_s15, 4  ;;  %p7222_p6 = scmp.ne.s32.totalorder %s7597_s7, %s7221_s8  ;;  %s95_s17 = int_to_ptr.vmem [resolvable:$true] %s94_s17 }
  0x6b   :  { %p7225_p7 = scmp.lt.u32.totalorder %s7221_s8, %s7597_s7 }
  0x6d   :  { %p7227_p8 = pnand %p7225_p7, %p7222_p6 }
  0x6f   :  { %7230 = shalt.err (!%p7227_p8)
}
  0x70   :  { %s7231_s1 = scalar_lea.vmem %s95_s17, 32  ;;  %p7236_p10 = scmp.lt.s32.totalorder %s95_s17, %s95_s17 }
  0x71   :  { %p7232_p9 = scmp.ne.s32.totalorder %s95_s17, %s7231_s1  ;;  %p7237_p11 = scmp.lt.s32.totalorder %s7231_s1, %s7231_s1 }
  0x73   :  { %p7238_p12 = por %p7237_p11, %p7236_p10 }
  0x75   :  { %p7239_p13 = pnand %p7238_p12, %p7232_p9 }
  0x77   :  { %7242 = shalt.err (!%p7239_p13)
}
  0x78   :  { %97 = dma.hbm_to_vmem [thread:$0]  %s7597_s7, 32, %s95_s17, [#allocation12]  }
  0x79   :  { %7243 = dma.done.wait [#allocation4], 50176  }
  0x7a   :  { %7244 = vsyncadd [#allocation4], 4294917120 }
  0x7b   :  { %7245 = dma.done.wait [#allocation6], 32896  }
  0x7c   :  { %7246 = vsyncadd [#allocation6], 4294934400 }
  0x7d   :  { %7247 = dma.done.wait [#allocation9], 8256  }
  0x7e   :  { %7248 = vsyncadd [#allocation9], 4294959040 }
  0x7f   :  { %7249 = dma.done.wait [#allocation12], 64  }
  0x80   :  { %7250 = vsyncadd [#allocation12], 4294967232  ;;  %v143_v1 = vld [vmem:[#allocation3] sm:$0xff]  ;;  %v125_v60 = vld [vmem:[%s7590_s0 + $0x18] sm:$0xff]  ;;  %vm2537_vm0 = vcmask 130048  }
  0x81   :  { %v147_v2 = vld [vmem:[#allocation3 + $0x20] sm:$0xff]  ;;  %v132_v63 = vld [vmem:[%s7590_s0 + $0x50] sm:$0xff] }
  0x82   :  { %v271_v3 = vld [vmem:[#allocation3 + $0x400] sm:$0xff]  ;;  %v5764_v4 = vcombine.high %v143_v1, %v147_v2  ;;  %v5763_v6 = vcombine.low %v143_v1, %v147_v2  ;;  %v7424_v1 = vpack.c.bf16 %v132_v63, %v125_v60 }
  0x83   :  { %v275_v5 = vld [vmem:[#allocation3 + $0x420] sm:$0xff] }
  0x84   :  { %v151_v7 = vld [vmem:[#allocation3 + $0x40] sm:$0xff]  ;;  %v5892_v9 = vcombine.high %v271_v3, %v275_v5  ;;  %v5891_v10 = vcombine.low %v271_v3, %v275_v5  ;;  %2541 = vmatprep.subr.bf16.mxu1 %v5764_v4  ;;  %2616 = vmatprep.mubr.bf16.mxu0 %v7424_v1 }
  0x85   :  { %v155_v8 = vld [vmem:[#allocation3 + $0x60] sm:$0xff]  ;;  %2542 = vmatpush1.bf16.msra.mxu1 %v5763_v6 }
  0x86   :  { %v5772_v11 = vcombine.high %v151_v7, %v155_v8  ;;  %v279_v12 = vld [vmem:[#allocation3 + $0x440] sm:$0xff]  ;;  %2584 = vmatprep.subr.bf16.mxu0 %v5892_v9  ;;  %v5771_v19 = vcombine.low %v151_v7, %v155_v8 }
  0x87   :  { %v283_v13 = vld [vmem:[#allocation3 + $0x460] sm:$0xff]  ;;  %2585 = vmatpush1.bf16.msra.mxu0 %v5891_v10 }
  0x88   :  { %v159_v14 = vld [vmem:[#allocation3 + $0x80] sm:$0xff]  ;;  %v5900_v15 = vcombine.high %v279_v12, %v283_v13  ;;  %2543 = vmatprep.subr.bf16.mxu1 %v5772_v11  ;;  %v5899_v20 = vcombine.low %v279_v12, %v283_v13 }
  0x89   :  { %v163_v16 = vld [vmem:[#allocation3 + $0xa0] sm:$0xff]  ;;  %2544 = vmatpush1.bf16.msra.mxu1 %v5771_v19 }
  0x8a   :  { %v287_v17 = vld [vmem:[#allocation3 + $0x480] sm:$0xff]  ;;  %v5780_v21 = vcombine.high %v159_v14, %v163_v16  ;;  %2586 = vmatprep.subr.bf16.mxu0 %v5900_v15  ;;  %v5779_v27 = vcombine.low %v159_v14, %v163_v16 }
  0x8b   :  { %v291_v18 = vld [vmem:[#allocation3 + $0x4a0] sm:$0xff]  ;;  %2587 = vmatpush1.bf16.msra.mxu0 %v5899_v20 }
  0x8c   :  { %v5908_v22 = vcombine.high %v287_v17, %v291_v18  ;;  %v167_v23 = vld [vmem:[#allocation3 + $0xc0] sm:$0xff]  ;;  %2545 = vmatprep.subr.bf16.mxu1 %v5780_v21  ;;  %v5907_v28 = vcombine.low %v287_v17, %v291_v18 }
  0x8d   :  { %v171_v24 = vld [vmem:[#allocation3 + $0xe0] sm:$0xff]  ;;  %2546 = vmatpush1.bf16.msra.mxu1 %v5779_v27 }
  0x8e   :  { %v295_v25 = vld [vmem:[#allocation3 + $0x4c0] sm:$0xff]  ;;  %v5788_v29 = vcombine.high %v167_v23, %v171_v24  ;;  %2588 = vmatprep.subr.bf16.mxu0 %v5908_v22  ;;  %v5787_v35 = vcombine.low %v167_v23, %v171_v24 }
  0x8f   :  { %v299_v26 = vld [vmem:[#allocation3 + $0x4e0] sm:$0xff]  ;;  %2589 = vmatpush1.bf16.msra.mxu0 %v5907_v28 }
  0x90   :  { %v5916_v30 = vcombine.high %v295_v25, %v299_v26  ;;  %v175_v31 = vld [vmem:[#allocation3 + $0x100] sm:$0xff]  ;;  %2547 = vmatprep.subr.bf16.mxu1 %v5788_v29  ;;  %v5915_v36 = vcombine.low %v295_v25, %v299_v26 }
  0x91   :  { %v179_v32 = vld [vmem:[#allocation3 + $0x120] sm:$0xff]  ;;  %2548 = vmatpush1.bf16.msra.mxu1 %v5787_v35 }
  0x92   :  { %v303_v33 = vld [vmem:[#allocation3 + $0x500] sm:$0xff]  ;;  %v5796_v37 = vcombine.high %v175_v31, %v179_v32  ;;  %2590 = vmatprep.subr.bf16.mxu0 %v5916_v30  ;;  %v5795_v43 = vcombine.low %v175_v31, %v179_v32 }
  0x93   :  { %v307_v34 = vld [vmem:[#allocation3 + $0x520] sm:$0xff]  ;;  %2591 = vmatpush1.bf16.msra.mxu0 %v5915_v36 }
  0x94   :  { %v5924_v38 = vcombine.high %v303_v33, %v307_v34  ;;  %v183_v39 = vld [vmem:[#allocation3 + $0x140] sm:$0xff]  ;;  %2549 = vmatprep.subr.bf16.mxu1 %v5796_v37  ;;  %v5923_v44 = vcombine.low %v303_v33, %v307_v34 }
  0x95   :  { %v187_v40 = vld [vmem:[#allocation3 + $0x160] sm:$0xff]  ;;  %2550 = vmatpush1.bf16.msra.mxu1 %v5795_v43 }
  0x96   :  { %v311_v41 = vld [vmem:[#allocation3 + $0x540] sm:$0xff]  ;;  %v5804_v45 = vcombine.high %v183_v39, %v187_v40  ;;  %2592 = vmatprep.subr.bf16.mxu0 %v5924_v38  ;;  %v5803_v51 = vcombine.low %v183_v39, %v187_v40 }
  0x97   :  { %v315_v42 = vld [vmem:[#allocation3 + $0x560] sm:$0xff]  ;;  %2593 = vmatpush1.bf16.msra.mxu0 %v5923_v44 }
  0x98   :  { %v5932_v46 = vcombine.high %v311_v41, %v315_v42  ;;  %v191_v47 = vld [vmem:[#allocation3 + $0x180] sm:$0xff]  ;;  %2551 = vmatprep.subr.bf16.mxu1 %v5804_v45  ;;  %v5931_v52 = vcombine.low %v311_v41, %v315_v42 }
  0x99   :  { %v195_v48 = vld [vmem:[#allocation3 + $0x1a0] sm:$0xff]  ;;  %2552 = vmatpush1.bf16.msra.mxu1 %v5803_v51 }
  0x9a   :  { %v319_v49 = vld [vmem:[#allocation3 + $0x580] sm:$0xff]  ;;  %v5812_v53 = vcombine.high %v191_v47, %v195_v48  ;;  %2594 = vmatprep.subr.bf16.mxu0 %v5932_v46  ;;  %v5811_v0 = vcombine.low %v191_v47, %v195_v48 }
  0x9b   :  { %v323_v50 = vld [vmem:[#allocation3 + $0x5a0] sm:$0xff]  ;;  %2595 = vmatpush1.bf16.msra.mxu0 %v5931_v52 }
  0x9c   :  { %v123_v54 = vld [vmem:[%s7590_s0 + $0x8] sm:$0xff]  ;;  %v130_v55 = vld [vmem:[%s7590_s0 + $0x40] sm:$0xff]  ;;  %v5940_v56 = vcombine.high %v319_v49, %v323_v50  ;;  %2553 = vmatprep.subr.bf16.mxu1 %v5812_v53  ;;  %v5939_v2 = vcombine.low %v319_v49, %v323_v50 }
  0x9d   :  { %v199_v57 = vld [vmem:[#allocation3 + $0x1c0] sm:$0xff]  ;;  %v7415_v59 = vpack.c.bf16 %v130_v55, %v123_v54  ;;  %2554 = vmatpush1.bf16.msra.mxu1 %v5811_v0 }
  0x9e   :  { %v203_v58 = vld [vmem:[#allocation3 + $0x1e0] sm:$0xff]  ;;  %2596 = vmatprep.subr.bf16.mxu0 %v5940_v56 }
  0x9f   :  { %v327_v61 = vld [vmem:[#allocation3 + $0x5c0] sm:$0xff]  ;;  %2573 = vmatprep.mubr.bf16.mxu1 %v7415_v59  ;;  %v5820_v3 = vcombine.high %v199_v57, %v203_v58  ;;  %v5819_v9 = vcombine.low %v199_v57, %v203_v58  ;;  %2597 = vmatpush1.bf16.msra.mxu0 %v5939_v2 }
  0xa0   :  { %v331_v62 = vld [vmem:[#allocation3 + $0x5e0] sm:$0xff] }
  0xa1   :  { %v5948_v4 = vcombine.high %v327_v61, %v331_v62  ;;  %v207_v5 = vld [vmem:[#allocation3 + $0x200] sm:$0xff]  ;;  %2555 = vmatprep.subr.bf16.mxu1 %v5820_v3  ;;  %v5947_v10 = vcombine.low %v327_v61, %v331_v62 }
  0xa2   :  { %v211_v6 = vld [vmem:[#allocation3 + $0x220] sm:$0xff]  ;;  %2556 = vmatpush1.bf16.msra.mxu1 %v5819_v9 }
  0xa3   :  { %v335_v7 = vld [vmem:[#allocation3 + $0x600] sm:$0xff]  ;;  %v5828_v11 = vcombine.high %v207_v5, %v211_v6  ;;  %2598 = vmatprep.subr.bf16.mxu0 %v5948_v4  ;;  %v5827_v17 = vcombine.low %v207_v5, %v211_v6 }
  0xa4   :  { %v339_v8 = vld [vmem:[#allocation3 + $0x620] sm:$0xff]  ;;  %2599 = vmatpush1.bf16.msra.mxu0 %v5947_v10 }
  0xa5   :  { %v5956_v12 = vcombine.high %v335_v7, %v339_v8  ;;  %v215_v13 = vld [vmem:[#allocation3 + $0x240] sm:$0xff]  ;;  %2557 = vmatprep.subr.bf16.mxu1 %v5828_v11  ;;  %v5955_v18 = vcombine.low %v335_v7, %v339_v8  ;;  %v144_v7 = vld [vmem:[#allocation3 + $0x8] sm:$0xff] }
  0xa6   :  { %v219_v14 = vld [vmem:[#allocation3 + $0x260] sm:$0xff]  ;;  %2558 = vmatpush1.bf16.msra.mxu1 %v5827_v17  ;;  %v148_v8 = vld [vmem:[#allocation3 + $0x28] sm:$0xff] }
  0xa7   :  { %v343_v15 = vld [vmem:[#allocation3 + $0x640] sm:$0xff]  ;;  %v5836_v19 = vcombine.high %v215_v13, %v219_v14  ;;  %2600 = vmatprep.subr.bf16.mxu0 %v5956_v12  ;;  %v5835_v25 = vcombine.low %v215_v13, %v219_v14  ;;  %v129_v13 = vld [vmem:[%s7590_s0 + $0x38] sm:$0xff] }
  0xa8   :  { %v347_v16 = vld [vmem:[#allocation3 + $0x660] sm:$0xff]  ;;  %2601 = vmatpush1.bf16.msra.mxu0 %v5955_v18 }
  0xa9   :  { %v5964_v20 = vcombine.high %v343_v15, %v347_v16  ;;  %v223_v21 = vld [vmem:[#allocation3 + $0x280] sm:$0xff]  ;;  %2559 = vmatprep.subr.bf16.mxu1 %v5836_v19  ;;  %v5963_v26 = vcombine.low %v343_v15, %v347_v16  ;;  %v5766_v15 = vcombine.high %v144_v7, %v148_v8  ;;  %v124_v16 = vld [vmem:[%s7590_s0 + $0x10] sm:$0xff] }
  0xaa   :  { %v227_v22 = vld [vmem:[#allocation3 + $0x2a0] sm:$0xff]  ;;  %2560 = vmatpush1.bf16.msra.mxu1 %v5835_v25 }
  0xab   :  { %v351_v23 = vld [vmem:[#allocation3 + $0x680] sm:$0xff]  ;;  %v5844_v27 = vcombine.high %v223_v21, %v227_v22  ;;  %2602 = vmatprep.subr.bf16.mxu0 %v5964_v20  ;;  %v5843_v33 = vcombine.low %v223_v21, %v227_v22  ;;  %v152_v20 = vld [vmem:[#allocation3 + $0x48] sm:$0xff] }
  0xac   :  { %v355_v24 = vld [vmem:[#allocation3 + $0x6a0] sm:$0xff]  ;;  %2603 = vmatpush1.bf16.msra.mxu0 %v5963_v26  ;;  %v156_v21 = vld [vmem:[#allocation3 + $0x68] sm:$0xff]  ;;  %v5765_v26 = vcombine.low %v144_v7, %v148_v8 }
  0xad   :  { %v5972_v28 = vcombine.high %v351_v23, %v355_v24  ;;  %v231_v29 = vld [vmem:[#allocation3 + $0x2c0] sm:$0xff]  ;;  %2561 = vmatprep.subr.bf16.mxu1 %v5844_v27  ;;  %v5971_v34 = vcombine.low %v351_v23, %v355_v24 }
  0xae   :  { %v235_v30 = vld [vmem:[#allocation3 + $0x2e0] sm:$0xff]  ;;  %2562 = vmatpush1.bf16.msra.mxu1 %v5843_v33 }
  0xaf   :  { %v359_v31 = vld [vmem:[#allocation3 + $0x6c0] sm:$0xff]  ;;  %v5852_v35 = vcombine.high %v231_v29, %v235_v30  ;;  %2604 = vmatprep.subr.bf16.mxu0 %v5972_v28  ;;  %v5851_v41 = vcombine.low %v231_v29, %v235_v30  ;;  %v5774_v29 = vcombine.high %v152_v20, %v156_v21 }
  0xb0   :  { %v363_v32 = vld [vmem:[#allocation3 + $0x6e0] sm:$0xff]  ;;  %2605 = vmatpush1.bf16.msra.mxu0 %v5971_v34 }
  0xb1   :  { %v5980_v36 = vcombine.high %v359_v31, %v363_v32  ;;  %v239_v37 = vld [vmem:[#allocation3 + $0x300] sm:$0xff]  ;;  %2563 = vmatprep.subr.bf16.mxu1 %v5852_v35  ;;  %v5979_v42 = vcombine.low %v359_v31, %v363_v32  ;;  %v160_v31 = vld [vmem:[#allocation3 + $0x88] sm:$0xff] }
  0xb2   :  { %v243_v38 = vld [vmem:[#allocation3 + $0x320] sm:$0xff]  ;;  %2564 = vmatpush1.bf16.msra.mxu1 %v5851_v41  ;;  %v164_v32 = vld [vmem:[#allocation3 + $0xa8] sm:$0xff] }
  0xb3   :  { %v367_v39 = vld [vmem:[#allocation3 + $0x700] sm:$0xff]  ;;  %v5860_v43 = vcombine.high %v239_v37, %v243_v38  ;;  %2606 = vmatprep.subr.bf16.mxu0 %v5980_v36  ;;  %v5859_v49 = vcombine.low %v239_v37, %v243_v38  ;;  %v5773_v36 = vcombine.low %v152_v20, %v156_v21  ;;  %v5782_v38 = vcombine.high %v160_v31, %v164_v32  ;;  %v208_v20 = vld [vmem:[#allocation3 + $0x208] sm:$0xff] }
  0xb4   :  { %v371_v40 = vld [vmem:[#allocation3 + $0x720] sm:$0xff]  ;;  %2607 = vmatpush1.bf16.msra.mxu0 %v5979_v42  ;;  %v168_v42 = vld [vmem:[#allocation3 + $0xc8] sm:$0xff] }
  0xb5   :  { %v5988_v44 = vcombine.high %v367_v39, %v371_v40  ;;  %v247_v45 = vld [vmem:[#allocation3 + $0x340] sm:$0xff]  ;;  %2565 = vmatprep.subr.bf16.mxu1 %v5860_v43  ;;  %v5987_v50 = vcombine.low %v367_v39, %v371_v40  ;;  %v172_v43 = vld [vmem:[#allocation3 + $0xe8] sm:$0xff] }
  0xb6   :  { %v251_v46 = vld [vmem:[#allocation3 + $0x360] sm:$0xff]  ;;  %2566 = vmatpush1.bf16.msra.mxu1 %v5859_v49  ;;  %v212_v21 = vld [vmem:[#allocation3 + $0x228] sm:$0xff] }
  0xb7   :  { %v375_v47 = vld [vmem:[#allocation3 + $0x740] sm:$0xff]  ;;  %v5868_v51 = vcombine.high %v247_v45, %v251_v46  ;;  %2608 = vmatprep.subr.bf16.mxu0 %v5988_v44  ;;  %v5867_v57 = vcombine.low %v247_v45, %v251_v46  ;;  %v5781_v44 = vcombine.low %v160_v31, %v164_v32  ;;  %v5790_v46 = vcombine.high %v168_v42, %v172_v43  ;;  %v220_v31 = vld [vmem:[#allocation3 + $0x268] sm:$0xff] }
  0xb8   :  { %v379_v48 = vld [vmem:[#allocation3 + $0x760] sm:$0xff]  ;;  %2609 = vmatpush1.bf16.msra.mxu0 %v5987_v50  ;;  %v176_v50 = vld [vmem:[#allocation3 + $0x108] sm:$0xff]  ;;  %v5829_v32 = vcombine.low %v208_v20, %v212_v21 }
  0xb9   :  { %v5996_v52 = vcombine.high %v375_v47, %v379_v48  ;;  %v255_v53 = vld [vmem:[#allocation3 + $0x380] sm:$0xff]  ;;  %2567 = vmatprep.subr.bf16.mxu1 %v5868_v51  ;;  %v5995_v58 = vcombine.low %v375_v47, %v379_v48  ;;  %v180_v51 = vld [vmem:[#allocation3 + $0x128] sm:$0xff] }
  0xba   :  { %v259_v54 = vld [vmem:[#allocation3 + $0x3a0] sm:$0xff]  ;;  %2568 = vmatpush1.bf16.msra.mxu1 %v5867_v57 }
  0xbb   :  { %v383_v55 = vld [vmem:[#allocation3 + $0x780] sm:$0xff]  ;;  %v5876_v60 = vcombine.high %v255_v53, %v259_v54  ;;  %2610 = vmatprep.subr.bf16.mxu0 %v5996_v52  ;;  %v5875_v3 = vcombine.low %v255_v53, %v259_v54  ;;  %v5789_v52 = vcombine.low %v168_v42, %v172_v43  ;;  %v5798_v54 = vcombine.high %v176_v50, %v180_v51 }
  0xbc   :  { %v387_v56 = vld [vmem:[#allocation3 + $0x7a0] sm:$0xff]  ;;  %2611 = vmatpush1.bf16.msra.mxu0 %v5995_v58  ;;  %v184_v58 = vld [vmem:[#allocation3 + $0x148] sm:$0xff] }
  0xbd   :  { %v6004_v61 = vcombine.high %v383_v55, %v387_v56  ;;  %v263_v62 = vld [vmem:[#allocation3 + $0x3c0] sm:$0xff]  ;;  %2569 = vmatprep.subr.bf16.mxu1 %v5876_v60  ;;  %v6003_v4 = vcombine.low %v383_v55, %v387_v56  ;;  %v188_v60 = vld [vmem:[#allocation3 + $0x168] sm:$0xff] }
  0xbe   :  { %v267_v63 = vld [vmem:[#allocation3 + $0x3e0] sm:$0xff]  ;;  %2570 = vmatpush1.bf16.msra.mxu1 %v5875_v3 }
  0xbf   :  { %v391_v0 = vld [vmem:[#allocation3 + $0x7c0] sm:$0xff]  ;;  %v5884_v5 = vcombine.high %v263_v62, %v267_v63  ;;  %2612 = vmatprep.subr.bf16.mxu0 %v6004_v61  ;;  %v5883_v11 = vcombine.low %v263_v62, %v267_v63  ;;  %v5797_v61 = vcombine.low %v176_v50, %v180_v51  ;;  %v5806_v63 = vcombine.high %v184_v58, %v188_v60 }
  0xc0   :  { %v395_v2 = vld [vmem:[#allocation3 + $0x7e0] sm:$0xff]  ;;  %2613 = vmatpush1.bf16.msra.mxu0 %v6003_v4  ;;  %v192_v4 = vld [vmem:[#allocation3 + $0x188] sm:$0xff] }
  0xc1   :  { %v6012_v6 = vcombine.high %v391_v0, %v395_v2  ;;  %v399_v9 = vld [vmem:[#allocation3 + $0x800] sm:$0xff]  ;;  %2571 = vmatprep.subr.bf16.mxu1 %v5884_v5  ;;  %v6011_v14 = vcombine.low %v391_v0, %v395_v2  ;;  %v196_v5 = vld [vmem:[#allocation3 + $0x1a8] sm:$0xff] }
  0xc2   :  { %v403_v10 = vld [vmem:[#allocation3 + $0x820] sm:$0xff]  ;;  %2572 = vmatpush1.bf16.msra.mxu1 %v5883_v11  ;;  %v5814_v8 = vcombine.high %v192_v4, %v196_v5 }
  0xc3   :  { %v122_v12 = vld [vmem:[%s7590_s0] sm:$0xff]  ;;  %v131_v17 = vld [vmem:[%s7590_s0 + $0x48] sm:$0xff]  ;;  %2614 = vmatprep.subr.bf16.mxu0 %v6012_v6  ;;  %v6020_v18 = vcombine.high %v399_v9, %v403_v10  ;;  %v6019_v28 = vcombine.low %v399_v9, %v403_v10  ;;  %2713 = vmatprep.subr.bf16.mxu1 %v5766_v15  ;;  %v5805_v6 = vcombine.low %v184_v58, %v188_v60 }
  0xc4   :  { %v407_v19 = vld [vmem:[#allocation3 + $0x840] sm:$0xff]  ;;  %v7439_v22 = vpack.c.bf16 %v129_v13, %v122_v12  ;;  %v7447_v27 = vpack.c.bf16 %v131_v17, %v124_v16  ;;  %2615 = vmatpush1.bf16.msra.mxu0 %v6011_v14  ;;  %v200_v12 = vld [vmem:[#allocation3 + $0x1c8] sm:$0xff]  ;;  %v5813_v14 = vcombine.low %v192_v4, %v196_v5 }
  0xc5   :  { %v411_v23 = vld [vmem:[#allocation3 + $0x860] sm:$0xff]  ;;  %2627 = vmatprep.subr.bf16.mxu0 %v6020_v18  ;;  %v204_v13 = vld [vmem:[#allocation3 + $0x1e8] sm:$0xff] }
  0xc6   :  { %v127_v24 = vld [vmem:[%s7590_s0 + $0x28] sm:$0xff]  ;;  %v134_v25 = vld [vmem:[%s7590_s0 + $0x60] sm:$0xff]  ;;  %v6028_v30 = vcombine.high %v407_v19, %v411_v23  ;;  %2574 = vmatmul.mubr.bf16.vlgmr.msra.gmra.mrb[0].mxu1 %v7439_v22  ;;  %v6027_v37 = vcombine.low %v407_v19, %v411_v23  ;;  %v5822_v16 = vcombine.high %v200_v12, %v204_v13  ;;  %v5821_v23 = vcombine.low %v200_v12, %v204_v13 }
  0xc7   :  { %v7449_v33 = vpack.c.bf16 %v134_v25, %v127_v24  ;;  %v415_v34 = vld [vmem:[#allocation3 + $0x880] sm:$0xff]  ;;  %2617 = vmatmul.mubr.bf16.vlgmr.msra.gmra.mrb[0].mxu0 %v7447_v27  ;;  %2714 = vmatpush1.bf16.msra.mxu1 %v5765_v26  ;;  %v5830_v25 = vcombine.high %v208_v20, %v212_v21 }
  0xc8   :  { %v419_v35 = vld [vmem:[#allocation3 + $0x8a0] sm:$0xff]  ;;  %2628 = vmatpush1.bf16.msra.mxu0 %v6019_v28  ;;  %2715 = vmatprep.subr.bf16.mxu1 %v5774_v29 }
  0xc9   :  { %v423_v39 = vld [vmem:[#allocation3 + $0x8c0] sm:$0xff]  ;;  %2629 = vmatprep.subr.bf16.mxu0 %v6028_v30  ;;  %v6036_v41 = vcombine.high %v415_v34, %v419_v35  ;;  %2659 = vmatprep.mubr.bf16.mxu0 %v7449_v33  ;;  %v6035_v45 = vcombine.low %v415_v34, %v419_v35  ;;  %v216_v30 = vld [vmem:[#allocation3 + $0x248] sm:$0xff] }
  0xca   :  { %v427_v40 = vld [vmem:[#allocation3 + $0x8e0] sm:$0xff]  ;;  %2745 = vmatprep.mubr.bf16.mxu1 %v7415_v59  ;;  %v5838_v35 = vcombine.high %v216_v30, %v220_v31 }
  0xcb   :  { %2716 = vmatpush1.bf16.msra.mxu1 %v5773_v36  ;;  %v431_v47 = vld [vmem:[#allocation3 + $0x900] sm:$0xff]  ;;  %v6044_v49 = vcombine.high %v423_v39, %v427_v40  ;;  %v6043_v53 = vcombine.low %v423_v39, %v427_v40  ;;  %v224_v39 = vld [vmem:[#allocation3 + $0x288] sm:$0xff] }
  0xcc   :  { %2630 = vmatpush1.bf16.msra.mxu0 %v6027_v37  ;;  %2717 = vmatprep.subr.bf16.mxu1 %v5782_v38  ;;  %v435_v48 = vld [vmem:[#allocation3 + $0x920] sm:$0xff]  ;;  %v228_v40 = vld [vmem:[#allocation3 + $0x2a8] sm:$0xff] }
  0xcd   :  { %2631 = vmatprep.subr.bf16.mxu0 %v6036_v41  ;;  %v439_v55 = vld [vmem:[#allocation3 + $0x940] sm:$0xff]  ;;  %v6052_v57 = vcombine.high %v431_v47, %v435_v48  ;;  %v6051_v62 = vcombine.low %v431_v47, %v435_v48  ;;  %v5837_v41 = vcombine.low %v216_v30, %v220_v31  ;;  %v5846_v43 = vcombine.high %v224_v39, %v228_v40  ;;  %v232_v47 = vld [vmem:[#allocation3 + $0x2c8] sm:$0xff]  ;;  %v133_v30 = vld [vmem:[%s7590_s0 + $0x58] sm:$0xff] }
  0xce   :  { %v443_v56 = vld [vmem:[#allocation3 + $0x960] sm:$0xff]  ;;  %v236_v48 = vld [vmem:[#allocation3 + $0x2e8] sm:$0xff] }
  0xcf   :  { %2718 = vmatpush1.bf16.msra.mxu1 %v5781_v44  ;;  %v447_v0 = vld [vmem:[#allocation3 + $0x980] sm:$0xff]  ;;  %v6060_v3 = vcombine.high %v439_v55, %v443_v56  ;;  %v6059_v7 = vcombine.low %v439_v55, %v443_v56  ;;  %v5854_v51 = vcombine.high %v232_v47, %v236_v48  ;;  %v240_v55 = vld [vmem:[#allocation3 + $0x308] sm:$0xff] }
  0xd0   :  { %2632 = vmatpush1.bf16.msra.mxu0 %v6035_v45  ;;  %2719 = vmatprep.subr.bf16.mxu1 %v5790_v46  ;;  %v451_v2 = vld [vmem:[#allocation3 + $0x9a0] sm:$0xff]  ;;  %v244_v56 = vld [vmem:[#allocation3 + $0x328] sm:$0xff] }
  0xd1   :  { %2633 = vmatprep.subr.bf16.mxu0 %v6044_v49  ;;  %v455_v9 = vld [vmem:[#allocation3 + $0x9c0] sm:$0xff]  ;;  %v6068_v11 = vcombine.high %v447_v0, %v451_v2  ;;  %v6067_v15 = vcombine.low %v447_v0, %v451_v2  ;;  %v5845_v49 = vcombine.low %v224_v39, %v228_v40  ;;  %v5862_v60 = vcombine.high %v240_v55, %v244_v56  ;;  %v248_v0 = vld [vmem:[#allocation3 + $0x348] sm:$0xff]  ;;  %v149_v39 = vld [vmem:[#allocation3 + $0x30] sm:$0xff] }
  0xd2   :  { %v459_v10 = vld [vmem:[#allocation3 + $0x9e0] sm:$0xff]  ;;  %v252_v2 = vld [vmem:[#allocation3 + $0x368] sm:$0xff] }
  0xd3   :  { %2720 = vmatpush1.bf16.msra.mxu1 %v5789_v52  ;;  %v463_v17 = vld [vmem:[#allocation3 + $0xa00] sm:$0xff]  ;;  %v6076_v19 = vcombine.high %v455_v9, %v459_v10  ;;  %v6075_v24 = vcombine.low %v455_v9, %v459_v10  ;;  %v5870_v5 = vcombine.high %v248_v0, %v252_v2  ;;  %v256_v9 = vld [vmem:[#allocation3 + $0x388] sm:$0xff] }
  0xd4   :  { %2634 = vmatpush1.bf16.msra.mxu0 %v6043_v53  ;;  %2721 = vmatprep.subr.bf16.mxu1 %v5798_v54  ;;  %v467_v18 = vld [vmem:[#allocation3 + $0xa20] sm:$0xff]  ;;  %v260_v10 = vld [vmem:[#allocation3 + $0x3a8] sm:$0xff] }
  0xd5   :  { %2635 = vmatprep.subr.bf16.mxu0 %v6052_v57  ;;  %v471_v26 = vld [vmem:[#allocation3 + $0xa40] sm:$0xff]  ;;  %v6084_v29 = vcombine.high %v463_v17, %v467_v18  ;;  %v6083_v34 = vcombine.low %v463_v17, %v467_v18  ;;  %v5853_v57 = vcombine.low %v232_v47, %v236_v48  ;;  %v5878_v13 = vcombine.high %v256_v9, %v260_v10  ;;  %v264_v17 = vld [vmem:[#allocation3 + $0x3c8] sm:$0xff] }
  0xd6   :  { %v475_v28 = vld [vmem:[#allocation3 + $0xa60] sm:$0xff]  ;;  %v268_v18 = vld [vmem:[#allocation3 + $0x3e8] sm:$0xff] }
  0xd7   :  { %2722 = vmatpush1.bf16.msra.mxu1 %v5797_v61  ;;  %v479_v36 = vld [vmem:[#allocation3 + $0xa80] sm:$0xff]  ;;  %v6092_v38 = vcombine.high %v471_v26, %v475_v28  ;;  %v6091_v42 = vcombine.low %v471_v26, %v475_v28  ;;  %v5886_v21 = vcombine.high %v264_v17, %v268_v18  ;;  %v5885_v31 = vcombine.low %v264_v17, %v268_v18  ;;  %v177_v18 = vld [vmem:[#allocation3 + $0x110] sm:$0xff] }
  0xd8   :  { %2636 = vmatpush1.bf16.msra.mxu0 %v6051_v62  ;;  %2723 = vmatprep.subr.bf16.mxu1 %v5806_v63  ;;  %v483_v37 = vld [vmem:[#allocation3 + $0xaa0] sm:$0xff] }
  0xd9   :  { %2637 = vmatprep.subr.bf16.mxu0 %v6060_v3  ;;  %v487_v44 = vld [vmem:[#allocation3 + $0xac0] sm:$0xff]  ;;  %v6100_v46 = vcombine.high %v479_v36, %v483_v37  ;;  %v6099_v50 = vcombine.low %v479_v36, %v483_v37  ;;  %v5861_v3 = vcombine.low %v240_v55, %v244_v56  ;;  %v284_v36 = vld [vmem:[#allocation3 + $0x468] sm:$0xff]  ;;  %v153_v56 = vld [vmem:[#allocation3 + $0x50] sm:$0xff] }
  0xda   :  { %v491_v45 = vld [vmem:[#allocation3 + $0xae0] sm:$0xff] }
  0xdb   :  { %2724 = vmatpush1.bf16.msra.mxu1 %v5805_v6  ;;  %v495_v52 = vld [vmem:[#allocation3 + $0xb00] sm:$0xff]  ;;  %v6108_v54 = vcombine.high %v487_v44, %v491_v45  ;;  %v6107_v58 = vcombine.low %v487_v44, %v491_v45  ;;  %v288_v44 = vld [vmem:[#allocation3 + $0x488] sm:$0xff] }
  0xdc   :  { %2638 = vmatpush1.bf16.msra.mxu0 %v6059_v7  ;;  %2725 = vmatprep.subr.bf16.mxu1 %v5814_v8  ;;  %v499_v53 = vld [vmem:[#allocation3 + $0xb20] sm:$0xff]  ;;  %v292_v45 = vld [vmem:[#allocation3 + $0x4a8] sm:$0xff] }
  0xdd   :  { %2639 = vmatprep.subr.bf16.mxu0 %v6068_v11  ;;  %v503_v61 = vld [vmem:[#allocation3 + $0xb40] sm:$0xff]  ;;  %v6116_v63 = vcombine.high %v495_v52, %v499_v53  ;;  %v6115_v4 = vcombine.low %v495_v52, %v499_v53  ;;  %v5869_v11 = vcombine.low %v248_v0, %v252_v2  ;;  %v5910_v48 = vcombine.high %v288_v44, %v292_v45  ;;  %v128_v52 = vld [vmem:[%s7590_s0 + $0x30] sm:$0xff] }
  0xde   :  { %v507_v62 = vld [vmem:[#allocation3 + $0xb60] sm:$0xff]  ;;  %v161_v2 = vld [vmem:[#allocation3 + $0x90] sm:$0xff] }
  0xdf   :  { %2726 = vmatpush1.bf16.msra.mxu1 %v5813_v14  ;;  %v511_v6 = vld [vmem:[#allocation3 + $0xb80] sm:$0xff]  ;;  %v6124_v8 = vcombine.high %v503_v61, %v507_v62  ;;  %v6123_v12 = vcombine.low %v503_v61, %v507_v62 }
  0xe0   :  { %2640 = vmatpush1.bf16.msra.mxu0 %v6067_v15  ;;  %2727 = vmatprep.subr.bf16.mxu1 %v5822_v16  ;;  %v515_v7 = vld [vmem:[#allocation3 + $0xba0] sm:$0xff] }
  0xe1   :  { %2641 = vmatprep.subr.bf16.mxu0 %v6076_v19  ;;  %v519_v14 = vld [vmem:[#allocation3 + $0xbc0] sm:$0xff]  ;;  %v6132_v16 = vcombine.high %v511_v6, %v515_v7  ;;  %v5877_v19 = vcombine.low %v256_v9, %v260_v10  ;;  %v6131_v20 = vcombine.low %v511_v6, %v515_v7  ;;  %v316_v6 = vld [vmem:[#allocation3 + $0x568] sm:$0xff]  ;;  %v169_v10 = vld [vmem:[#allocation3 + $0xd0] sm:$0xff] }
  0xe2   :  { %v523_v15 = vld [vmem:[#allocation3 + $0xbe0] sm:$0xff] }
  0xe3   :  { %2728 = vmatpush1.bf16.msra.mxu1 %v5821_v23  ;;  %v272_v23 = vld [vmem:[#allocation3 + $0x408] sm:$0xff]  ;;  %v527_v26 = vld [vmem:[#allocation3 + $0xc00] sm:$0xff] }
  0xe4   :  { %2642 = vmatpush1.bf16.msra.mxu0 %v6075_v24  ;;  %2729 = vmatprep.subr.bf16.mxu1 %v5830_v25  ;;  %v276_v24 = vld [vmem:[#allocation3 + $0x428] sm:$0xff]  ;;  %v6140_v25 = vcombine.high %v519_v14, %v523_v15  ;;  %v531_v28 = vld [vmem:[#allocation3 + $0xc20] sm:$0xff] }
  0xe5   :  { %2643 = vmatprep.subr.bf16.mxu0 %v6084_v29  ;;  %v126_v29 = vld [vmem:[%s7590_s0 + $0x20] sm:$0xff]  ;;  %v6148_v37 = vcombine.high %v527_v26, %v531_v28  ;;  %v135_v53 = vld [vmem:[%s7590_s0 + $0x68] sm:$0xff] }
  0xe6   :  { %v7461_v40 = vpack.c.bf16 %v133_v30, %v126_v29  ;;  %v7473_v61 = vpack.c.bf16 %v135_v53, %v128_v52  ;;  %v189_v29 = vld [vmem:[#allocation3 + $0x170] sm:$0xff]  ;;  %v336_v30 = vld [vmem:[#allocation3 + $0x608] sm:$0xff] }
  0xe7   :  { %2730 = vmatpush1.bf16.msra.mxu1 %v5829_v32  ;;  %v6139_v32 = vcombine.low %v519_v14, %v523_v15  ;;  %v324_v14 = vld [vmem:[#allocation3 + $0x5a8] sm:$0xff] }
  0xe8   :  { %2644 = vmatpush1.bf16.msra.mxu0 %v6083_v34  ;;  %2731 = vmatprep.subr.bf16.mxu1 %v5838_v35  ;;  %v5894_v34 = vcombine.high %v272_v23, %v276_v24  ;;  %v280_v35 = vld [vmem:[#allocation3 + $0x448] sm:$0xff] }
  0xe9   :  { %2645 = vmatprep.subr.bf16.mxu0 %v6092_v38  ;;  %v145_v38 = vld [vmem:[#allocation3 + $0x10] sm:$0xff]  ;;  %v5901_v47 = vcombine.low %v280_v35, %v284_v36 }
  0xeb   :  { %2732 = vmatpush1.bf16.msra.mxu1 %v5837_v41  ;;  %v5893_v41 = vcombine.low %v272_v23, %v276_v24  ;;  %v332_v23 = vld [vmem:[#allocation3 + $0x5e8] sm:$0xff] }
  0xec   :  { %2646 = vmatpush1.bf16.msra.mxu0 %v6091_v42  ;;  %2733 = vmatprep.subr.bf16.mxu1 %v5846_v43  ;;  %v5902_v42 = vcombine.high %v280_v35, %v284_v36  ;;  %v6147_v43 = vcombine.low %v527_v26, %v531_v28  ;;  %v185_v28 = vld [vmem:[#allocation3 + $0x150] sm:$0xff] }
  0xed   :  { %2647 = vmatprep.subr.bf16.mxu0 %v6100_v46  ;;  %v5768_v46 = vcombine.high %v145_v38, %v149_v39 }
  0xef   :  { %2734 = vmatpush1.bf16.msra.mxu1 %v5845_v49  ;;  %v296_v49 = vld [vmem:[#allocation3 + $0x4c8] sm:$0xff] }
  0xf0   :  { %2648 = vmatpush1.bf16.msra.mxu0 %v6099_v50  ;;  %2735 = vmatprep.subr.bf16.mxu1 %v5854_v51  ;;  %v300_v50 = vld [vmem:[#allocation3 + $0x4e8] sm:$0xff]  ;;  %v7264_v51 = vmov 0  }
  0xf1   :  { %2649 = vmatprep.subr.bf16.mxu0 %v6108_v54  ;;  %v5909_v54 = vcombine.low %v288_v44, %v292_v45  ;;  %v5918_v55 = vcombine.high %v296_v49, %v300_v50  ;;  %v5917_v62 = vcombine.low %v296_v49, %v300_v50  ;;  %v5807_v44 = vcombine.low %v185_v28, %v189_v29  ;;  %v356_v50 = vld [vmem:[#allocation3 + $0x6a8] sm:$0xff] }
  0xf3   :  { %2736 = vmatpush1.bf16.msra.mxu1 %v5853_v57  ;;  %v157_v57 = vld [vmem:[#allocation3 + $0x70] sm:$0xff] }
  0xf4   :  { %2650 = vmatpush1.bf16.msra.mxu0 %v6107_v58  ;;  %2737 = vmatprep.subr.bf16.mxu1 %v5862_v60  ;;  %v304_v58 = vld [vmem:[#allocation3 + $0x508] sm:$0xff] }
  0xf5   :  { %2651 = vmatprep.subr.bf16.mxu0 %v6116_v63  ;;  %v308_v60 = vld [vmem:[#allocation3 + $0x528] sm:$0xff]  ;;  %v5767_v63 = vcombine.low %v145_v38, %v149_v39  ;;  %v197_v38 = vld [vmem:[#allocation3 + $0x1b0] sm:$0xff] }
  0xf6   :  { %v5926_v0 = vcombine.high %v304_v58, %v308_v60  ;;  %v5925_v7 = vcombine.low %v304_v58, %v308_v60  ;;  %v344_v39 = vld [vmem:[#allocation3 + $0x648] sm:$0xff] }
  0xf7   :  { %2738 = vmatpush1.bf16.msra.mxu1 %v5861_v3  ;;  %v165_v3 = vld [vmem:[#allocation3 + $0xb0] sm:$0xff]  ;;  %v364_v60 = vld [vmem:[#allocation3 + $0x6e8] sm:$0xff] }
  0xf8   :  { %2652 = vmatpush1.bf16.msra.mxu0 %v6115_v4  ;;  %2739 = vmatprep.subr.bf16.mxu1 %v5870_v5  ;;  %v312_v4 = vld [vmem:[#allocation3 + $0x548] sm:$0xff]  ;;  %v5776_v5 = vcombine.high %v153_v56, %v157_v57 }
  0xf9   :  { %2653 = vmatprep.subr.bf16.mxu0 %v6124_v8  ;;  %v5775_v8 = vcombine.low %v153_v56, %v157_v57  ;;  %v5934_v9 = vcombine.high %v312_v4, %v316_v6  ;;  %v5933_v15 = vcombine.low %v312_v4, %v316_v6  ;;  %v213_v56 = vld [vmem:[#allocation3 + $0x230] sm:$0xff]  ;;  %v360_v57 = vld [vmem:[#allocation3 + $0x6c8] sm:$0xff] }
  0xfa   :  { %v368_v4 = vld [vmem:[#allocation3 + $0x708] sm:$0xff] }
  0xfb   :  { %2740 = vmatpush1.bf16.msra.mxu1 %v5869_v11  ;;  %v173_v11 = vld [vmem:[#allocation3 + $0xf0] sm:$0xff]  ;;  %v372_v6 = vld [vmem:[#allocation3 + $0x728] sm:$0xff] }
  0xfc   :  { %2654 = vmatpush1.bf16.msra.mxu0 %v6123_v12  ;;  %2741 = vmatprep.subr.bf16.mxu1 %v5878_v13  ;;  %v320_v12 = vld [vmem:[#allocation3 + $0x588] sm:$0xff]  ;;  %v5784_v13 = vcombine.high %v161_v2, %v165_v3 }
  0xfd   :  { %2655 = vmatprep.subr.bf16.mxu0 %v6132_v16  ;;  %v5783_v16 = vcombine.low %v161_v2, %v165_v3  ;;  %v5942_v17 = vcombine.high %v320_v12, %v324_v14  ;;  %v5941_v24 = vcombine.low %v320_v12, %v324_v14  ;;  %v217_v2 = vld [vmem:[#allocation3 + $0x250] sm:$0xff]  ;;  %v376_v12 = vld [vmem:[#allocation3 + $0x748] sm:$0xff] }
  0xfe   :  { %v221_v3 = vld [vmem:[#allocation3 + $0x270] sm:$0xff]  ;;  %v380_v14 = vld [vmem:[#allocation3 + $0x768] sm:$0xff] }
  0xff   :  { %2742 = vmatpush1.bf16.msra.mxu1 %v5877_v19  ;;  %v181_v19 = vld [vmem:[#allocation3 + $0x130] sm:$0xff] }
 0x100   :  { %2656 = vmatpush1.bf16.msra.mxu0 %v6131_v20  ;;  %2743 = vmatprep.subr.bf16.mxu1 %v5886_v21  ;;  %v5792_v20 = vcombine.high %v169_v10, %v173_v11  ;;  %v328_v21 = vld [vmem:[#allocation3 + $0x5c8] sm:$0xff]  ;;  %v5799_v35 = vcombine.low %v177_v18, %v181_v19 }
 0x101   :  { %2657 = vmatprep.subr.bf16.mxu0 %v6140_v25  ;;  %v5791_v25 = vcombine.low %v169_v10, %v173_v11  ;;  %v5950_v26 = vcombine.high %v328_v21, %v332_v23  ;;  %v225_v10 = vld [vmem:[#allocation3 + $0x290] sm:$0xff] }
 0x102   :  { %v229_v11 = vld [vmem:[#allocation3 + $0x2b0] sm:$0xff] }
 0x103   :  { %2744 = vmatpush1.bf16.msra.mxu1 %v5885_v31  ;;  %v5800_v31 = vcombine.high %v177_v18, %v181_v19  ;;  %v233_v18 = vld [vmem:[#allocation3 + $0x2d0] sm:$0xff] }
 0x104   :  { %2658 = vmatpush1.bf16.msra.mxu0 %v6139_v32  ;;  %2756 = vmatprep.subr.bf16.mxu1 %v5894_v34  ;;  %v340_v32 = vld [vmem:[#allocation3 + $0x628] sm:$0xff]  ;;  %v5949_v34 = vcombine.low %v328_v21, %v332_v23  ;;  %v237_v19 = vld [vmem:[#allocation3 + $0x2f0] sm:$0xff]  ;;  %v5848_v21 = vcombine.high %v225_v10, %v229_v11 }
 0x105   :  { %2670 = vmatprep.subr.bf16.mxu0 %v6148_v37  ;;  %v5958_v36 = vcombine.high %v336_v30, %v340_v32  ;;  %v193_v37 = vld [vmem:[#allocation3 + $0x190] sm:$0xff]  ;;  %v388_v23 = vld [vmem:[#allocation3 + $0x7a8] sm:$0xff] }
 0x106   :  { %2746 = vmatmul.mubr.bf16.vlgmr.msra.gmra.mrb[4].mxu1 %v7439_v22  ;;  %v5816_v49 = vcombine.high %v193_v37, %v197_v38  ;;  %v5815_v53 = vcombine.low %v193_v37, %v197_v38  ;;  %v249_v37 = vld [vmem:[#allocation3 + $0x350] sm:$0xff] }
 0x107   :  { %2660 = vmatmul.mubr.bf16.vlgmr.msra.gmra.mrb[0].mxu0 %v7461_v40  ;;  %2757 = vmatpush1.bf16.msra.mxu1 %v5893_v41  ;;  %v5808_v41 = vcombine.high %v185_v28, %v189_v29  ;;  %v241_v28 = vld [vmem:[#allocation3 + $0x310] sm:$0xff] }
 0x108   :  { %2758 = vmatprep.subr.bf16.mxu1 %v5902_v42  ;;  %2671 = vmatpush1.bf16.msra.mxu0 %v6147_v43  ;;  %v348_v42 = vld [vmem:[#allocation3 + $0x668] sm:$0xff]  ;;  %v5957_v43 = vcombine.low %v336_v30, %v340_v32  ;;  %v245_v29 = vld [vmem:[#allocation3 + $0x330] sm:$0xff] }
 0x109   :  { %2702 = vmatprep.mubr.bf16.mxu0 %v7264_v51  ;;  %2885 = vmatprep.subr.bf16.mxu0 %v5768_v46  ;;  %v5966_v45 = vcombine.high %v344_v39, %v348_v42  ;;  %v201_v46 = vld [vmem:[#allocation3 + $0x1d0] sm:$0xff]  ;;  %v5965_v52 = vcombine.low %v344_v39, %v348_v42  ;;  %v392_v30 = vld [vmem:[#allocation3 + $0x7c8] sm:$0xff] }
 0x10a   :  { %2788 = vmatprep.mubr.bf16.mxu1 %v7424_v1  ;;  %v396_v32 = vld [vmem:[#allocation3 + $0x7e8] sm:$0xff]  ;;  %v253_v38 = vld [vmem:[#allocation3 + $0x370] sm:$0xff] }
 0x10b   :  { %2759 = vmatpush1.bf16.msra.mxu1 %v5901_v47  ;;  %v205_v47 = vld [vmem:[#allocation3 + $0x1f0] sm:$0xff]  ;;  %v400_v39 = vld [vmem:[#allocation3 + $0x808] sm:$0xff] }
 0x10c   :  { %2760 = vmatprep.subr.bf16.mxu1 %v5910_v48  ;;  %v352_v48 = vld [vmem:[#allocation3 + $0x688] sm:$0xff]  ;;  %v5824_v58 = vcombine.high %v201_v46, %v205_v47 }
 0x10d   :  { %v404_v42 = vld [vmem:[#allocation3 + $0x828] sm:$0xff] }
 0x10f   :  { %2761 = vmatpush1.bf16.msra.mxu1 %v5909_v54  ;;  %v5974_v54 = vcombine.high %v352_v48, %v356_v50 }
 0x110   :  { %2762 = vmatprep.subr.bf16.mxu1 %v5918_v55  ;;  %v209_v55 = vld [vmem:[#allocation3 + $0x210] sm:$0xff] }
 0x113   :  { %6155 = vmatmul.mubr.msk.bf16.vlgmr.msra.gmra.mrb[0].mxu0 %vm2537_vm0, %v7473_v61  ;;  %2763 = vmatpush1.bf16.msra.mxu1 %v5917_v62  ;;  %v5973_v62 = vcombine.low %v352_v48, %v356_v50  ;;  %v408_v48 = vld [vmem:[#allocation3 + $0x848] sm:$0xff] }
 0x114   :  { %2886 = vmatpush1.bf16.msra.mxu0 %v5767_v63  ;;  %2764 = vmatprep.subr.bf16.mxu1 %v5926_v0  ;;  %v5823_v63 = vcombine.low %v201_v46, %v205_v47  ;;  %v5982_v0 = vcombine.high %v360_v57, %v364_v60  ;;  %v257_v46 = vld [vmem:[#allocation3 + $0x390] sm:$0xff]  ;;  %v412_v50 = vld [vmem:[#allocation3 + $0x868] sm:$0xff] }
 0x115   :  { %2887 = vmatprep.subr.bf16.mxu0 %v5776_v5  ;;  %2917 = vmatprep.mubr.bf16.mxu0 %v7415_v59  ;;  %v5832_v5 = vcombine.high %v209_v55, %v213_v56  ;;  %v261_v47 = vld [vmem:[#allocation3 + $0x3b0] sm:$0xff] }
 0x117   :  { %2765 = vmatpush1.bf16.msra.mxu1 %v5925_v7  ;;  %v5981_v7 = vcombine.low %v360_v57, %v364_v60  ;;  %v416_v57 = vld [vmem:[#allocation3 + $0x888] sm:$0xff] }
 0x118   :  { %2888 = vmatpush1.bf16.msra.mxu0 %v5775_v8  ;;  %2766 = vmatprep.subr.bf16.mxu1 %v5934_v9  ;;  %v5831_v8 = vcombine.low %v209_v55, %v213_v56  ;;  %v5990_v9 = vcombine.high %v368_v4, %v372_v6  ;;  %v265_v55 = vld [vmem:[#allocation3 + $0x3d0] sm:$0xff]  ;;  %v420_v60 = vld [vmem:[#allocation3 + $0x8a8] sm:$0xff] }
 0x119   :  { %2889 = vmatprep.subr.bf16.mxu0 %v5784_v13  ;;  %v5840_v13 = vcombine.high %v217_v2, %v221_v3  ;;  %v269_v56 = vld [vmem:[#allocation3 + $0x3f0] sm:$0xff] }
 0x11b   :  { %2767 = vmatpush1.bf16.msra.mxu1 %v5933_v15  ;;  %v5989_v15 = vcombine.low %v368_v4, %v372_v6  ;;  %v424_v4 = vld [vmem:[#allocation3 + $0x8c8] sm:$0xff] }
 0x11c   :  { %2890 = vmatpush1.bf16.msra.mxu0 %v5783_v16  ;;  %2768 = vmatprep.subr.bf16.mxu1 %v5942_v17  ;;  %v5839_v16 = vcombine.low %v217_v2, %v221_v3  ;;  %v5998_v17 = vcombine.high %v376_v12, %v380_v14  ;;  %v273_v2 = vld [vmem:[#allocation3 + $0x410] sm:$0xff]  ;;  %v428_v6 = vld [vmem:[#allocation3 + $0x8e8] sm:$0xff] }
 0x11d   :  { %2891 = vmatprep.subr.bf16.mxu0 %v5792_v20  ;;  %v384_v20 = vld [vmem:[#allocation3 + $0x788] sm:$0xff]  ;;  %v277_v3 = vld [vmem:[#allocation3 + $0x430] sm:$0xff] }
 0x11f   :  { %2769 = vmatpush1.bf16.msra.mxu1 %v5941_v24  ;;  %v5997_v24 = vcombine.low %v376_v12, %v380_v14  ;;  %v432_v12 = vld [vmem:[#allocation3 + $0x908] sm:$0xff] }
 0x120   :  { %2892 = vmatpush1.bf16.msra.mxu0 %v5791_v25  ;;  %2770 = vmatprep.subr.bf16.mxu1 %v5950_v26  ;;  %v5847_v25 = vcombine.low %v225_v10, %v229_v11  ;;  %v6006_v26 = vcombine.high %v384_v20, %v388_v23  ;;  %v281_v10 = vld [vmem:[#allocation3 + $0x450] sm:$0xff]  ;;  %v436_v14 = vld [vmem:[#allocation3 + $0x928] sm:$0xff] }
 0x121   :  { %2893 = vmatprep.subr.bf16.mxu0 %v5800_v31  ;;  %v5856_v31 = vcombine.high %v233_v18, %v237_v19  ;;  %v285_v11 = vld [vmem:[#allocation3 + $0x470] sm:$0xff] }
 0x123   :  { %2771 = vmatpush1.bf16.msra.mxu1 %v5949_v34  ;;  %v6005_v34 = vcombine.low %v384_v20, %v388_v23  ;;  %v440_v20 = vld [vmem:[#allocation3 + $0x948] sm:$0xff]  ;;  %v5904_v23 = vcombine.high %v281_v10, %v285_v11 }
 0x124   :  { %2894 = vmatpush1.bf16.msra.mxu0 %v5799_v35  ;;  %2772 = vmatprep.subr.bf16.mxu1 %v5958_v36  ;;  %v5855_v35 = vcombine.low %v233_v18, %v237_v19  ;;  %v6014_v36 = vcombine.high %v392_v30, %v396_v32  ;;  %v289_v18 = vld [vmem:[#allocation3 + $0x490] sm:$0xff] }
 0x125   :  { %2895 = vmatprep.subr.bf16.mxu0 %v5808_v41  ;;  %v5864_v41 = vcombine.high %v241_v28, %v245_v29  ;;  %v293_v19 = vld [vmem:[#allocation3 + $0x4b0] sm:$0xff] }
 0x127   :  { %2773 = vmatpush1.bf16.msra.mxu1 %v5957_v43  ;;  %v6013_v43 = vcombine.low %v392_v30, %v396_v32  ;;  %v297_v30 = vld [vmem:[#allocation3 + $0x4d0] sm:$0xff]  ;;  %v5912_v32 = vcombine.high %v289_v18, %v293_v19 }
 0x128   :  { %2896 = vmatpush1.bf16.msra.mxu0 %v5807_v44  ;;  %2774 = vmatprep.subr.bf16.mxu1 %v5966_v45  ;;  %v5863_v44 = vcombine.low %v241_v28, %v245_v29  ;;  %v6022_v45 = vcombine.high %v400_v39, %v404_v42  ;;  %v5903_v28 = vcombine.low %v281_v10, %v285_v11  ;;  %v488_v11 = vld [vmem:[#allocation3 + $0xac8] sm:$0xff] }
 0x129   :  { %2897 = vmatprep.subr.bf16.mxu0 %v5816_v49  ;;  %v5872_v49 = vcombine.high %v249_v37, %v253_v38 }
 0x12b   :  { %2775 = vmatpush1.bf16.msra.mxu1 %v5965_v52  ;;  %v6021_v52 = vcombine.low %v400_v39, %v404_v42  ;;  %v309_v39 = vld [vmem:[#allocation3 + $0x530] sm:$0xff] }
 0x12c   :  { %2898 = vmatpush1.bf16.msra.mxu0 %v5815_v53  ;;  %2776 = vmatprep.subr.bf16.mxu1 %v5974_v54  ;;  %v5871_v53 = vcombine.low %v249_v37, %v253_v38  ;;  %v6030_v54 = vcombine.high %v408_v48, %v412_v50  ;;  %v305_v38 = vld [vmem:[#allocation3 + $0x510] sm:$0xff] }
 0x12d   :  { %2899 = vmatprep.subr.bf16.mxu0 %v5824_v58  ;;  %v5880_v58 = vcombine.high %v257_v46, %v261_v47 }
 0x12f   :  { %2777 = vmatpush1.bf16.msra.mxu1 %v5973_v62  ;;  %v6029_v62 = vcombine.low %v408_v48, %v412_v50  ;;  %v464_v48 = vld [vmem:[#allocation3 + $0xa08] sm:$0xff]  ;;  %v5928_v50 = vcombine.high %v305_v38, %v309_v39 }
 0x130   :  { %2900 = vmatpush1.bf16.msra.mxu0 %v5823_v63  ;;  %2778 = vmatprep.subr.bf16.mxu1 %v5982_v0  ;;  %v5879_v63 = vcombine.low %v257_v46, %v261_v47  ;;  %v6038_v0 = vcombine.high %v416_v57, %v420_v60  ;;  %v313_v46 = vld [vmem:[#allocation3 + $0x550] sm:$0xff] }
 0x131   :  { %2901 = vmatprep.subr.bf16.mxu0 %v5832_v5  ;;  %v5888_v5 = vcombine.high %v265_v55, %v269_v56  ;;  %v317_v47 = vld [vmem:[#allocation3 + $0x570] sm:$0xff] }
 0x133   :  { %2779 = vmatpush1.bf16.msra.mxu1 %v5981_v7  ;;  %v6037_v7 = vcombine.low %v416_v57, %v420_v60  ;;  %v5936_v57 = vcombine.high %v313_v46, %v317_v47  ;;  %v476_v60 = vld [vmem:[#allocation3 + $0xa68] sm:$0xff] }
 0x134   :  { %2902 = vmatpush1.bf16.msra.mxu0 %v5831_v8  ;;  %2780 = vmatprep.subr.bf16.mxu1 %v5990_v9  ;;  %v5887_v8 = vcombine.low %v265_v55, %v269_v56  ;;  %v6046_v9 = vcombine.high %v424_v4, %v428_v6  ;;  %v321_v55 = vld [vmem:[#allocation3 + $0x590] sm:$0xff] }
 0x135   :  { %2903 = vmatprep.subr.bf16.mxu0 %v5840_v13  ;;  %v5896_v13 = vcombine.high %v273_v2, %v277_v3  ;;  %v325_v56 = vld [vmem:[#allocation3 + $0x5b0] sm:$0xff] }
 0x137   :  { %2781 = vmatpush1.bf16.msra.mxu1 %v5989_v15  ;;  %v6045_v15 = vcombine.low %v424_v4, %v428_v6  ;;  %v484_v4 = vld [vmem:[#allocation3 + $0xaa8] sm:$0xff]  ;;  %v333_v6 = vld [vmem:[#allocation3 + $0x5f0] sm:$0xff] }
 0x138   :  { %2904 = vmatpush1.bf16.msra.mxu0 %v5839_v16  ;;  %2782 = vmatprep.subr.bf16.mxu1 %v5998_v17  ;;  %v5895_v16 = vcombine.low %v273_v2, %v277_v3  ;;  %v6054_v17 = vcombine.high %v432_v12, %v436_v14  ;;  %v5944_v2 = vcombine.high %v321_v55, %v325_v56  ;;  %v480_v3 = vld [vmem:[#allocation3 + $0xa88] sm:$0xff] }
 0x139   :  { %2905 = vmatprep.subr.bf16.mxu0 %v5848_v21  ;;  %v444_v21 = vld [vmem:[#allocation3 + $0x968] sm:$0xff] }
 0x13a   :  { %v6062_v29 = vcombine.high %v440_v20, %v444_v21 }
 0x13b   :  { %2783 = vmatpush1.bf16.msra.mxu1 %v5997_v24  ;;  %v6053_v24 = vcombine.low %v432_v12, %v436_v14  ;;  %v492_v12 = vld [vmem:[#allocation3 + $0xae8] sm:$0xff]  ;;  %v341_v14 = vld [vmem:[#allocation3 + $0x630] sm:$0xff] }
 0x13c   :  { %2906 = vmatpush1.bf16.msra.mxu0 %v5847_v25  ;;  %2784 = vmatprep.subr.bf16.mxu1 %v6006_v26  ;;  %v448_v25 = vld [vmem:[#allocation3 + $0x988] sm:$0xff] }
 0x13d   :  { %2907 = vmatprep.subr.bf16.mxu0 %v5856_v31  ;;  %v452_v26 = vld [vmem:[#allocation3 + $0x9a8] sm:$0xff]  ;;  %v301_v31 = vld [vmem:[#allocation3 + $0x4f0] sm:$0xff] }
 0x13e   :  { %v6070_v37 = vcombine.high %v448_v25, %v452_v26  ;;  %v5920_v42 = vcombine.high %v297_v30, %v301_v31 }
 0x13f   :  { %2785 = vmatpush1.bf16.msra.mxu1 %v6005_v34  ;;  %v6061_v34 = vcombine.low %v440_v20, %v444_v21  ;;  %v500_v20 = vld [vmem:[#allocation3 + $0xb28] sm:$0xff]  ;;  %v345_v21 = vld [vmem:[#allocation3 + $0x650] sm:$0xff] }
 0x140   :  { %2908 = vmatpush1.bf16.msra.mxu0 %v5855_v35  ;;  %2786 = vmatprep.subr.bf16.mxu1 %v6014_v36  ;;  %v456_v35 = vld [vmem:[#allocation3 + $0x9c8] sm:$0xff]  ;;  %v5911_v36 = vcombine.low %v289_v18, %v293_v19 }
 0x141   :  { %2909 = vmatprep.subr.bf16.mxu0 %v5864_v41  ;;  %v460_v41 = vld [vmem:[#allocation3 + $0x9e8] sm:$0xff] }
 0x142   :  { %v496_v19 = vld [vmem:[#allocation3 + $0xb08] sm:$0xff] }
 0x143   :  { %2787 = vmatpush1.bf16.msra.mxu1 %v6013_v43  ;;  %v6069_v43 = vcombine.low %v448_v25, %v452_v26  ;;  %v6118_v26 = vcombine.high %v496_v19, %v500_v20 }
 0x144   :  { %2910 = vmatpush1.bf16.msra.mxu0 %v5863_v44  ;;  %2799 = vmatprep.subr.bf16.mxu1 %v6022_v45  ;;  %v5919_v44 = vcombine.low %v297_v30, %v301_v31  ;;  %v6078_v45 = vcombine.high %v456_v35, %v460_v41  ;;  %v508_v30 = vld [vmem:[#allocation3 + $0xb68] sm:$0xff]  ;;  %v353_v31 = vld [vmem:[#allocation3 + $0x690] sm:$0xff] }
 0x145   :  { %2911 = vmatprep.subr.bf16.mxu0 %v5872_v49  ;;  %v468_v49 = vld [vmem:[#allocation3 + $0xa28] sm:$0xff] }
 0x146   :  { %2789 = vmatmul.mubr.bf16.vlgmr.msra.gmra.mrb[4].mxu1 %v7447_v27 }
 0x147   :  { %2800 = vmatpush1.bf16.msra.mxu1 %v6021_v52  ;;  %2831 = vmatprep.mubr.bf16.mxu1 %v7449_v33  ;;  %v6077_v52 = vcombine.low %v456_v35, %v460_v41  ;;  %v361_v41 = vld [vmem:[#allocation3 + $0x6d0] sm:$0xff] }
 0x148   :  { %2912 = vmatpush1.bf16.msra.mxu0 %v5871_v53  ;;  %2801 = vmatprep.subr.bf16.mxu1 %v6030_v54  ;;  %v5927_v53 = vcombine.low %v305_v38, %v309_v39  ;;  %v6086_v54 = vcombine.high %v464_v48, %v468_v49  ;;  %v512_v38 = vld [vmem:[#allocation3 + $0xb88] sm:$0xff] }
 0x149   :  { %2913 = vmatprep.subr.bf16.mxu0 %v5880_v58  ;;  %v472_v58 = vld [vmem:[#allocation3 + $0xa48] sm:$0xff] }
 0x14a   :  { %v516_v39 = vld [vmem:[#allocation3 + $0xba8] sm:$0xff] }
 0x14b   :  { %2802 = vmatpush1.bf16.msra.mxu1 %v6029_v62  ;;  %v6085_v62 = vcombine.low %v464_v48, %v468_v49  ;;  %v524_v48 = vld [vmem:[#allocation3 + $0xbe8] sm:$0xff]  ;;  %v369_v49 = vld [vmem:[#allocation3 + $0x710] sm:$0xff] }
 0x14c   :  { %2914 = vmatpush1.bf16.msra.mxu0 %v5879_v63  ;;  %2803 = vmatprep.subr.bf16.mxu1 %v6038_v0  ;;  %v5935_v63 = vcombine.low %v313_v46, %v317_v47  ;;  %v6094_v0 = vcombine.high %v472_v58, %v476_v60  ;;  %v520_v47 = vld [vmem:[#allocation3 + $0xbc8] sm:$0xff] }
 0x14d   :  { %2915 = vmatprep.subr.bf16.mxu0 %v5888_v5  ;;  %v329_v5 = vld [vmem:[#allocation3 + $0x5d0] sm:$0xff] }
 0x14e   :  { %v5952_v10 = vcombine.high %v329_v5, %v333_v6 }
 0x14f   :  { %2804 = vmatpush1.bf16.msra.mxu1 %v6037_v7  ;;  %v6093_v7 = vcombine.low %v472_v58, %v476_v60  ;;  %v377_v58 = vld [vmem:[#allocation3 + $0x750] sm:$0xff] }
 0x150   :  { %2916 = vmatpush1.bf16.msra.mxu0 %v5887_v8  ;;  %2805 = vmatprep.subr.bf16.mxu1 %v6046_v9  ;;  %v5943_v8 = vcombine.low %v321_v55, %v325_v56  ;;  %v6102_v9 = vcombine.high %v480_v3, %v484_v4  ;;  %v528_v56 = vld [vmem:[#allocation3 + $0xc08] sm:$0xff]  ;;  %v381_v60 = vld [vmem:[#allocation3 + $0x770] sm:$0xff] }
 0x151   :  { %2928 = vmatprep.subr.bf16.mxu0 %v5896_v13  ;;  %v337_v13 = vld [vmem:[#allocation3 + $0x610] sm:$0xff] }
 0x152   :  { %v5960_v18 = vcombine.high %v337_v13, %v341_v14  ;;  %v5959_v25 = vcombine.low %v337_v13, %v341_v14 }
 0x153   :  { %2918 = vmatmul.mubr.bf16.vlgmr.msra.gmra.mrb[4].mxu0 %v7439_v22  ;;  %2806 = vmatpush1.bf16.msra.mxu1 %v6045_v15  ;;  %v6101_v15 = vcombine.low %v480_v3, %v484_v4  ;;  %v146_v3 = vld [vmem:[#allocation3 + $0x18] sm:$0xff] }
 0x154   :  { %2929 = vmatpush1.bf16.msra.mxu0 %v5895_v16  ;;  %2807 = vmatprep.subr.bf16.mxu1 %v6054_v17  ;;  %v5951_v16 = vcombine.low %v329_v5, %v333_v6  ;;  %v6110_v17 = vcombine.high %v488_v11, %v492_v12  ;;  %v150_v4 = vld [vmem:[#allocation3 + $0x38] sm:$0xff]  ;;  %v385_v5 = vld [vmem:[#allocation3 + $0x790] sm:$0xff] }
 0x155   :  { %2930 = vmatprep.subr.bf16.mxu0 %v5904_v23  ;;  %2960 = vmatprep.mubr.bf16.mxu0 %v7424_v1  ;;  %v349_v23 = vld [vmem:[#allocation3 + $0x670] sm:$0xff] }
 0x156   :  { %v5967_v35 = vcombine.low %v345_v21, %v349_v23  ;;  %v389_v6 = vld [vmem:[#allocation3 + $0x7b0] sm:$0xff] }
 0x157   :  { %2808 = vmatpush1.bf16.msra.mxu1 %v6053_v24  ;;  %v6109_v24 = vcombine.low %v488_v11, %v492_v12  ;;  %v393_v11 = vld [vmem:[#allocation3 + $0x7d0] sm:$0xff]  ;;  %v6007_v13 = vcombine.low %v385_v5, %v389_v6 }
 0x158   :  { %2931 = vmatpush1.bf16.msra.mxu0 %v5903_v28  ;;  %2809 = vmatprep.subr.bf16.mxu1 %v6062_v29  ;;  %v5968_v28 = vcombine.high %v345_v21, %v349_v23  ;;  %v504_v29 = vld [vmem:[#allocation3 + $0xb48] sm:$0xff]  ;;  %v397_v12 = vld [vmem:[#allocation3 + $0x7f0] sm:$0xff] }
 0x159   :  { %2932 = vmatprep.subr.bf16.mxu0 %v5912_v32  ;;  %v357_v32 = vld [vmem:[#allocation3 + $0x6b0] sm:$0xff]  ;;  %v6016_v14 = vcombine.high %v393_v11, %v397_v12 }
 0x15a   :  { %v409_v21 = vld [vmem:[#allocation3 + $0x850] sm:$0xff] }
 0x15b   :  { %2810 = vmatpush1.bf16.msra.mxu1 %v6061_v34  ;;  %v6117_v34 = vcombine.low %v496_v19, %v500_v20  ;;  %v154_v19 = vld [vmem:[#allocation3 + $0x58] sm:$0xff]  ;;  %v413_v23 = vld [vmem:[#allocation3 + $0x870] sm:$0xff] }
 0x15c   :  { %2933 = vmatpush1.bf16.msra.mxu0 %v5911_v36  ;;  %2811 = vmatprep.subr.bf16.mxu1 %v6070_v37  ;;  %v6126_v36 = vcombine.high %v504_v29, %v508_v30  ;;  %v5976_v37 = vcombine.high %v353_v31, %v357_v32  ;;  %v158_v20 = vld [vmem:[#allocation3 + $0x78] sm:$0xff] }
 0x15d   :  { %2934 = vmatprep.subr.bf16.mxu0 %v5920_v42  ;;  %v365_v42 = vld [vmem:[#allocation3 + $0x6f0] sm:$0xff] }
 0x15e   :  { %v5984_v46 = vcombine.high %v361_v41, %v365_v42 }
 0x15f   :  { %2812 = vmatpush1.bf16.msra.mxu1 %v6069_v43  ;;  %v6125_v43 = vcombine.low %v504_v29, %v508_v30  ;;  %v162_v29 = vld [vmem:[#allocation3 + $0x98] sm:$0xff] }
 0x160   :  { %2935 = vmatpush1.bf16.msra.mxu0 %v5919_v44  ;;  %2813 = vmatprep.subr.bf16.mxu1 %v6078_v45  ;;  %v5975_v44 = vcombine.low %v353_v31, %v357_v32  ;;  %v6134_v45 = vcombine.high %v512_v38, %v516_v39  ;;  %v166_v30 = vld [vmem:[#allocation3 + $0xb8] sm:$0xff]  ;;  %v417_v31 = vld [vmem:[#allocation3 + $0x890] sm:$0xff] }
 0x161   :  { %2936 = vmatprep.subr.bf16.mxu0 %v5928_v50  ;;  %v373_v50 = vld [vmem:[#allocation3 + $0x730] sm:$0xff] }
 0x162   :  { %v5992_v55 = vcombine.high %v369_v49, %v373_v50  ;;  %v421_v32 = vld [vmem:[#allocation3 + $0x8b0] sm:$0xff] }
 0x163   :  { %2814 = vmatpush1.bf16.msra.mxu1 %v6077_v52  ;;  %v6133_v52 = vcombine.low %v512_v38, %v516_v39  ;;  %v170_v38 = vld [vmem:[#allocation3 + $0xd8] sm:$0xff] }
 0x164   :  { %2937 = vmatpush1.bf16.msra.mxu0 %v5927_v53  ;;  %2815 = vmatprep.subr.bf16.mxu1 %v6086_v54  ;;  %v5983_v53 = vcombine.low %v361_v41, %v365_v42  ;;  %v6142_v54 = vcombine.high %v520_v47, %v524_v48  ;;  %v174_v39 = vld [vmem:[#allocation3 + $0xf8] sm:$0xff]  ;;  %v425_v41 = vld [vmem:[#allocation3 + $0x8d0] sm:$0xff] }
 0x165   :  { %2938 = vmatprep.subr.bf16.mxu0 %v5936_v57  ;;  %v532_v57 = vld [vmem:[#allocation3 + $0xc28] sm:$0xff]  ;;  %v429_v42 = vld [vmem:[#allocation3 + $0x8f0] sm:$0xff] }
 0x167   :  { %2816 = vmatpush1.bf16.msra.mxu1 %v6085_v62  ;;  %v6141_v62 = vcombine.low %v520_v47, %v524_v48  ;;  %v6048_v47 = vcombine.high %v425_v41, %v429_v42  ;;  %v178_v48 = vld [vmem:[#allocation3 + $0x118] sm:$0xff] }
 0x168   :  { %2939 = vmatpush1.bf16.msra.mxu0 %v5935_v63  ;;  %2817 = vmatprep.subr.bf16.mxu1 %v6094_v0  ;;  %v5991_v63 = vcombine.low %v369_v49, %v373_v50  ;;  %v6150_v0 = vcombine.high %v528_v56, %v532_v57  ;;  %v182_v49 = vld [vmem:[#allocation3 + $0x138] sm:$0xff] }
 0x169   :  { %2940 = vmatprep.subr.bf16.mxu0 %v5944_v2  ;;  %v6000_v2 = vcombine.high %v377_v58, %v381_v60 }
 0x16b   :  { %2818 = vmatpush1.bf16.msra.mxu1 %v6093_v7  ;;  %v6149_v7 = vcombine.low %v528_v56, %v532_v57  ;;  %v6047_v56 = vcombine.low %v425_v41, %v429_v42  ;;  %v5802_v57 = vcombine.high %v178_v48, %v182_v49  ;;  %v226_v42 = vld [vmem:[#allocation3 + $0x298] sm:$0xff] }
 0x16c   :  { %2941 = vmatpush1.bf16.msra.mxu0 %v5943_v8  ;;  %2819 = vmatprep.subr.bf16.mxu1 %v6102_v9  ;;  %v5999_v8 = vcombine.low %v377_v58, %v381_v60  ;;  %v5770_v9 = vcombine.high %v146_v3, %v150_v4  ;;  %v186_v60 = vld [vmem:[#allocation3 + $0x158] sm:$0xff] }
 0x16d   :  { %2942 = vmatprep.subr.bf16.mxu0 %v5952_v10  ;;  %v6008_v10 = vcombine.high %v385_v5, %v389_v6  ;;  %v194_v6 = vld [vmem:[#allocation3 + $0x198] sm:$0xff] }
 0x16f   :  { %2820 = vmatpush1.bf16.msra.mxu1 %v6101_v15  ;;  %v401_v15 = vld [vmem:[#allocation3 + $0x810] sm:$0xff] }
 0x170   :  { %2943 = vmatpush1.bf16.msra.mxu0 %v5951_v16  ;;  %2821 = vmatprep.subr.bf16.mxu1 %v6110_v17  ;;  %v405_v16 = vld [vmem:[#allocation3 + $0x830] sm:$0xff]  ;;  %v6015_v17 = vcombine.low %v393_v11, %v397_v12 }
 0x171   :  { %2944 = vmatprep.subr.bf16.mxu0 %v5960_v18  ;;  %v6024_v18 = vcombine.high %v401_v15, %v405_v16 }
 0x173   :  { %2822 = vmatpush1.bf16.msra.mxu1 %v6109_v24  ;;  %v5769_v24 = vcombine.low %v146_v3, %v150_v4 }
 0x174   :  { %2945 = vmatpush1.bf16.msra.mxu0 %v5959_v25  ;;  %2823 = vmatprep.subr.bf16.mxu1 %v6118_v26  ;;  %v6023_v25 = vcombine.low %v401_v15, %v405_v16  ;;  %v5778_v26 = vcombine.high %v154_v19, %v158_v20  ;;  %v206_v15 = vld [vmem:[#allocation3 + $0x1f8] sm:$0xff]  ;;  %v457_v16 = vld [vmem:[#allocation3 + $0x9d0] sm:$0xff] }
 0x175   :  { %2946 = vmatprep.subr.bf16.mxu0 %v5968_v28  ;;  %v6032_v28 = vcombine.high %v409_v21, %v413_v23 }
 0x177   :  { %2824 = vmatpush1.bf16.msra.mxu1 %v6117_v34  ;;  %v5777_v34 = vcombine.low %v154_v19, %v158_v20 }
 0x178   :  { %2947 = vmatpush1.bf16.msra.mxu0 %v5967_v35  ;;  %2825 = vmatprep.subr.bf16.mxu1 %v6126_v36  ;;  %v6031_v35 = vcombine.low %v409_v21, %v413_v23  ;;  %v5786_v36 = vcombine.high %v162_v29, %v166_v30  ;;  %v210_v23 = vld [vmem:[#allocation3 + $0x218] sm:$0xff] }
 0x179   :  { %2948 = vmatprep.subr.bf16.mxu0 %v5976_v37  ;;  %v6040_v37 = vcombine.high %v417_v31, %v421_v32 }
 0x17b   :  { %2826 = vmatpush1.bf16.msra.mxu1 %v6125_v43  ;;  %v5785_v43 = vcombine.low %v162_v29, %v166_v30 }
 0x17c   :  { %2949 = vmatpush1.bf16.msra.mxu0 %v5975_v44  ;;  %2827 = vmatprep.subr.bf16.mxu1 %v6134_v45  ;;  %v6039_v44 = vcombine.low %v417_v31, %v421_v32  ;;  %v5794_v45 = vcombine.high %v170_v38, %v174_v39  ;;  %v218_v32 = vld [vmem:[#allocation3 + $0x258] sm:$0xff] }
 0x17d   :  { %2950 = vmatprep.subr.bf16.mxu0 %v5984_v46 }
 0x17f   :  { %2828 = vmatpush1.bf16.msra.mxu1 %v6133_v52  ;;  %v433_v52 = vld [vmem:[#allocation3 + $0x910] sm:$0xff] }
 0x180   :  { %2951 = vmatpush1.bf16.msra.mxu0 %v5983_v53  ;;  %2829 = vmatprep.subr.bf16.mxu1 %v6142_v54  ;;  %v437_v53 = vld [vmem:[#allocation3 + $0x930] sm:$0xff] }
 0x181   :  { %2952 = vmatprep.subr.bf16.mxu0 %v5992_v55  ;;  %v6056_v58 = vcombine.high %v433_v52, %v437_v53  ;;  %v6055_v3 = vcombine.low %v433_v52, %v437_v53  ;;  %v234_v53 = vld [vmem:[#allocation3 + $0x2d8] sm:$0xff] }
 0x183   :  { %2830 = vmatpush1.bf16.msra.mxu1 %v6141_v62  ;;  %v190_v62 = vld [vmem:[#allocation3 + $0x178] sm:$0xff] }
 0x184   :  { %2953 = vmatpush1.bf16.msra.mxu0 %v5991_v63  ;;  %2842 = vmatprep.subr.bf16.mxu1 %v6150_v0  ;;  %v441_v63 = vld [vmem:[#allocation3 + $0x950] sm:$0xff]  ;;  %v5810_v4 = vcombine.high %v186_v60, %v190_v62 }
 0x185   :  { %2954 = vmatprep.subr.bf16.mxu0 %v6000_v2  ;;  %v445_v0 = vld [vmem:[#allocation3 + $0x970] sm:$0xff]  ;;  %v5801_v2 = vcombine.low %v178_v48, %v182_v49 }
 0x186   :  { %2832 = vmatmul.mubr.bf16.vlgmr.msra.gmra.mrb[4].mxu1 %v7461_v40  ;;  %v6064_v5 = vcombine.high %v441_v63, %v445_v0  ;;  %v6063_v11 = vcombine.low %v441_v63, %v445_v0  ;;  %v242_v0 = vld [vmem:[#allocation3 + $0x318] sm:$0xff] }
 0x187   :  { %2843 = vmatpush1.bf16.msra.mxu1 %v6149_v7  ;;  %2874 = vmatprep.mubr.bf16.mxu1 %v7264_v51  ;;  %v198_v7 = vld [vmem:[#allocation3 + $0x1b8] sm:$0xff] }
 0x188   :  { %2955 = vmatpush1.bf16.msra.mxu0 %v5999_v8  ;;  %3057 = vmatprep.subr.bf16.mxu1 %v5770_v9  ;;  %v449_v8 = vld [vmem:[#allocation3 + $0x990] sm:$0xff]  ;;  %v5818_v12 = vcombine.high %v194_v6, %v198_v7 }
 0x189   :  { %2956 = vmatprep.subr.bf16.mxu0 %v6008_v10  ;;  %v453_v9 = vld [vmem:[#allocation3 + $0x9b0] sm:$0xff]  ;;  %v5809_v10 = vcombine.low %v186_v60, %v190_v62 }
 0x18a   :  { %v6071_v19 = vcombine.low %v449_v8, %v453_v9 }
 0x18c   :  { %2957 = vmatpush1.bf16.msra.mxu0 %v6007_v13  ;;  %v6072_v13 = vcombine.high %v449_v8, %v453_v9  ;;  %v250_v9 = vld [vmem:[#allocation3 + $0x358] sm:$0xff] }
 0x18d   :  { %2958 = vmatprep.subr.bf16.mxu0 %v6016_v14  ;;  %v202_v14 = vld [vmem:[#allocation3 + $0x1d8] sm:$0xff] }
 0x18e   :  { %v5826_v20 = vcombine.high %v202_v14, %v206_v15 }
 0x190   :  { %2959 = vmatpush1.bf16.msra.mxu0 %v6015_v17  ;;  %v461_v17 = vld [vmem:[#allocation3 + $0x9f0] sm:$0xff] }
 0x191   :  { %2971 = vmatprep.subr.bf16.mxu0 %v6024_v18  ;;  %v5817_v18 = vcombine.low %v194_v6, %v198_v7  ;;  %v6080_v21 = vcombine.high %v457_v16, %v461_v17  ;;  %v6079_v29 = vcombine.low %v457_v16, %v461_v17  ;;  %v258_v17 = vld [vmem:[#allocation3 + $0x398] sm:$0xff] }
 0x192   :  { %6156 = vmatmul.mubr.msk.bf16.vlgmr.msra.gmra.mrb[4].mxu1 %vm2537_vm0, %v7473_v61 }
 0x193   :  { %2961 = vmatmul.mubr.bf16.vlgmr.msra.gmra.mrb[4].mxu0 %v7447_v27  ;;  %3058 = vmatpush1.bf16.msra.mxu1 %v5769_v24  ;;  %v214_v24 = vld [vmem:[#allocation3 + $0x238] sm:$0xff] }
 0x194   :  { %2972 = vmatpush1.bf16.msra.mxu0 %v6023_v25  ;;  %3059 = vmatprep.subr.bf16.mxu1 %v5778_v26  ;;  %v465_v25 = vld [vmem:[#allocation3 + $0xa10] sm:$0xff]  ;;  %v5834_v30 = vcombine.high %v210_v23, %v214_v24 }
 0x195   :  { %2973 = vmatprep.subr.bf16.mxu0 %v6032_v28  ;;  %3003 = vmatprep.mubr.bf16.mxu0 %v7449_v33  ;;  %v469_v26 = vld [vmem:[#allocation3 + $0xa30] sm:$0xff]  ;;  %v5825_v28 = vcombine.low %v202_v14, %v206_v15 }
 0x196   :  { %3089 = vmatprep.mubr.bf16.mxu1 %v7415_v59  ;;  %v5793_v59 = vcombine.low %v170_v38, %v174_v39  ;;  %v6088_v31 = vcombine.high %v465_v25, %v469_v26  ;;  %v6087_v38 = vcombine.low %v465_v25, %v469_v26  ;;  %v266_v26 = vld [vmem:[#allocation3 + $0x3d8] sm:$0xff] }
 0x197   :  { %3060 = vmatpush1.bf16.msra.mxu1 %v5777_v34  ;;  %v222_v34 = vld [vmem:[#allocation3 + $0x278] sm:$0xff] }
 0x198   :  { %2974 = vmatpush1.bf16.msra.mxu0 %v6031_v35  ;;  %3061 = vmatprep.subr.bf16.mxu1 %v5786_v36  ;;  %v473_v35 = vld [vmem:[#allocation3 + $0xa50] sm:$0xff]  ;;  %v5842_v39 = vcombine.high %v218_v32, %v222_v34 }
 0x199   :  { %v7489_v46 = vpop.f32.mrb[0].mxu1  ;;  %2975 = vmatprep.subr.bf16.mxu0 %v6040_v37  ;;  %v477_v36 = vld [vmem:[#allocation3 + $0xa70] sm:$0xff]  ;;  %v5833_v37 = vcombine.low %v210_v23, %v214_v24 }
 0x19a   :  { %v7491_v50 = vpop.f32.mrb[1].mxu1  ;;  %v6096_v41 = vcombine.high %v473_v35, %v477_v36  ;;  %v6095_v48 = vcombine.low %v473_v35, %v477_v36  ;;  %v274_v36 = vld [vmem:[#allocation3 + $0x418] sm:$0xff] }
 0x19b   :  { %3062 = vmatpush1.bf16.msra.mxu1 %v5785_v43  ;;  %v7493_v54 = vpop.f32.mrb[2].mxu1  ;;  %v230_v43 = vld [vmem:[#allocation3 + $0x2b8] sm:$0xff] }
 0x19c   :  { %2976 = vmatpush1.bf16.msra.mxu0 %v6039_v44  ;;  %v7495_v55 = vpop.f32.mrb[3].mxu1  ;;  %3063 = vmatprep.subr.bf16.mxu1 %v5794_v45  ;;  %v481_v44 = vld [vmem:[#allocation3 + $0xa90] sm:$0xff]  ;;  %v5850_v49 = vcombine.high %v226_v42, %v230_v43 }
 0x19d   :  { %2977 = vmatprep.subr.bf16.mxu0 %v6048_v47  ;;  %v485_v45 = vld [vmem:[#allocation3 + $0xab0] sm:$0xff]  ;;  %v5841_v47 = vcombine.low %v218_v32, %v222_v34 }
 0x19e   :  { %v6104_v52 = vcombine.high %v481_v44, %v485_v45  ;;  %v6103_v60 = vcombine.low %v481_v44, %v485_v45  ;;  %v282_v44 = vld [vmem:[#allocation3 + $0x458] sm:$0xff] }
 0x19f   :  { %3064 = vmatpush1.bf16.msra.mxu1 %v5793_v59  ;;  %v238_v59 = vld [vmem:[#allocation3 + $0x2f8] sm:$0xff] }
 0x1a0   :  { %2978 = vmatpush1.bf16.msra.mxu0 %v6047_v56  ;;  %3065 = vmatprep.subr.bf16.mxu1 %v5802_v57  ;;  %v489_v56 = vld [vmem:[#allocation3 + $0xad0] sm:$0xff]  ;;  %v5858_v62 = vcombine.high %v234_v53, %v238_v59  ;;  %v286_v45 = vld [vmem:[#allocation3 + $0x478] sm:$0xff] }
 0x1a1   :  { %2979 = vmatprep.subr.bf16.mxu0 %v6056_v58  ;;  %v493_v57 = vld [vmem:[#allocation3 + $0xaf0] sm:$0xff]  ;;  %v5849_v58 = vcombine.low %v226_v42, %v230_v43 }
 0x1a2   :  { %v6112_v63 = vcombine.high %v489_v56, %v493_v57  ;;  %v6111_v6 = vcombine.low %v489_v56, %v493_v57  ;;  %v6602_v56 = vld [vmem:[#allocation7 + $0x4] ss:$16 sps:$4 sm:$0xff]   ;;  %v5905_v57 = vcombine.low %v282_v44, %v286_v45 }
 0x1a3   :  { %3066 = vmatpush1.bf16.msra.mxu1 %v5801_v2  ;;  %v246_v2 = vld [vmem:[#allocation3 + $0x338] sm:$0xff] }
 0x1a4   :  { %2980 = vmatpush1.bf16.msra.mxu0 %v6055_v3  ;;  %3067 = vmatprep.subr.bf16.mxu1 %v5810_v4  ;;  %v497_v3 = vld [vmem:[#allocation3 + $0xb10] sm:$0xff]  ;;  %v5866_v7 = vcombine.high %v242_v0, %v246_v2 }
 0x1a5   :  { %2981 = vmatprep.subr.bf16.mxu0 %v6064_v5  ;;  %v501_v4 = vld [vmem:[#allocation3 + $0xb30] sm:$0xff]  ;;  %v5857_v5 = vcombine.low %v234_v53, %v238_v59  ;;  %v290_v53 = vld [vmem:[#allocation3 + $0x498] sm:$0xff] }
 0x1a6   :  { %v6120_v8 = vcombine.high %v497_v3, %v501_v4  ;;  %v6119_v14 = vcombine.low %v497_v3, %v501_v4  ;;  %v294_v59 = vld [vmem:[#allocation3 + $0x4b8] sm:$0xff] }
 0x1a7   :  { %3068 = vmatpush1.bf16.msra.mxu1 %v5809_v10  ;;  %v254_v10 = vld [vmem:[#allocation3 + $0x378] sm:$0xff] }
 0x1a8   :  { %2982 = vmatpush1.bf16.msra.mxu0 %v6063_v11  ;;  %3069 = vmatprep.subr.bf16.mxu1 %v5818_v12  ;;  %v505_v11 = vld [vmem:[#allocation3 + $0xb50] sm:$0xff]  ;;  %v5874_v15 = vcombine.high %v250_v9, %v254_v10  ;;  %v306_v3 = vld [vmem:[#allocation3 + $0x518] sm:$0xff] }
 0x1a9   :  { %2983 = vmatprep.subr.bf16.mxu0 %v6072_v13  ;;  %v509_v12 = vld [vmem:[#allocation3 + $0xb70] sm:$0xff]  ;;  %v5865_v13 = vcombine.low %v242_v0, %v246_v2  ;;  %v5913_v0 = vcombine.low %v290_v53, %v294_v59  ;;  %v310_v4 = vld [vmem:[#allocation3 + $0x538] sm:$0xff] }
 0x1aa   :  { %v6128_v16 = vcombine.high %v505_v11, %v509_v12  ;;  %v6127_v23 = vcombine.low %v505_v11, %v509_v12  ;;  %v318_v11 = vld [vmem:[#allocation3 + $0x578] sm:$0xff] }
 0x1ab   :  { %3070 = vmatpush1.bf16.msra.mxu1 %v5817_v18  ;;  %v262_v18 = vld [vmem:[#allocation3 + $0x3b8] sm:$0xff] }
 0x1ac   :  { %2984 = vmatpush1.bf16.msra.mxu0 %v6071_v19  ;;  %3071 = vmatprep.subr.bf16.mxu1 %v5826_v20  ;;  %v513_v19 = vld [vmem:[#allocation3 + $0xb90] sm:$0xff]  ;;  %v5882_v24 = vcombine.high %v258_v17, %v262_v18 }
 0x1ad   :  { %2985 = vmatprep.subr.bf16.mxu0 %v6080_v21  ;;  %v517_v20 = vld [vmem:[#allocation3 + $0xbb0] sm:$0xff]  ;;  %v5873_v21 = vcombine.low %v250_v9, %v254_v10  ;;  %v6605_v9 = vld [vmem:[#allocation7 + $0x24] ss:$16 sps:$4 sm:$0xff]  }
 0x1ae   :  { %v6136_v25 = vcombine.high %v513_v19, %v517_v20  ;;  %v6135_v32 = vcombine.low %v513_v19, %v517_v20  ;;  %v314_v10 = vld [vmem:[#allocation3 + $0x558] sm:$0xff] }
 0x1af   :  { %3072 = vmatpush1.bf16.msra.mxu1 %v5825_v28  ;;  %v270_v28 = vld [vmem:[#allocation3 + $0x3f8] sm:$0xff] }
 0x1b0   :  { %2986 = vmatpush1.bf16.msra.mxu0 %v6079_v29  ;;  %3073 = vmatprep.subr.bf16.mxu1 %v5834_v30  ;;  %v521_v29 = vld [vmem:[#allocation3 + $0xbd0] sm:$0xff]  ;;  %v5890_v34 = vcombine.high %v266_v26, %v270_v28  ;;  %v326_v19 = vld [vmem:[#allocation3 + $0x5b8] sm:$0xff] }
 0x1b1   :  { %2987 = vmatprep.subr.bf16.mxu0 %v6088_v31  ;;  %v525_v30 = vld [vmem:[#allocation3 + $0xbf0] sm:$0xff]  ;;  %v5881_v31 = vcombine.low %v258_v17, %v262_v18  ;;  %v6608_v17 = vld [vmem:[#allocation7 + $0x44] ss:$16 sps:$4 sm:$0xff]  }
 0x1b2   :  { %v6144_v35 = vcombine.high %v521_v29, %v525_v30  ;;  %v6143_v42 = vcombine.low %v521_v29, %v525_v30  ;;  %v322_v18 = vld [vmem:[#allocation3 + $0x598] sm:$0xff] }
 0x1b3   :  { %3074 = vmatpush1.bf16.msra.mxu1 %v5833_v37  ;;  %v278_v37 = vld [vmem:[#allocation3 + $0x438] sm:$0xff] }
 0x1b4   :  { %2988 = vmatpush1.bf16.msra.mxu0 %v6087_v38  ;;  %3075 = vmatprep.subr.bf16.mxu1 %v5842_v39  ;;  %v529_v38 = vld [vmem:[#allocation3 + $0xc10] sm:$0xff]  ;;  %v5898_v43 = vcombine.high %v274_v36, %v278_v37  ;;  %v334_v29 = vld [vmem:[#allocation3 + $0x5f8] sm:$0xff] }
 0x1b5   :  { %2989 = vmatprep.subr.bf16.mxu0 %v6096_v41  ;;  %v533_v39 = vld [vmem:[#allocation3 + $0xc30] sm:$0xff]  ;;  %v5889_v41 = vcombine.low %v266_v26, %v270_v28  ;;  %v6611_v26 = vld [vmem:[#allocation7 + $0x64] ss:$16 sps:$4 sm:$0xff]  }
 0x1b6   :  { %v330_v28 = vld [vmem:[#allocation3 + $0x5d8] sm:$0xff] }
 0x1b7   :  { %3076 = vmatpush1.bf16.msra.mxu1 %v5841_v47  ;;  %v6152_v47 = vcombine.high %v529_v38, %v533_v39 }
 0x1b8   :  { %2990 = vmatpush1.bf16.msra.mxu0 %v6095_v48  ;;  %3077 = vmatprep.subr.bf16.mxu1 %v5850_v49  ;;  %v5897_v48 = vcombine.low %v274_v36, %v278_v37  ;;  %v5906_v49 = vcombine.high %v282_v44, %v286_v45  ;;  %v5945_v36 = vcombine.low %v322_v18, %v326_v19 }
 0x1b9   :  { %2991 = vmatprep.subr.bf16.mxu0 %v6104_v52  ;;  %v6151_v52 = vcombine.low %v529_v38, %v533_v39 }
 0x1bb   :  { %3078 = vmatpush1.bf16.msra.mxu1 %v5849_v58  ;;  %v5914_v58 = vcombine.high %v290_v53, %v294_v59  ;;  %v6612_v53 = vld [vmem:[#allocation7 + $0x80] ss:$16 sps:$4 sm:$0xff]  }
 0x1bc   :  { %2992 = vmatpush1.bf16.msra.mxu0 %v6103_v60  ;;  %3079 = vmatprep.subr.bf16.mxu1 %v5858_v62  ;;  %v537_v60 = vlaneseq  ;;  %v298_v62 = vld [vmem:[#allocation3 + $0x4d8] sm:$0xff] }
 0x1bd   :  { %2993 = vmatprep.subr.bf16.mxu0 %v6112_v63  ;;  %v302_v63 = vld [vmem:[#allocation3 + $0x4f8] sm:$0xff] }
 0x1be   :  { %v5922_v2 = vcombine.high %v298_v62, %v302_v63 }
 0x1bf   :  { %3080 = vmatpush1.bf16.msra.mxu1 %v5857_v5  ;;  %v5921_v5 = vcombine.low %v298_v62, %v302_v63  ;;  %v350_v62 = vld [vmem:[#allocation3 + $0x678] sm:$0xff] }
 0x1c0   :  { %2994 = vmatpush1.bf16.msra.mxu0 %v6111_v6  ;;  %3081 = vmatprep.subr.bf16.mxu1 %v5866_v7  ;;  %v6600_v6 = vld [vmem:[#allocation7] ss:$16 sps:$4 sm:$0xff]   ;;  %v5930_v7 = vcombine.high %v306_v3, %v310_v4 }
 0x1c1   :  { %2995 = vmatprep.subr.bf16.mxu0 %v6120_v8 }
 0x1c3   :  { %3082 = vmatpush1.bf16.msra.mxu1 %v5865_v13  ;;  %v5929_v13 = vcombine.low %v306_v3, %v310_v4 }
 0x1c4   :  { %2996 = vmatpush1.bf16.msra.mxu0 %v6119_v14  ;;  %3083 = vmatprep.subr.bf16.mxu1 %v5874_v15  ;;  %v6603_v14 = vld [vmem:[#allocation7 + $0x20] ss:$16 sps:$4 sm:$0xff]   ;;  %v5938_v15 = vcombine.high %v314_v10, %v318_v11 }
 0x1c5   :  { %2997 = vmatprep.subr.bf16.mxu0 %v6128_v16 }
 0x1c7   :  { %3084 = vmatpush1.bf16.msra.mxu1 %v5873_v21  ;;  %v5937_v21 = vcombine.low %v314_v10, %v318_v11  ;;  %v358_v10 = vld [vmem:[#allocation3 + $0x6b8] sm:$0xff] }
 0x1c8   :  { %2998 = vmatpush1.bf16.msra.mxu0 %v6127_v23  ;;  %3085 = vmatprep.subr.bf16.mxu1 %v5882_v24  ;;  %v6606_v23 = vld [vmem:[#allocation7 + $0x40] ss:$16 sps:$4 sm:$0xff]   ;;  %v5946_v24 = vcombine.high %v322_v18, %v326_v19 }
 0x1c9   :  { %2999 = vmatprep.subr.bf16.mxu0 %v6136_v25  ;;  %v6621_v19 = vld [vmem:[#allocation7 + $0xe0] ss:$16 sps:$4 sm:$0xff]  }
 0x1cb   :  { %3086 = vmatpush1.bf16.msra.mxu1 %v5881_v31 }
 0x1cc   :  { %3000 = vmatpush1.bf16.msra.mxu0 %v6135_v32  ;;  %3087 = vmatprep.subr.bf16.mxu1 %v5890_v34 }
 0x1cd   :  { %3001 = vmatprep.subr.bf16.mxu0 %v6144_v35 }
 0x1cf   :  { %3088 = vmatpush1.bf16.msra.mxu1 %v5889_v41  ;;  %v6609_v41 = vld [vmem:[#allocation7 + $0x60] ss:$16 sps:$4 sm:$0xff]  }
 0x1d0   :  { %3002 = vmatpush1.bf16.msra.mxu0 %v6143_v42  ;;  %3100 = vmatprep.subr.bf16.mxu1 %v5898_v43  ;;  %v5954_v42 = vcombine.high %v330_v28, %v334_v29 }
 0x1d1   :  { %3014 = vmatprep.subr.bf16.mxu0 %v6152_v47  ;;  %v342_v47 = vld [vmem:[#allocation3 + $0x638] sm:$0xff] }
 0x1d2   :  { %3090 = vmatmul.mubr.bf16.vlgmr.msra.gmra.mrb[8].mxu1 %v7439_v22  ;;  %v7501_v22 = vshrl.u32 %v537_v60, 7  ;;  %v346_v60 = vld [vmem:[#allocation3 + $0x658] sm:$0xff] }
 0x1d3   :  { %3004 = vmatmul.mubr.bf16.vlgmr.msra.gmra.mrb[4].mxu0 %v7461_v40  ;;  %3101 = vmatpush1.bf16.msra.mxu1 %v5897_v48  ;;  %v5969_v11 = vcombine.low %v346_v60, %v350_v62 }
 0x1d4   :  { %3102 = vmatprep.subr.bf16.mxu1 %v5906_v49  ;;  %3015 = vmatpush1.bf16.msra.mxu0 %v6151_v52  ;;  %v7504_v8 = vsub.s32 0, %v7501_v22  ;;  %v7509_v12 = vsub.s32 1, %v7501_v22 }
 0x1d5   :  { %3046 = vmatprep.mubr.bf16.mxu0 %v7264_v51  ;;  %4843 = vmatprep.subr.bf16.mxu0 %v6602_v56 }
 0x1d6   :  { %3132 = vmatprep.mubr.bf16.mxu1 %v7424_v1  ;;  %v7506_v1 = vld [vmem:[#allocation5] sm:$0xff] }
 0x1d7   :  { %3103 = vmatpush1.bf16.msra.mxu1 %v5905_v57  ;;  %v540_v16 = vrot.slane %v7506_v1, %v7504_v8  ;;  %v544_v20 = vrot.slane %v7506_v1, %v7509_v12 }
 0x1d8   :  { %3104 = vmatprep.subr.bf16.mxu1 %v5914_v58  ;;  %v6617_v58 = vld [vmem:[#allocation7 + $0xa4] ss:$16 sps:$4 sm:$0xff]  }
 0x1d9   :  { %v2576_v25 = vadd.f32 %v7489_v46, %v540_v16  ;;  %v2578_v30 = vadd.f32 %v7491_v50, %v544_v20  ;;  %v2580_v32 = vadd.f32 %v7493_v54, %v540_v16  ;;  %v2582_v37 = vadd.f32 %v7495_v55, %v544_v20  ;;  %v6614_v46 = vld [vmem:[#allocation7 + $0x84] ss:$16 sps:$4 sm:$0xff]  }
 0x1da   :  { %v338_v50 = vld [vmem:[#allocation3 + $0x618] sm:$0xff]  ;;  %v5953_v55 = vcombine.low %v330_v28, %v334_v29 }
 0x1db   :  { %3105 = vmatpush1.bf16.msra.mxu1 %v5913_v0  ;;  %v5962_v59 = vcombine.high %v338_v50, %v342_v47  ;;  %v5961_v4 = vcombine.low %v338_v50, %v342_v47  ;;  %v362_v16 = vld [vmem:[#allocation3 + $0x6d8] sm:$0xff] }
 0x1dc   :  { %3106 = vmatprep.subr.bf16.mxu1 %v5922_v2  ;;  %v6629_v29 = vld [vmem:[#allocation7 + $0x124] ss:$16 sps:$4 sm:$0xff]   ;;  %v6633_v50 = vld [vmem:[#allocation7 + $0x160] ss:$16 sps:$4 sm:$0xff]  }
 0x1df   :  { %6157 = vmatmul.mubr.msk.bf16.vlgmr.msra.gmra.mrb[4].mxu0 %vm2537_vm0, %v7473_v61  ;;  %3107 = vmatpush1.bf16.msra.mxu1 %v5921_v5  ;;  %v6615_v5 = vld [vmem:[#allocation7 + $0xa0] ss:$16 sps:$4 sm:$0xff]  }
 0x1e0   :  { %4844 = vmatpush1.bf16.msra.mxu0 %v6600_v6  ;;  %3108 = vmatprep.subr.bf16.mxu1 %v5930_v7  ;;  %v5970_v6 = vcombine.high %v346_v60, %v350_v62  ;;  %v6620_v7 = vld [vmem:[#allocation7 + $0xc4] ss:$16 sps:$4 sm:$0xff]   ;;  %v6639_v60 = vld [vmem:[#allocation7 + $0x1a0] ss:$16 sps:$4 sm:$0xff]  }
 0x1e1   :  { %4845 = vmatprep.subr.bf16.mxu0 %v6605_v9  ;;  %v354_v9 = vld [vmem:[#allocation3 + $0x698] sm:$0xff] }
 0x1e2   :  { %v5977_v18 = vcombine.low %v354_v9, %v358_v10 }
 0x1e3   :  { %3109 = vmatpush1.bf16.msra.mxu1 %v5929_v13  ;;  %v6618_v13 = vld [vmem:[#allocation7 + $0xc0] ss:$16 sps:$4 sm:$0xff]  }
 0x1e4   :  { %4846 = vmatpush1.bf16.msra.mxu0 %v6603_v14  ;;  %3110 = vmatprep.subr.bf16.mxu1 %v5938_v15  ;;  %v5978_v14 = vcombine.high %v354_v9, %v358_v10  ;;  %v6623_v15 = vld [vmem:[#allocation7 + $0xe4] ss:$16 sps:$4 sm:$0xff]  }
 0x1e5   :  { %4847 = vmatprep.subr.bf16.mxu0 %v6608_v17  ;;  %v366_v17 = vld [vmem:[#allocation3 + $0x6f8] sm:$0xff] }
 0x1e6   :  { %v2704_v31 = vpop.f32.mrb[0].mxu0  ;;  %v5986_v20 = vcombine.high %v362_v16, %v366_v17  ;;  %v6647_v9 = vld [vmem:[#allocation7 + $0x1e4] ss:$16 sps:$4 sm:$0xff]  }
 0x1e7   :  { %v6483_v34 = vadd.f32 %v2704_v31, %v2576_v25  ;;  %v2706_v35 = vpop.f32.mrb[1].mxu0  ;;  %3111 = vmatpush1.bf16.msra.mxu1 %v5937_v21  ;;  %v6626_v21 = vld [vmem:[#allocation7 + $0x104] ss:$16 sps:$4 sm:$0xff]   ;;  %v5985_v25 = vcombine.low %v362_v16, %v366_v17 }
 0x1e8   :  { %4848 = vmatpush1.bf16.msra.mxu0 %v6606_v23  ;;  %v6485_v38 = vadd.f32 %v2706_v35, %v2578_v30  ;;  %v2708_v39 = vpop.f32.mrb[2].mxu0  ;;  %3112 = vmatprep.subr.bf16.mxu1 %v5946_v24  ;;  %v370_v23 = vld [vmem:[#allocation3 + $0x718] sm:$0xff] }
 0x1e9   :  { %v3245_v43 = vmul.f32 0.2, %v6483_v34  ;;  %v6487_v44 = vadd.f32 %v2708_v39, %v2580_v32  ;;  %v2710_v45 = vpop.f32.mrb[3].mxu0  ;;  %4849 = vmatprep.subr.bf16.mxu0 %v6611_v26  ;;  %vm3229_vm1 = vcmp.gt.f32.partialorder %v6483_v34, 0.0  ;;  %v374_v24 = vld [vmem:[#allocation3 + $0x738] sm:$0xff] }
 0x1ea   :  { %v3246_v54 = vmul.f32 0.2, %v6485_v38  ;;  %v6489_v48 = vadd.f32 %v2710_v45, %v2582_v37  ;;  %vm3230_vm2 = vcmp.gt.f32.partialorder %v6485_v38, 0.0  ;;  %v6624_v26 = vld [vmem:[#allocation7 + $0x100] ss:$16 sps:$4 sm:$0xff]   ;;  %v5994_v28 = vcombine.high %v370_v23, %v374_v24 }
 0x1eb   :  { %vm3237_vm3 = vcmp.gt.f32.partialorder %v6487_v44, 0.0  ;;  %v3253_v49 = vmul.f32 0.2, %v6487_v44  ;;  %3113 = vmatpush1.bf16.msra.mxu1 %v5945_v36  ;;  %v3261_v56 = vsel %vm3229_vm1, %v6483_v34, %v3245_v43  ;;  %v378_v30 = vld [vmem:[#allocation3 + $0x758] sm:$0xff]  ;;  %v5993_v32 = vcombine.low %v370_v23, %v374_v24 }
 0x1ec   :  { %vm3238_vm4 = vcmp.gt.f32.partialorder %v6489_v48, 0.0  ;;  %v3254_v52 = vmul.f32 0.2, %v6489_v48  ;;  %4850 = vmatpush1.bf16.msra.mxu0 %v6609_v41  ;;  %3114 = vmatprep.subr.bf16.mxu1 %v5954_v42  ;;  %v3262_v0 = vsel %vm3230_vm2, %v6485_v38, %v3246_v54  ;;  %v382_v31 = vld [vmem:[#allocation3 + $0x778] sm:$0xff] }
 0x1ed   :  { %v3269_v57 = vsel %vm3237_vm3, %v6487_v44, %v3253_v49  ;;  %4851 = vmatprep.subr.bf16.mxu0 %v6614_v46  ;;  %v6627_v34 = vld [vmem:[#allocation7 + $0x120] ss:$16 sps:$4 sm:$0xff]   ;;  %v6002_v35 = vcombine.high %v378_v30, %v382_v31  ;;  %v6632_v36 = vld [vmem:[#allocation7 + $0x144] ss:$16 sps:$4 sm:$0xff]   ;;  %v6001_v39 = vcombine.low %v378_v30, %v382_v31 }
 0x1ee   :  { %v7521_v63 = vpack.c.bf16 %v3269_v57, %v3261_v56  ;;  %v3270_v2 = vsel %vm3238_vm4, %v6489_v48, %v3254_v52  ;;  %v386_v37 = vld [vmem:[#allocation3 + $0x798] sm:$0xff] }
 0x1ef   :  { %3115 = vmatpush1.bf16.msra.mxu1 %v5953_v55  ;;  %v7524_v3 = vpack.c.bf16 %v3270_v2, %v3262_v0  ;;  %v390_v38 = vld [vmem:[#allocation3 + $0x7b8] sm:$0xff] }
 0x1f0   :  { %4852 = vmatpush1.bf16.msra.mxu0 %v6612_v53  ;;  %3116 = vmatprep.subr.bf16.mxu1 %v5962_v59  ;;  %v6630_v41 = vld [vmem:[#allocation7 + $0x140] ss:$16 sps:$4 sm:$0xff]   ;;  %v6010_v46 = vcombine.high %v386_v37, %v390_v38  ;;  %v6635_v42 = vld [vmem:[#allocation7 + $0x164] ss:$16 sps:$4 sm:$0xff]   ;;  %v6009_v45 = vcombine.low %v386_v37, %v390_v38 }
 0x1f1   :  { %4853 = vmatprep.subr.bf16.mxu0 %v6617_v58  ;;  %4875 = vmatprep.mubr.bf16.mxu0 %v7524_v3  ;;  %v394_v43 = vld [vmem:[#allocation3 + $0x7d8] sm:$0xff] }
 0x1f2   :  { %v398_v44 = vld [vmem:[#allocation3 + $0x7f8] sm:$0xff] }
 0x1f3   :  { %3117 = vmatpush1.bf16.msra.mxu1 %v5961_v4  ;;  %v6018_v47 = vcombine.high %v394_v43, %v398_v44  ;;  %v6638_v54 = vld [vmem:[#allocation7 + $0x184] ss:$16 sps:$4 sm:$0xff]   ;;  %v6017_v55 = vcombine.low %v394_v43, %v398_v44  ;;  %v6636_v52 = vld [vmem:[#allocation7 + $0x180] ss:$16 sps:$4 sm:$0xff]  }
 0x1f4   :  { %4854 = vmatpush1.bf16.msra.mxu0 %v6615_v5  ;;  %3118 = vmatprep.subr.bf16.mxu1 %v5970_v6  ;;  %v402_v48 = vld [vmem:[#allocation3 + $0x818] sm:$0xff] }
 0x1f5   :  { %4855 = vmatprep.subr.bf16.mxu0 %v6620_v7  ;;  %v406_v49 = vld [vmem:[#allocation3 + $0x838] sm:$0xff] }
 0x1f6   :  { %v6026_v53 = vcombine.high %v402_v48, %v406_v49  ;;  %v6641_v59 = vld [vmem:[#allocation7 + $0x1a4] ss:$16 sps:$4 sm:$0xff]   ;;  %v6025_v58 = vcombine.low %v402_v48, %v406_v49  ;;  %v6642_v6 = vld [vmem:[#allocation7 + $0x1c0] ss:$16 sps:$4 sm:$0xff]  }
 0x1f7   :  { %3119 = vmatpush1.bf16.msra.mxu1 %v5969_v11  ;;  %v410_v56 = vld [vmem:[#allocation3 + $0x858] sm:$0xff] }
 0x1f8   :  { %4856 = vmatpush1.bf16.msra.mxu0 %v6618_v13  ;;  %3120 = vmatprep.subr.bf16.mxu1 %v5978_v14  ;;  %v414_v57 = vld [vmem:[#allocation3 + $0x878] sm:$0xff] }
 0x1f9   :  { %4857 = vmatprep.subr.bf16.mxu0 %v6623_v15  ;;  %v6034_v62 = vcombine.high %v410_v56, %v414_v57  ;;  %v6644_v0 = vld [vmem:[#allocation7 + $0x1c4] ss:$16 sps:$4 sm:$0xff]   ;;  %v6033_v5 = vcombine.low %v410_v56, %v414_v57  ;;  %v6645_v14 = vld [vmem:[#allocation7 + $0x1e0] ss:$16 sps:$4 sm:$0xff]  }
 0x1fa   :  { %v418_v2 = vld [vmem:[#allocation3 + $0x898] sm:$0xff] }
 0x1fb   :  { %3121 = vmatpush1.bf16.msra.mxu1 %v5977_v18  ;;  %v422_v4 = vld [vmem:[#allocation3 + $0x8b8] sm:$0xff] }
 0x1fc   :  { %4858 = vmatpush1.bf16.msra.mxu0 %v6621_v19  ;;  %3122 = vmatprep.subr.bf16.mxu1 %v5986_v20  ;;  %v6042_v7 = vcombine.high %v418_v2, %v422_v4  ;;  %v426_v10 = vld [vmem:[#allocation3 + $0x8d8] sm:$0xff]  ;;  %v6041_v13 = vcombine.low %v418_v2, %v422_v4 }
 0x1fd   :  { %4859 = vmatprep.subr.bf16.mxu0 %v6626_v21  ;;  %v430_v11 = vld [vmem:[#allocation3 + $0x8f8] sm:$0xff] }
 0x1fe   :  { %v6050_v15 = vcombine.high %v426_v10, %v430_v11  ;;  %v438_v16 = vld [vmem:[#allocation3 + $0x938] sm:$0xff] }
 0x1ff   :  { %3123 = vmatpush1.bf16.msra.mxu1 %v5985_v25  ;;  %v6650_v17 = vld [vmem:[#allocation7 + $0x204] ss:$16 sps:$4 sm:$0xff]   ;;  %v6648_v19 = vld [vmem:[#allocation7 + $0x200] ss:$16 sps:$4 sm:$0xff]  }
 0x200   :  { %4860 = vmatpush1.bf16.msra.mxu0 %v6624_v26  ;;  %3124 = vmatprep.subr.bf16.mxu1 %v5994_v28  ;;  %v442_v20 = vld [vmem:[#allocation3 + $0x958] sm:$0xff] }
 0x201   :  { %4861 = vmatprep.subr.bf16.mxu0 %v6629_v29  ;;  %v446_v21 = vld [vmem:[#allocation3 + $0x978] sm:$0xff] }
 0x202   :  { %v6653_v23 = vld [vmem:[#allocation7 + $0x224] ss:$16 sps:$4 sm:$0xff]   ;;  %v6066_v25 = vcombine.high %v442_v20, %v446_v21  ;;  %v6651_v26 = vld [vmem:[#allocation7 + $0x220] ss:$16 sps:$4 sm:$0xff]   ;;  %v6065_v31 = vcombine.low %v442_v20, %v446_v21 }
 0x203   :  { %3125 = vmatpush1.bf16.msra.mxu1 %v5993_v32  ;;  %v450_v28 = vld [vmem:[#allocation3 + $0x998] sm:$0xff] }
 0x204   :  { %4862 = vmatpush1.bf16.msra.mxu0 %v6627_v34  ;;  %3126 = vmatprep.subr.bf16.mxu1 %v6002_v35  ;;  %v454_v29 = vld [vmem:[#allocation3 + $0x9b8] sm:$0xff] }
 0x205   :  { %4863 = vmatprep.subr.bf16.mxu0 %v6632_v36  ;;  %v6656_v30 = vld [vmem:[#allocation7 + $0x244] ss:$16 sps:$4 sm:$0xff]   ;;  %v6074_v32 = vcombine.high %v450_v28, %v454_v29  ;;  %v6654_v34 = vld [vmem:[#allocation7 + $0x240] ss:$16 sps:$4 sm:$0xff]   ;;  %v6073_v38 = vcombine.low %v450_v28, %v454_v29 }
 0x206   :  { %v458_v35 = vld [vmem:[#allocation3 + $0x9d8] sm:$0xff] }
 0x207   :  { %3127 = vmatpush1.bf16.msra.mxu1 %v6001_v39  ;;  %v462_v36 = vld [vmem:[#allocation3 + $0x9f8] sm:$0xff] }
 0x208   :  { %4864 = vmatpush1.bf16.msra.mxu0 %v6630_v41  ;;  %3128 = vmatprep.subr.bf16.mxu1 %v6010_v46  ;;  %v6659_v37 = vld [vmem:[#allocation7 + $0x264] ss:$16 sps:$4 sm:$0xff]   ;;  %v6082_v39 = vcombine.high %v458_v35, %v462_v36  ;;  %v6657_v41 = vld [vmem:[#allocation7 + $0x260] ss:$16 sps:$4 sm:$0xff]   ;;  %v6081_v44 = vcombine.low %v458_v35, %v462_v36 }
 0x209   :  { %4865 = vmatprep.subr.bf16.mxu0 %v6635_v42  ;;  %v466_v46 = vld [vmem:[#allocation3 + $0xa18] sm:$0xff] }
 0x20a   :  { %v470_v42 = vld [vmem:[#allocation3 + $0xa38] sm:$0xff] }
 0x20b   :  { %3129 = vmatpush1.bf16.msra.mxu1 %v6009_v45  ;;  %v6662_v43 = vld [vmem:[#allocation7 + $0x284] ss:$16 sps:$4 sm:$0xff]   ;;  %v6090_v45 = vcombine.high %v466_v46, %v470_v42  ;;  %v6089_v49 = vcombine.low %v466_v46, %v470_v42  ;;  %v6683_v42 = vld [vmem:[#allocation7 + $0xc] ss:$16 sps:$4 sm:$0xff]  }
 0x20c   :  { %4866 = vmatpush1.bf16.msra.mxu0 %v6633_v50  ;;  %3130 = vmatprep.subr.bf16.mxu1 %v6018_v47  ;;  %v6660_v50 = vld [vmem:[#allocation7 + $0x280] ss:$16 sps:$4 sm:$0xff]   ;;  %v6665_v48 = vld [vmem:[#allocation7 + $0x2a4] ss:$16 sps:$4 sm:$0xff]  }
 0x20d   :  { %4867 = vmatprep.subr.bf16.mxu0 %v6638_v54  ;;  %v474_v47 = vld [vmem:[#allocation3 + $0xa58] sm:$0xff] }
 0x20e   :  { %v478_v54 = vld [vmem:[#allocation3 + $0xa78] sm:$0xff] }
 0x20f   :  { %3131 = vmatpush1.bf16.msra.mxu1 %v6017_v55  ;;  %v6098_v55 = vcombine.high %v474_v47, %v478_v54  ;;  %v6668_v56 = vld [vmem:[#allocation7 + $0x2c4] ss:$16 sps:$4 sm:$0xff]   ;;  %v6097_v57 = vcombine.low %v474_v47, %v478_v54  ;;  %v6708_v47 = vld [vmem:[#allocation7 + $0x3e0] ss:$16 sps:$4 sm:$0xff]  }
 0x210   :  { %4868 = vmatpush1.bf16.msra.mxu0 %v6636_v52  ;;  %3143 = vmatprep.subr.bf16.mxu1 %v6026_v53  ;;  %v6663_v52 = vld [vmem:[#allocation7 + $0x2a0] ss:$16 sps:$4 sm:$0xff]   ;;  %v6671_v2 = vld [vmem:[#allocation7 + $0x2e4] ss:$16 sps:$4 sm:$0xff]  }
 0x211   :  { %4869 = vmatprep.subr.bf16.mxu0 %v6641_v59  ;;  %v482_v53 = vld [vmem:[#allocation3 + $0xa98] sm:$0xff] }
 0x212   :  { %3133 = vmatmul.mubr.bf16.vlgmr.msra.gmra.mrb[8].mxu1 %v7447_v27  ;;  %v434_v27 = vld [vmem:[#allocation3 + $0x918] sm:$0xff] }
 0x213   :  { %3144 = vmatpush1.bf16.msra.mxu1 %v6025_v58  ;;  %3175 = vmatprep.mubr.bf16.mxu1 %v7449_v33  ;;  %v6049_v33 = vcombine.low %v426_v10, %v430_v11  ;;  %v6058_v18 = vcombine.high %v434_v27, %v438_v16  ;;  %v6057_v24 = vcombine.low %v434_v27, %v438_v16  ;;  %v486_v59 = vld [vmem:[#allocation3 + $0xab8] sm:$0xff] }
 0x214   :  { %4870 = vmatpush1.bf16.msra.mxu0 %v6639_v60  ;;  %3145 = vmatprep.subr.bf16.mxu1 %v6034_v62  ;;  %v6106_v58 = vcombine.high %v482_v53, %v486_v59  ;;  %v6666_v60 = vld [vmem:[#allocation7 + $0x2c0] ss:$16 sps:$4 sm:$0xff]   ;;  %v6105_v4 = vcombine.low %v482_v53, %v486_v59  ;;  %v6674_v10 = vld [vmem:[#allocation7 + $0x304] ss:$16 sps:$4 sm:$0xff]   ;;  %v6693_v59 = vld [vmem:[#allocation7 + $0x48] ss:$16 sps:$4 sm:$0xff]  }
 0x215   :  { %4871 = vmatprep.subr.bf16.mxu0 %v6644_v0  ;;  %v490_v62 = vld [vmem:[#allocation3 + $0xad8] sm:$0xff] }
 0x216   :  { %v494_v0 = vld [vmem:[#allocation3 + $0xaf8] sm:$0xff] }
 0x217   :  { %3146 = vmatpush1.bf16.msra.mxu1 %v6033_v5  ;;  %v6114_v5 = vcombine.high %v490_v62, %v494_v0  ;;  %v6113_v11 = vcombine.low %v490_v62, %v494_v0  ;;  %v510_v27 = vld [vmem:[#allocation3 + $0xb78] sm:$0xff]  ;;  %v6699_v0 = vld [vmem:[#allocation7 + $0x68] ss:$16 sps:$4 sm:$0xff]  }
 0x218   :  { %4872 = vmatpush1.bf16.msra.mxu0 %v6642_v6  ;;  %3147 = vmatprep.subr.bf16.mxu1 %v6042_v7  ;;  %v6669_v6 = vld [vmem:[#allocation7 + $0x2e0] ss:$16 sps:$4 sm:$0xff]   ;;  %v6677_v16 = vld [vmem:[#allocation7 + $0x324] ss:$16 sps:$4 sm:$0xff]  }
 0x219   :  { %4873 = vmatprep.subr.bf16.mxu0 %v6647_v9  ;;  %v498_v7 = vld [vmem:[#allocation3 + $0xb18] sm:$0xff] }
 0x21a   :  { %v502_v9 = vld [vmem:[#allocation3 + $0xb38] sm:$0xff] }
 0x21b   :  { %3148 = vmatpush1.bf16.msra.mxu1 %v6041_v13  ;;  %v6122_v13 = vcombine.high %v498_v7, %v502_v9  ;;  %v518_v20 = vld [vmem:[#allocation3 + $0xbb8] sm:$0xff] }
 0x21c   :  { %4874 = vmatpush1.bf16.msra.mxu0 %v6645_v14  ;;  %3149 = vmatprep.subr.bf16.mxu1 %v6050_v15  ;;  %v6672_v14 = vld [vmem:[#allocation7 + $0x300] ss:$16 sps:$4 sm:$0xff]   ;;  %v6680_v21 = vld [vmem:[#allocation7 + $0x344] ss:$16 sps:$4 sm:$0xff]  }
 0x21d   :  { %4886 = vmatprep.subr.bf16.mxu0 %v6650_v17  ;;  %v506_v15 = vld [vmem:[#allocation3 + $0xb58] sm:$0xff]  ;;  %v6121_v17 = vcombine.low %v498_v7, %v502_v9 }
 0x21e   :  { %v526_v28 = vld [vmem:[#allocation3 + $0xbf8] sm:$0xff] }
 0x21f   :  { %4876 = vmatmul.mubr.bf16.vlgmr.msra.gmra.mrb[8].mxu0 %v7521_v63  ;;  %3150 = vmatpush1.bf16.msra.mxu1 %v6049_v33  ;;  %v6130_v33 = vcombine.high %v506_v15, %v510_v27  ;;  %v6686_v29 = vld [vmem:[#allocation7 + $0x364] ss:$16 sps:$4 sm:$0xff]  }
 0x220   :  { %3151 = vmatprep.subr.bf16.mxu1 %v6058_v18  ;;  %4887 = vmatpush1.bf16.msra.mxu0 %v6648_v19  ;;  %v6675_v18 = vld [vmem:[#allocation7 + $0x320] ss:$16 sps:$4 sm:$0xff]   ;;  %v6692_v36 = vld [vmem:[#allocation7 + $0x384] ss:$16 sps:$4 sm:$0xff]  }
 0x221   :  { %4888 = vmatprep.subr.bf16.mxu0 %v6653_v23  ;;  %v514_v19 = vld [vmem:[#allocation3 + $0xb98] sm:$0xff]  ;;  %v6129_v23 = vcombine.low %v506_v15, %v510_v27  ;;  %v6713_v15 = vld [vmem:[#allocation7 + $0xac] ss:$16 sps:$4 sm:$0xff]  }
 0x222   :  { %v534_v35 = vld [vmem:[#allocation3 + $0xc38] sm:$0xff] }
 0x223   :  { %3152 = vmatpush1.bf16.msra.mxu1 %v6057_v24  ;;  %v6138_v24 = vcombine.high %v514_v19, %v518_v20  ;;  %v6722_v54 = vld [vmem:[#allocation7 + $0x404] ss:$16 sps:$4 sm:$0xff]  }
 0x224   :  { %3153 = vmatprep.subr.bf16.mxu1 %v6066_v25  ;;  %4889 = vmatpush1.bf16.msra.mxu0 %v6651_v26  ;;  %v6678_v25 = vld [vmem:[#allocation7 + $0x340] ss:$16 sps:$4 sm:$0xff]  }
 0x225   :  { %4890 = vmatprep.subr.bf16.mxu0 %v6656_v30  ;;  %v522_v26 = vld [vmem:[#allocation3 + $0xbd8] sm:$0xff]  ;;  %v6137_v30 = vcombine.low %v514_v19, %v518_v20  ;;  %v6711_v19 = vld [vmem:[#allocation7 + $0xa8] ss:$16 sps:$4 sm:$0xff]  }
 0x226   :  { %v6728_v20 = vld [vmem:[#allocation7 + $0x424] ss:$16 sps:$4 sm:$0xff]  }
 0x227   :  { %3154 = vmatpush1.bf16.msra.mxu1 %v6065_v31  ;;  %v6146_v31 = vcombine.high %v522_v26, %v526_v28 }
 0x228   :  { %3155 = vmatprep.subr.bf16.mxu1 %v6074_v32  ;;  %4891 = vmatpush1.bf16.msra.mxu0 %v6654_v34  ;;  %v6684_v32 = vld [vmem:[#allocation7 + $0x360] ss:$16 sps:$4 sm:$0xff]  }
 0x229   :  { %4892 = vmatprep.subr.bf16.mxu0 %v6659_v37  ;;  %v530_v34 = vld [vmem:[#allocation3 + $0xc18] sm:$0xff]  ;;  %v6145_v37 = vcombine.low %v522_v26, %v526_v28  ;;  %v6719_v26 = vld [vmem:[#allocation7 + $0xec] ss:$16 sps:$4 sm:$0xff]  }
 0x22a   :  { %v6153_v46 = vcombine.low %v530_v34, %v534_v35  ;;  %v6732_v28 = vld [vmem:[#allocation7 + $0x440] ss:$16 sps:$4 sm:$0xff]  }
 0x22b   :  { %3156 = vmatpush1.bf16.msra.mxu1 %v6073_v38  ;;  %v6154_v38 = vcombine.high %v530_v34, %v534_v35  ;;  %v6723_v34 = vld [vmem:[#allocation7 + $0x108] ss:$16 sps:$4 sm:$0xff]   ;;  %v6746_v35 = vld [vmem:[#allocation7 + $0x484] ss:$16 sps:$4 sm:$0xff]  }
 0x22c   :  { %3157 = vmatprep.subr.bf16.mxu1 %v6082_v39  ;;  %4893 = vmatpush1.bf16.msra.mxu0 %v6657_v41  ;;  %v6690_v39 = vld [vmem:[#allocation7 + $0x380] ss:$16 sps:$4 sm:$0xff]   ;;  %v6698_v41 = vld [vmem:[#allocation7 + $0x3a4] ss:$16 sps:$4 sm:$0xff]  }
 0x22d   :  { %4894 = vmatprep.subr.bf16.mxu0 %v6662_v43  ;;  %v6696_v43 = vld [vmem:[#allocation7 + $0x3a0] ss:$16 sps:$4 sm:$0xff]  }
 0x22f   :  { %3158 = vmatpush1.bf16.msra.mxu1 %v6081_v44  ;;  %v6704_v44 = vld [vmem:[#allocation7 + $0x3c4] ss:$16 sps:$4 sm:$0xff]  }
 0x230   :  { %3159 = vmatprep.subr.bf16.mxu1 %v6090_v45  ;;  %4895 = vmatpush1.bf16.msra.mxu0 %v6660_v50  ;;  %v6702_v45 = vld [vmem:[#allocation7 + $0x3c0] ss:$16 sps:$4 sm:$0xff]   ;;  %v6710_v50 = vld [vmem:[#allocation7 + $0x3e4] ss:$16 sps:$4 sm:$0xff]  }
 0x231   :  { %4896 = vmatprep.subr.bf16.mxu0 %v6665_v48  ;;  %v6681_v48 = vld [vmem:[#allocation7 + $0x8] ss:$16 sps:$4 sm:$0xff]  }
 0x233   :  { %3160 = vmatpush1.bf16.msra.mxu1 %v6089_v49  ;;  %v6689_v49 = vld [vmem:[#allocation7 + $0x2c] ss:$16 sps:$4 sm:$0xff]  }
 0x234   :  { %3161 = vmatprep.subr.bf16.mxu1 %v6098_v55  ;;  %4897 = vmatpush1.bf16.msra.mxu0 %v6663_v52  ;;  %v551_v55 = vsub.s32 3, %v7501_v22  ;;  %v6695_v52 = vld [vmem:[#allocation7 + $0x4c] ss:$16 sps:$4 sm:$0xff]  }
 0x235   :  { %4898 = vmatprep.subr.bf16.mxu0 %v6668_v56  ;;  %v6701_v56 = vld [vmem:[#allocation7 + $0x6c] ss:$16 sps:$4 sm:$0xff]  }
 0x237   :  { %3162 = vmatpush1.bf16.msra.mxu1 %v6097_v57 }
 0x238   :  { %3163 = vmatprep.subr.bf16.mxu1 %v6106_v58  ;;  %4899 = vmatpush1.bf16.msra.mxu0 %v6666_v60 }
 0x239   :  { %4900 = vmatprep.subr.bf16.mxu0 %v6671_v2 }
 0x23b   :  { %3164 = vmatpush1.bf16.msra.mxu1 %v6105_v4 }
 0x23c   :  { %3165 = vmatprep.subr.bf16.mxu1 %v6114_v5  ;;  %4901 = vmatpush1.bf16.msra.mxu0 %v6669_v6  ;;  %v6707_v6 = vld [vmem:[#allocation7 + $0x8c] ss:$16 sps:$4 sm:$0xff]  }
 0x23d   :  { %4902 = vmatprep.subr.bf16.mxu0 %v6674_v10 }
 0x23f   :  { %3166 = vmatpush1.bf16.msra.mxu1 %v6113_v11  ;;  %v6705_v11 = vld [vmem:[#allocation7 + $0x88] ss:$16 sps:$4 sm:$0xff]  }
 0x240   :  { %3167 = vmatprep.subr.bf16.mxu1 %v6122_v13  ;;  %4903 = vmatpush1.bf16.msra.mxu0 %v6672_v14 }
 0x241   :  { %4904 = vmatprep.subr.bf16.mxu0 %v6677_v16 }
 0x243   :  { %3168 = vmatpush1.bf16.msra.mxu1 %v6121_v17 }
 0x244   :  { %3169 = vmatprep.subr.bf16.mxu1 %v6130_v33  ;;  %4905 = vmatpush1.bf16.msra.mxu0 %v6675_v18  ;;  %v6720_v18 = vld [vmem:[#allocation7 + $0x400] ss:$16 sps:$4 sm:$0xff]  }
 0x245   :  { %4906 = vmatprep.subr.bf16.mxu0 %v6680_v21  ;;  %v6716_v21 = vld [vmem:[#allocation7 + $0xcc] ss:$16 sps:$4 sm:$0xff]  }
 0x247   :  { %3170 = vmatpush1.bf16.msra.mxu1 %v6129_v23  ;;  %v6726_v23 = vld [vmem:[#allocation7 + $0x420] ss:$16 sps:$4 sm:$0xff]  }
 0x248   :  { %3171 = vmatprep.subr.bf16.mxu1 %v6138_v24  ;;  %4907 = vmatpush1.bf16.msra.mxu0 %v6678_v25  ;;  %v6714_v24 = vld [vmem:[#allocation7 + $0xc8] ss:$16 sps:$4 sm:$0xff]   ;;  %v6734_v25 = vld [vmem:[#allocation7 + $0x444] ss:$16 sps:$4 sm:$0xff]  }
 0x249   :  { %4908 = vmatprep.subr.bf16.mxu0 %v6686_v29  ;;  %v6717_v29 = vld [vmem:[#allocation7 + $0xe8] ss:$16 sps:$4 sm:$0xff]  }
 0x24b   :  { %3172 = vmatpush1.bf16.msra.mxu1 %v6137_v30  ;;  %v6740_v30 = vld [vmem:[#allocation7 + $0x464] ss:$16 sps:$4 sm:$0xff]  }
 0x24c   :  { %3173 = vmatprep.subr.bf16.mxu1 %v6146_v31  ;;  %4909 = vmatpush1.bf16.msra.mxu0 %v6684_v32  ;;  %v6725_v31 = vld [vmem:[#allocation7 + $0x10c] ss:$16 sps:$4 sm:$0xff]   ;;  %v6738_v32 = vld [vmem:[#allocation7 + $0x460] ss:$16 sps:$4 sm:$0xff]  }
 0x24d   :  { %4910 = vmatprep.subr.bf16.mxu0 %v6692_v36  ;;  %v6731_v36 = vld [vmem:[#allocation7 + $0x12c] ss:$16 sps:$4 sm:$0xff]  }
 0x24f   :  { %3174 = vmatpush1.bf16.msra.mxu1 %v6145_v37  ;;  %v6744_v37 = vld [vmem:[#allocation7 + $0x480] ss:$16 sps:$4 sm:$0xff]  }
 0x250   :  { %3186 = vmatprep.subr.bf16.mxu1 %v6154_v38  ;;  %4911 = vmatpush1.bf16.msra.mxu0 %v6690_v39  ;;  %v6729_v38 = vld [vmem:[#allocation7 + $0x128] ss:$16 sps:$4 sm:$0xff]   ;;  %v6752_v39 = vld [vmem:[#allocation7 + $0x4a4] ss:$16 sps:$4 sm:$0xff]  }
 0x251   :  { %4912 = vmatprep.subr.bf16.mxu0 %v6698_v41  ;;  %v6737_v41 = vld [vmem:[#allocation7 + $0x14c] ss:$16 sps:$4 sm:$0xff]  }
 0x252   :  { %3176 = vmatmul.mubr.bf16.vlgmr.msra.gmra.mrb[8].mxu1 %v7461_v40  ;;  %v547_v40 = vsub.s32 2, %v7501_v22 }
 0x253   :  { %3187 = vmatpush1.bf16.msra.mxu1 %v6153_v46  ;;  %3218 = vmatprep.mubr.bf16.mxu1 %v7264_v51  ;;  %v6687_v51 = vld [vmem:[#allocation7 + $0x28] ss:$16 sps:$4 sm:$0xff]   ;;  %v6750_v46 = vld [vmem:[#allocation7 + $0x4a0] ss:$16 sps:$4 sm:$0xff]  }
 0x254   :  { %5015 = vmatprep.subr.bf16.mxu1 %v6683_v42  ;;  %4913 = vmatpush1.bf16.msra.mxu0 %v6696_v43  ;;  %v548_v53 = vrot.slane %v7506_v1, %v547_v40  ;;  %v6735_v42 = vld [vmem:[#allocation7 + $0x148] ss:$16 sps:$4 sm:$0xff]   ;;  %v6758_v43 = vld [vmem:[#allocation7 + $0x4c4] ss:$16 sps:$4 sm:$0xff]  }
 0x255   :  { %4914 = vmatprep.subr.bf16.mxu0 %v6704_v44  ;;  %v6743_v44 = vld [vmem:[#allocation7 + $0x16c] ss:$16 sps:$4 sm:$0xff]  }
 0x258   :  { %4915 = vmatpush1.bf16.msra.mxu0 %v6702_v45  ;;  %v6756_v45 = vld [vmem:[#allocation7 + $0x4c0] ss:$16 sps:$4 sm:$0xff]  }
 0x259   :  { %4916 = vmatprep.subr.bf16.mxu0 %v6710_v50  ;;  %v6741_v50 = vld [vmem:[#allocation7 + $0x168] ss:$16 sps:$4 sm:$0xff]  }
 0x25c   :  { %4917 = vmatpush1.bf16.msra.mxu0 %v6708_v47  ;;  %v6764_v47 = vld [vmem:[#allocation7 + $0x4e4] ss:$16 sps:$4 sm:$0xff]  }
 0x25d   :  { %4929 = vmatprep.subr.bf16.mxu0 %v6722_v54  ;;  %v6749_v54 = vld [vmem:[#allocation7 + $0x18c] ss:$16 sps:$4 sm:$0xff]  }
 0x25e   :  { %6158 = vmatmul.mubr.msk.bf16.vlgmr.msra.gmra.mrb[8].mxu1 %vm2537_vm0, %v7473_v61  ;;  %v552_v61 = vrot.slane %v7506_v1, %v551_v55 }
 0x25f   :  { %5016 = vmatpush1.bf16.msra.mxu1 %v6681_v48  ;;  %5047 = vmatprep.mubr.bf16.mxu1 %v7524_v3  ;;  %v6762_v48 = vld [vmem:[#allocation7 + $0x4e0] ss:$16 sps:$4 sm:$0xff]  }
 0x260   :  { %5017 = vmatprep.subr.bf16.mxu1 %v6689_v49  ;;  %v6747_v49 = vld [vmem:[#allocation7 + $0x188] ss:$16 sps:$4 sm:$0xff]  }
 0x263   :  { %5018 = vmatpush1.bf16.msra.mxu1 %v6687_v51  ;;  %v6770_v51 = vld [vmem:[#allocation7 + $0x504] ss:$16 sps:$4 sm:$0xff]  }
 0x264   :  { %5019 = vmatprep.subr.bf16.mxu1 %v6695_v52  ;;  %v6755_v52 = vld [vmem:[#allocation7 + $0x1ac] ss:$16 sps:$4 sm:$0xff]  }
 0x265   :  { %v2876_v57 = vpop.f32.mrb[4].mxu1 }
 0x266   :  { %v6490_v58 = vadd.f32 %v2876_v57, %v548_v53  ;;  %v2878_v3 = vpop.f32.mrb[5].mxu1  ;;  %v6774_v57 = vld [vmem:[#allocation7 + $0x520] ss:$16 sps:$4 sm:$0xff]  }
 0x267   :  { %5020 = vmatpush1.bf16.msra.mxu1 %v6693_v59  ;;  %v6491_v60 = vadd.f32 %v2878_v3, %v552_v61  ;;  %v2880_v62 = vpop.f32.mrb[6].mxu1  ;;  %v6753_v59 = vld [vmem:[#allocation7 + $0x1a8] ss:$16 sps:$4 sm:$0xff]   ;;  %v6782_v3 = vld [vmem:[#allocation7 + $0x544] ss:$16 sps:$4 sm:$0xff]  }
 0x268   :  { %v3247_v2 = vmul.f32 0.2, %v6490_v58  ;;  %v6492_v4 = vadd.f32 %v2880_v62, %v548_v53  ;;  %v2882_v5 = vpop.f32.mrb[7].mxu1  ;;  %5021 = vmatprep.subr.bf16.mxu1 %v6701_v56  ;;  %vm3231_vm5 = vcmp.gt.f32.partialorder %v6490_v58, 0.0  ;;  %v6768_v53 = vld [vmem:[#allocation7 + $0x500] ss:$16 sps:$4 sm:$0xff]  }
 0x269   :  { %v3248_v7 = vmul.f32 0.2, %v6491_v60  ;;  %v6493_v9 = vadd.f32 %v2882_v5, %v552_v61  ;;  %vm3232_vm6 = vcmp.gt.f32.partialorder %v6491_v60, 0.0  ;;  %v6776_v61 = vld [vmem:[#allocation7 + $0x524] ss:$16 sps:$4 sm:$0xff]  }
 0x26a   :  { %vm3239_vm7 = vcmp.gt.f32.partialorder %v6492_v4, 0.0  ;;  %v3255_v1 = vmul.f32 0.2, %v6492_v4  ;;  %v3263_v13 = vsel %vm3231_vm5, %v6490_v58, %v3247_v2  ;;  %v6761_v56 = vld [vmem:[#allocation7 + $0x1cc] ss:$16 sps:$4 sm:$0xff]  }
 0x26b   :  { %vm3240_vm8 = vcmp.gt.f32.partialorder %v6493_v9, 0.0  ;;  %v3256_v10 = vmul.f32 0.2, %v6493_v9  ;;  %5022 = vmatpush1.bf16.msra.mxu1 %v6699_v0  ;;  %v3264_v16 = vsel %vm3232_vm6, %v6491_v60, %v3248_v7  ;;  %v6759_v58 = vld [vmem:[#allocation7 + $0x1c8] ss:$16 sps:$4 sm:$0xff]  }
 0x26c   :  { %v3271_v14 = vsel %vm3239_vm7, %v6492_v4, %v3255_v1  ;;  %5023 = vmatprep.subr.bf16.mxu1 %v6707_v6  ;;  %v6767_v60 = vld [vmem:[#allocation7 + $0x1ec] ss:$16 sps:$4 sm:$0xff]   ;;  %v6780_v62 = vld [vmem:[#allocation7 + $0x540] ss:$16 sps:$4 sm:$0xff]   ;;  %v6765_v0 = vld [vmem:[#allocation7 + $0x1e8] ss:$16 sps:$4 sm:$0xff]  }
 0x26d   :  { %v7543_v27 = vpack.c.bf16 %v3271_v14, %v3263_v13  ;;  %v3272_v17 = vsel %vm3240_vm8, %v6493_v9, %v3256_v10  ;;  %v6788_v2 = vld [vmem:[#allocation7 + $0x564] ss:$16 sps:$4 sm:$0xff]   ;;  %v6773_v4 = vld [vmem:[#allocation7 + $0x20c] ss:$16 sps:$4 sm:$0xff]   ;;  %v6786_v5 = vld [vmem:[#allocation7 + $0x560] ss:$16 sps:$4 sm:$0xff]  }
 0x26e   :  { %v7545_v33 = vpack.c.bf16 %v3272_v17, %v3264_v16  ;;  %v6771_v6 = vld [vmem:[#allocation7 + $0x208] ss:$16 sps:$4 sm:$0xff]   ;;  %v6779_v7 = vld [vmem:[#allocation7 + $0x22c] ss:$16 sps:$4 sm:$0xff]   ;;  %v6794_v9 = vld [vmem:[#allocation7 + $0x584] ss:$16 sps:$4 sm:$0xff]  }
 0x26f   :  { %5024 = vmatpush1.bf16.msra.mxu1 %v6705_v11  ;;  %v6792_v1 = vld [vmem:[#allocation7 + $0x580] ss:$16 sps:$4 sm:$0xff]   ;;  %v6777_v10 = vld [vmem:[#allocation7 + $0x228] ss:$16 sps:$4 sm:$0xff]   ;;  %v6800_v11 = vld [vmem:[#allocation7 + $0x5a4] ss:$16 sps:$4 sm:$0xff]  }
 0x270   :  { %4918 = vmatprep.mubr.bf16.mxu0 %v7545_v33  ;;  %5025 = vmatprep.subr.bf16.mxu1 %v6713_v15  ;;  %v6785_v13 = vld [vmem:[#allocation7 + $0x24c] ss:$16 sps:$4 sm:$0xff]   ;;  %v6798_v14 = vld [vmem:[#allocation7 + $0x5a0] ss:$16 sps:$4 sm:$0xff]   ;;  %v6783_v15 = vld [vmem:[#allocation7 + $0x248] ss:$16 sps:$4 sm:$0xff]  }
 0x271   :  { %4919 = vmatmul.mubr.bf16.vlgmr.msra.gmra.mrb[8].mxu0 %v7543_v27  ;;  %v6806_v16 = vld [vmem:[#allocation7 + $0x5c4] ss:$16 sps:$4 sm:$0xff]   ;;  %v6791_v17 = vld [vmem:[#allocation7 + $0x26c] ss:$16 sps:$4 sm:$0xff]  }
 0x272   :  { %4930 = vmatpush1.bf16.msra.mxu0 %v6720_v18  ;;  %v6789_v18 = vld [vmem:[#allocation7 + $0x268] ss:$16 sps:$4 sm:$0xff]  }
 0x273   :  { %5026 = vmatpush1.bf16.msra.mxu1 %v6711_v19  ;;  %4931 = vmatprep.subr.bf16.mxu0 %v6728_v20  ;;  %v6812_v19 = vld [vmem:[#allocation7 + $0x5e4] ss:$16 sps:$4 sm:$0xff]   ;;  %v6810_v20 = vld [vmem:[#allocation7 + $0x5e0] ss:$16 sps:$4 sm:$0xff]  }
 0x274   :  { %5027 = vmatprep.subr.bf16.mxu1 %v6716_v21  ;;  %v6795_v21 = vld [vmem:[#allocation7 + $0x288] ss:$16 sps:$4 sm:$0xff]  }
 0x276   :  { %4932 = vmatpush1.bf16.msra.mxu0 %v6726_v23  ;;  %v555_v23 = vsub.s32 4, %v7501_v22 }
 0x277   :  { %5028 = vmatpush1.bf16.msra.mxu1 %v6714_v24  ;;  %4933 = vmatprep.subr.bf16.mxu0 %v6734_v25  ;;  %v6866_v24 = vld [vmem:[#allocation7 + $0x604] ss:$16 sps:$4 sm:$0xff]   ;;  %v6803_v25 = vld [vmem:[#allocation7 + $0x2ac] ss:$16 sps:$4 sm:$0xff]  }
 0x278   :  { %5029 = vmatprep.subr.bf16.mxu1 %v6719_v26  ;;  %v559_v26 = vsub.s32 5, %v7501_v22 }
 0x27a   :  { %4934 = vmatpush1.bf16.msra.mxu0 %v6732_v28  ;;  %v7553_v28 = vld [vmem:[#allocation5] sm:$0xff] }
 0x27b   :  { %5030 = vmatpush1.bf16.msra.mxu1 %v6717_v29  ;;  %4935 = vmatprep.subr.bf16.mxu0 %v6740_v30  ;;  %v556_v29 = vrot.slane %v7553_v28, %v555_v23  ;;  %v6801_v30 = vld [vmem:[#allocation7 + $0x2a8] ss:$16 sps:$4 sm:$0xff]   ;;  %v6908_v23 = vld [vmem:[#allocation7 + $0x6e4] ss:$16 sps:$4 sm:$0xff]  }
 0x27c   :  { %5031 = vmatprep.subr.bf16.mxu1 %v6725_v31  ;;  %v560_v31 = vrot.slane %v7553_v28, %v559_v26  ;;  %v6842_v26 = vld [vmem:[#allocation7 + $0x40c] ss:$16 sps:$4 sm:$0xff]  }
 0x27e   :  { %4936 = vmatpush1.bf16.msra.mxu0 %v6738_v32  ;;  %v6809_v32 = vld [vmem:[#allocation7 + $0x2cc] ss:$16 sps:$4 sm:$0xff]  }
 0x27f   :  { %5032 = vmatpush1.bf16.msra.mxu1 %v6723_v34  ;;  %4937 = vmatprep.subr.bf16.mxu0 %v6746_v35 }
 0x280   :  { %5033 = vmatprep.subr.bf16.mxu1 %v6731_v36 }
 0x282   :  { %4938 = vmatpush1.bf16.msra.mxu0 %v6744_v37  ;;  %v6807_v37 = vld [vmem:[#allocation7 + $0x2c8] ss:$16 sps:$4 sm:$0xff]  }
 0x283   :  { %5034 = vmatpush1.bf16.msra.mxu1 %v6729_v38  ;;  %4939 = vmatprep.subr.bf16.mxu0 %v6752_v39 }
 0x284   :  { %5035 = vmatprep.subr.bf16.mxu1 %v6737_v41  ;;  %v6815_v41 = vld [vmem:[#allocation7 + $0x2ec] ss:$16 sps:$4 sm:$0xff]  }
 0x286   :  { %4940 = vmatpush1.bf16.msra.mxu0 %v6750_v46 }
 0x287   :  { %5036 = vmatpush1.bf16.msra.mxu1 %v6735_v42  ;;  %4941 = vmatprep.subr.bf16.mxu0 %v6758_v43 }
 0x288   :  { %5037 = vmatprep.subr.bf16.mxu1 %v6743_v44 }
 0x28a   :  { %4942 = vmatpush1.bf16.msra.mxu0 %v6756_v45 }
 0x28b   :  { %5038 = vmatpush1.bf16.msra.mxu1 %v6741_v50  ;;  %4943 = vmatprep.subr.bf16.mxu0 %v6764_v47  ;;  %v6813_v47 = vld [vmem:[#allocation7 + $0x2e8] ss:$16 sps:$4 sm:$0xff]  }
 0x28c   :  { %5039 = vmatprep.subr.bf16.mxu1 %v6749_v54 }
 0x28e   :  { %4944 = vmatpush1.bf16.msra.mxu0 %v6762_v48  ;;  %v6818_v48 = vld [vmem:[#allocation7 + $0x30c] ss:$16 sps:$4 sm:$0xff]  }
 0x28f   :  { %5040 = vmatpush1.bf16.msra.mxu1 %v6747_v49  ;;  %4945 = vmatprep.subr.bf16.mxu0 %v6770_v51 }
 0x290   :  { %5041 = vmatprep.subr.bf16.mxu1 %v6755_v52 }
 0x292   :  { %4946 = vmatpush1.bf16.msra.mxu0 %v6768_v53 }
 0x293   :  { %5042 = vmatpush1.bf16.msra.mxu1 %v6753_v59  ;;  %4947 = vmatprep.subr.bf16.mxu0 %v6776_v61 }
 0x294   :  { %5043 = vmatprep.subr.bf16.mxu1 %v6761_v56  ;;  %v6816_v56 = vld [vmem:[#allocation7 + $0x308] ss:$16 sps:$4 sm:$0xff]  }
 0x296   :  { %4948 = vmatpush1.bf16.msra.mxu0 %v6774_v57  ;;  %v6864_v57 = vld [vmem:[#allocation7 + $0x600] ss:$16 sps:$4 sm:$0xff]  }
 0x297   :  { %5044 = vmatpush1.bf16.msra.mxu1 %v6759_v58  ;;  %4949 = vmatprep.subr.bf16.mxu0 %v6782_v3  ;;  %v6821_v58 = vld [vmem:[#allocation7 + $0x32c] ss:$16 sps:$4 sm:$0xff]   ;;  %v6872_v3 = vld [vmem:[#allocation7 + $0x624] ss:$16 sps:$4 sm:$0xff]  }
 0x298   :  { %5045 = vmatprep.subr.bf16.mxu1 %v6767_v60  ;;  %v6819_v60 = vld [vmem:[#allocation7 + $0x328] ss:$16 sps:$4 sm:$0xff]  }
 0x29a   :  { %4950 = vmatpush1.bf16.msra.mxu0 %v6780_v62  ;;  %v6870_v62 = vld [vmem:[#allocation7 + $0x620] ss:$16 sps:$4 sm:$0xff]  }
 0x29b   :  { %5046 = vmatpush1.bf16.msra.mxu1 %v6765_v0  ;;  %4951 = vmatprep.subr.bf16.mxu0 %v6788_v2  ;;  %v6824_v0 = vld [vmem:[#allocation7 + $0x34c] ss:$16 sps:$4 sm:$0xff]   ;;  %v6878_v2 = vld [vmem:[#allocation7 + $0x644] ss:$16 sps:$4 sm:$0xff]  }
 0x29c   :  { %5058 = vmatprep.subr.bf16.mxu1 %v6773_v4  ;;  %v6822_v4 = vld [vmem:[#allocation7 + $0x348] ss:$16 sps:$4 sm:$0xff]  }
 0x29e   :  { %5048 = vmatmul.mubr.bf16.vlgmr.msra.gmra.mrb[12].mxu1 %v7521_v63  ;;  %4952 = vmatpush1.bf16.msra.mxu0 %v6786_v5  ;;  %v6804_v63 = vld [vmem:[#allocation7 + $0x5c0] ss:$16 sps:$4 sm:$0xff]  }
 0x29f   :  { %5059 = vmatpush1.bf16.msra.mxu1 %v6771_v6  ;;  %5090 = vmatprep.mubr.bf16.mxu1 %v7545_v33  ;;  %v6797_v33 = vld [vmem:[#allocation7 + $0x28c] ss:$16 sps:$4 sm:$0xff]   ;;  %v6876_v5 = vld [vmem:[#allocation7 + $0x640] ss:$16 sps:$4 sm:$0xff]  }
 0x2a0   :  { %5060 = vmatprep.subr.bf16.mxu1 %v6779_v7  ;;  %4953 = vmatprep.subr.bf16.mxu0 %v6794_v9  ;;  %v6827_v6 = vld [vmem:[#allocation7 + $0x36c] ss:$16 sps:$4 sm:$0xff]   ;;  %v6884_v7 = vld [vmem:[#allocation7 + $0x664] ss:$16 sps:$4 sm:$0xff]   ;;  %v6825_v9 = vld [vmem:[#allocation7 + $0x368] ss:$16 sps:$4 sm:$0xff]  }
 0x2a2   :  { %4954 = vmatpush1.bf16.msra.mxu0 %v6792_v1  ;;  %v6882_v1 = vld [vmem:[#allocation7 + $0x660] ss:$16 sps:$4 sm:$0xff]  }
 0x2a3   :  { %5061 = vmatpush1.bf16.msra.mxu1 %v6777_v10  ;;  %4955 = vmatprep.subr.bf16.mxu0 %v6800_v11  ;;  %v6830_v10 = vld [vmem:[#allocation7 + $0x38c] ss:$16 sps:$4 sm:$0xff]   ;;  %v6890_v11 = vld [vmem:[#allocation7 + $0x684] ss:$16 sps:$4 sm:$0xff]  }
 0x2a4   :  { %5062 = vmatprep.subr.bf16.mxu1 %v6785_v13  ;;  %v6828_v13 = vld [vmem:[#allocation7 + $0x388] ss:$16 sps:$4 sm:$0xff]  }
 0x2a6   :  { %4956 = vmatpush1.bf16.msra.mxu0 %v6798_v14  ;;  %v6888_v14 = vld [vmem:[#allocation7 + $0x680] ss:$16 sps:$4 sm:$0xff]  }
 0x2a7   :  { %5063 = vmatpush1.bf16.msra.mxu1 %v6783_v15  ;;  %4957 = vmatprep.subr.bf16.mxu0 %v6806_v16  ;;  %v6833_v15 = vld [vmem:[#allocation7 + $0x3ac] ss:$16 sps:$4 sm:$0xff]   ;;  %v6896_v16 = vld [vmem:[#allocation7 + $0x6a4] ss:$16 sps:$4 sm:$0xff]  }
 0x2a8   :  { %5064 = vmatprep.subr.bf16.mxu1 %v6791_v17  ;;  %v6831_v17 = vld [vmem:[#allocation7 + $0x3a8] ss:$16 sps:$4 sm:$0xff]  }
 0x2aa   :  { %4958 = vmatpush1.bf16.msra.mxu0 %v6804_v63  ;;  %v6894_v63 = vld [vmem:[#allocation7 + $0x6a0] ss:$16 sps:$4 sm:$0xff]  }
 0x2ab   :  { %5065 = vmatpush1.bf16.msra.mxu1 %v6789_v18  ;;  %4959 = vmatprep.subr.bf16.mxu0 %v6812_v19  ;;  %v6836_v18 = vld [vmem:[#allocation7 + $0x3cc] ss:$16 sps:$4 sm:$0xff]   ;;  %v6902_v19 = vld [vmem:[#allocation7 + $0x6c4] ss:$16 sps:$4 sm:$0xff]  }
 0x2ac   :  { %5066 = vmatprep.subr.bf16.mxu1 %v6797_v33  ;;  %v6834_v33 = vld [vmem:[#allocation7 + $0x3c8] ss:$16 sps:$4 sm:$0xff]  }
 0x2ae   :  { %4960 = vmatpush1.bf16.msra.mxu0 %v6810_v20  ;;  %v6900_v20 = vld [vmem:[#allocation7 + $0x6c0] ss:$16 sps:$4 sm:$0xff]  }
 0x2af   :  { %5067 = vmatpush1.bf16.msra.mxu1 %v6795_v21  ;;  %4972 = vmatprep.subr.bf16.mxu0 %v6866_v24  ;;  %v6839_v21 = vld [vmem:[#allocation7 + $0x3ec] ss:$16 sps:$4 sm:$0xff]   ;;  %v6837_v24 = vld [vmem:[#allocation7 + $0x3e8] ss:$16 sps:$4 sm:$0xff]  }
 0x2b0   :  { %5068 = vmatprep.subr.bf16.mxu1 %v6803_v25  ;;  %v6906_v25 = vld [vmem:[#allocation7 + $0x6e0] ss:$16 sps:$4 sm:$0xff]  }
 0x2b2   :  { %v3048_v34 = vpop.f32.mrb[4].mxu0 }
 0x2b3   :  { %v6494_v35 = vadd.f32 %v3048_v34, %v556_v29  ;;  %v3050_v36 = vpop.f32.mrb[5].mxu0  ;;  %5069 = vmatpush1.bf16.msra.mxu1 %v6801_v30  ;;  %v6840_v30 = vld [vmem:[#allocation7 + $0x408] ss:$16 sps:$4 sm:$0xff]   ;;  %v6920_v34 = vld [vmem:[#allocation7 + $0x724] ss:$16 sps:$4 sm:$0xff]  }
 0x2b4   :  { %v6495_v38 = vadd.f32 %v3050_v36, %v560_v31  ;;  %v3052_v39 = vpop.f32.mrb[6].mxu0  ;;  %5070 = vmatprep.subr.bf16.mxu1 %v6809_v32  ;;  %v6912_v32 = vld [vmem:[#allocation7 + $0x700] ss:$16 sps:$4 sm:$0xff]   ;;  %v6848_v36 = vld [vmem:[#allocation7 + $0x44c] ss:$16 sps:$4 sm:$0xff]  }
 0x2b5   :  { %v3249_v46 = vmul.f32 0.2, %v6494_v35  ;;  %v6496_v42 = vadd.f32 %v3052_v39, %v556_v29  ;;  %v3054_v43 = vpop.f32.mrb[7].mxu0  ;;  %vm3233_vm9 = vcmp.gt.f32.partialorder %v6494_v35, 0.0  ;;  %v6914_v29 = vld [vmem:[#allocation7 + $0x704] ss:$16 sps:$4 sm:$0xff]  }
 0x2b6   :  { %v3250_v44 = vmul.f32 0.2, %v6495_v38  ;;  %v6497_v45 = vadd.f32 %v3054_v43, %v560_v31  ;;  %vm3234_vm10 = vcmp.gt.f32.partialorder %v6495_v38, 0.0  ;;  %v6845_v31 = vld [vmem:[#allocation7 + $0x42c] ss:$16 sps:$4 sm:$0xff]  }
 0x2b7   :  { %vm3241_vm11 = vcmp.gt.f32.partialorder %v6496_v42, 0.0  ;;  %v3257_v50 = vmul.f32 0.2, %v6496_v42  ;;  %5071 = vmatpush1.bf16.msra.mxu1 %v6807_v37  ;;  %v3265_v49 = vsel %vm3233_vm9, %v6494_v35, %v3249_v46  ;;  %v6843_v35 = vld [vmem:[#allocation7 + $0x428] ss:$16 sps:$4 sm:$0xff]  }
 0x2b8   :  { %vm3242_vm12 = vcmp.gt.f32.partialorder %v6497_v45, 0.0  ;;  %v3258_v54 = vmul.f32 0.2, %v6497_v45  ;;  %5072 = vmatprep.subr.bf16.mxu1 %v6815_v41  ;;  %v3266_v53 = vsel %vm3234_vm10, %v6495_v38, %v3250_v44  ;;  %v6918_v37 = vld [vmem:[#allocation7 + $0x720] ss:$16 sps:$4 sm:$0xff]  }
 0x2b9   :  { %v3273_v51 = vsel %vm3241_vm11, %v6496_v42, %v3257_v50  ;;  %v6926_v38 = vld [vmem:[#allocation7 + $0x744] ss:$16 sps:$4 sm:$0xff]   ;;  %v6846_v39 = vld [vmem:[#allocation7 + $0x448] ss:$16 sps:$4 sm:$0xff]   ;;  %v6851_v41 = vld [vmem:[#allocation7 + $0x46c] ss:$16 sps:$4 sm:$0xff]  }
 0x2ba   :  { %v7557_v52 = vpack.c.bf16 %v3273_v51, %v3265_v49  ;;  %v3274_v59 = vsel %vm3242_vm12, %v6497_v45, %v3258_v54  ;;  %v6924_v46 = vld [vmem:[#allocation7 + $0x740] ss:$16 sps:$4 sm:$0xff]   ;;  %v6932_v42 = vld [vmem:[#allocation7 + $0x764] ss:$16 sps:$4 sm:$0xff]   ;;  %v6854_v43 = vld [vmem:[#allocation7 + $0x48c] ss:$16 sps:$4 sm:$0xff]  }
 0x2bb   :  { %5073 = vmatpush1.bf16.msra.mxu1 %v6813_v47  ;;  %v7559_v61 = vpack.c.bf16 %v3274_v59, %v3266_v53  ;;  %v6930_v44 = vld [vmem:[#allocation7 + $0x760] ss:$16 sps:$4 sm:$0xff]   ;;  %v6938_v45 = vld [vmem:[#allocation7 + $0x784] ss:$16 sps:$4 sm:$0xff]   ;;  %v6852_v50 = vld [vmem:[#allocation7 + $0x488] ss:$16 sps:$4 sm:$0xff]  }
 0x2bc   :  { %5074 = vmatprep.subr.bf16.mxu1 %v6818_v48  ;;  %v6857_v47 = vld [vmem:[#allocation7 + $0x4ac] ss:$16 sps:$4 sm:$0xff]   ;;  %v6936_v54 = vld [vmem:[#allocation7 + $0x780] ss:$16 sps:$4 sm:$0xff]   ;;  %v6944_v48 = vld [vmem:[#allocation7 + $0x7a4] ss:$16 sps:$4 sm:$0xff]  }
 0x2bd   :  { %4961 = vmatprep.mubr.bf16.mxu0 %v7559_v61  ;;  %v6855_v49 = vld [vmem:[#allocation7 + $0x4a8] ss:$16 sps:$4 sm:$0xff]   ;;  %v6860_v51 = vld [vmem:[#allocation7 + $0x4cc] ss:$16 sps:$4 sm:$0xff]   ;;  %v6942_v53 = vld [vmem:[#allocation7 + $0x7a0] ss:$16 sps:$4 sm:$0xff]  }
 0x2be   :  { %4962 = vmatmul.mubr.bf16.vlgmr.msra.gmra.mrb[8].mxu0 %v7557_v52  ;;  %v6950_v59 = vld [vmem:[#allocation7 + $0x7c4] ss:$16 sps:$4 sm:$0xff]  }
 0x2bf   :  { %5075 = vmatpush1.bf16.msra.mxu1 %v6816_v56  ;;  %4973 = vmatpush1.bf16.msra.mxu0 %v6864_v57  ;;  %v6863_v56 = vld [vmem:[#allocation7 + $0x4ec] ss:$16 sps:$4 sm:$0xff]   ;;  %v6948_v57 = vld [vmem:[#allocation7 + $0x7c0] ss:$16 sps:$4 sm:$0xff]  }
 0x2c0   :  { %5076 = vmatprep.subr.bf16.mxu1 %v6821_v58  ;;  %4974 = vmatprep.subr.bf16.mxu0 %v6872_v3  ;;  %v6956_v58 = vld [vmem:[#allocation7 + $0x7e4] ss:$16 sps:$4 sm:$0xff]   ;;  %v6861_v3 = vld [vmem:[#allocation7 + $0x4e8] ss:$16 sps:$4 sm:$0xff]  }
 0x2c3   :  { %5077 = vmatpush1.bf16.msra.mxu1 %v6819_v60  ;;  %4975 = vmatpush1.bf16.msra.mxu0 %v6870_v62  ;;  %v6869_v60 = vld [vmem:[#allocation7 + $0x50c] ss:$16 sps:$4 sm:$0xff]   ;;  %v6954_v62 = vld [vmem:[#allocation7 + $0x7e0] ss:$16 sps:$4 sm:$0xff]  }
 0x2c4   :  { %5078 = vmatprep.subr.bf16.mxu1 %v6824_v0  ;;  %4976 = vmatprep.subr.bf16.mxu0 %v6878_v2  ;;  %v6986_v0 = vld [vmem:[#allocation10 + $0x4] ss:$8 sps:$4 sm:$0xff]  }
 0x2c5   :  { %v6867_v2 = vld [vmem:[#allocation7 + $0x508] ss:$16 sps:$4 sm:$0xff]  }
 0x2c7   :  { %5079 = vmatpush1.bf16.msra.mxu1 %v6822_v4  ;;  %4977 = vmatpush1.bf16.msra.mxu0 %v6876_v5  ;;  %v6875_v4 = vld [vmem:[#allocation7 + $0x52c] ss:$16 sps:$4 sm:$0xff]   ;;  %v6873_v5 = vld [vmem:[#allocation7 + $0x528] ss:$16 sps:$4 sm:$0xff]  }
 0x2c8   :  { %5080 = vmatprep.subr.bf16.mxu1 %v6827_v6  ;;  %4978 = vmatprep.subr.bf16.mxu0 %v6884_v7  ;;  %v6881_v6 = vld [vmem:[#allocation7 + $0x54c] ss:$16 sps:$4 sm:$0xff]   ;;  %v6879_v7 = vld [vmem:[#allocation7 + $0x548] ss:$16 sps:$4 sm:$0xff]  }
 0x2cb   :  { %5081 = vmatpush1.bf16.msra.mxu1 %v6825_v9  ;;  %4979 = vmatpush1.bf16.msra.mxu0 %v6882_v1  ;;  %v6887_v9 = vld [vmem:[#allocation7 + $0x56c] ss:$16 sps:$4 sm:$0xff]   ;;  %v6885_v1 = vld [vmem:[#allocation7 + $0x568] ss:$16 sps:$4 sm:$0xff]  }
 0x2cc   :  { %5082 = vmatprep.subr.bf16.mxu1 %v6830_v10  ;;  %4980 = vmatprep.subr.bf16.mxu0 %v6890_v11  ;;  %v6893_v10 = vld [vmem:[#allocation7 + $0x58c] ss:$16 sps:$4 sm:$0xff]   ;;  %v6891_v11 = vld [vmem:[#allocation7 + $0x588] ss:$16 sps:$4 sm:$0xff]  }
 0x2cf   :  { %5083 = vmatpush1.bf16.msra.mxu1 %v6828_v13  ;;  %4981 = vmatpush1.bf16.msra.mxu0 %v6888_v14  ;;  %v6899_v13 = vld [vmem:[#allocation7 + $0x5ac] ss:$16 sps:$4 sm:$0xff]   ;;  %v6897_v14 = vld [vmem:[#allocation7 + $0x5a8] ss:$16 sps:$4 sm:$0xff]  }
 0x2d0   :  { %5084 = vmatprep.subr.bf16.mxu1 %v6833_v15  ;;  %4982 = vmatprep.subr.bf16.mxu0 %v6896_v16  ;;  %v6905_v15 = vld [vmem:[#allocation7 + $0x5cc] ss:$16 sps:$4 sm:$0xff]   ;;  %v6903_v16 = vld [vmem:[#allocation7 + $0x5c8] ss:$16 sps:$4 sm:$0xff]  }
 0x2d3   :  { %5085 = vmatpush1.bf16.msra.mxu1 %v6831_v17  ;;  %4983 = vmatpush1.bf16.msra.mxu0 %v6894_v63  ;;  %v6911_v17 = vld [vmem:[#allocation7 + $0x5ec] ss:$16 sps:$4 sm:$0xff]   ;;  %v6909_v63 = vld [vmem:[#allocation7 + $0x5e8] ss:$16 sps:$4 sm:$0xff]  }
 0x2d4   :  { %5086 = vmatprep.subr.bf16.mxu1 %v6836_v18  ;;  %4984 = vmatprep.subr.bf16.mxu0 %v6902_v19  ;;  %v6917_v18 = vld [vmem:[#allocation7 + $0x60c] ss:$16 sps:$4 sm:$0xff]   ;;  %v6915_v19 = vld [vmem:[#allocation7 + $0x608] ss:$16 sps:$4 sm:$0xff]  }
 0x2d7   :  { %5087 = vmatpush1.bf16.msra.mxu1 %v6834_v33  ;;  %4985 = vmatpush1.bf16.msra.mxu0 %v6900_v20  ;;  %v6923_v33 = vld [vmem:[#allocation7 + $0x62c] ss:$16 sps:$4 sm:$0xff]   ;;  %v6921_v20 = vld [vmem:[#allocation7 + $0x628] ss:$16 sps:$4 sm:$0xff]  }
 0x2d8   :  { %5088 = vmatprep.subr.bf16.mxu1 %v6839_v21  ;;  %4986 = vmatprep.subr.bf16.mxu0 %v6908_v23  ;;  %v6929_v21 = vld [vmem:[#allocation7 + $0x64c] ss:$16 sps:$4 sm:$0xff]   ;;  %v6927_v23 = vld [vmem:[#allocation7 + $0x648] ss:$16 sps:$4 sm:$0xff]  }
 0x2db   :  { %5089 = vmatpush1.bf16.msra.mxu1 %v6837_v24  ;;  %4987 = vmatpush1.bf16.msra.mxu0 %v6906_v25  ;;  %v6935_v24 = vld [vmem:[#allocation7 + $0x66c] ss:$16 sps:$4 sm:$0xff]   ;;  %v6933_v25 = vld [vmem:[#allocation7 + $0x668] ss:$16 sps:$4 sm:$0xff]  }
 0x2dc   :  { %5101 = vmatprep.subr.bf16.mxu1 %v6842_v26  ;;  %4988 = vmatprep.subr.bf16.mxu0 %v6914_v29  ;;  %v6941_v26 = vld [vmem:[#allocation7 + $0x68c] ss:$16 sps:$4 sm:$0xff]   ;;  %v563_v29 = vsub.s32 6, %v7501_v22 }
 0x2de   :  { %5091 = vmatmul.mubr.bf16.vlgmr.msra.gmra.mrb[12].mxu1 %v7543_v27  ;;  %v6849_v27 = vld [vmem:[#allocation7 + $0x468] ss:$16 sps:$4 sm:$0xff]  }
 0x2df   :  { %5102 = vmatpush1.bf16.msra.mxu1 %v6840_v30  ;;  %5133 = vmatprep.mubr.bf16.mxu1 %v7559_v61  ;;  %v6858_v61 = vld [vmem:[#allocation7 + $0x4c8] ss:$16 sps:$4 sm:$0xff]  }
 0x2e0   :  { %5103 = vmatprep.subr.bf16.mxu1 %v6845_v31  ;;  %4989 = vmatpush1.bf16.msra.mxu0 %v6912_v32  ;;  %v6939_v30 = vld [vmem:[#allocation7 + $0x688] ss:$16 sps:$4 sm:$0xff]   ;;  %v567_v31 = vsub.s32 7, %v7501_v22  ;;  %v564_v32 = vrot.slane %v7553_v28, %v563_v29 }
 0x2e1   :  { %4990 = vmatprep.subr.bf16.mxu0 %v6920_v34  ;;  %v6945_v34 = vld [vmem:[#allocation7 + $0x6a8] ss:$16 sps:$4 sm:$0xff]  }
 0x2e2   :  { %v6981_v29 = vld [vmem:[#allocation7 + $0x7e8] ss:$16 sps:$4 sm:$0xff]  }
 0x2e3   :  { %5104 = vmatpush1.bf16.msra.mxu1 %v6843_v35  ;;  %v568_v35 = vrot.slane %v7553_v28, %v567_v31  ;;  %v7008_v31 = vld [vmem:[#allocation10 + $0x80] ss:$8 sps:$4 sm:$0xff]  }
 0x2e4   :  { %5105 = vmatprep.subr.bf16.mxu1 %v6848_v36  ;;  %4991 = vmatpush1.bf16.msra.mxu0 %v6918_v37  ;;  %v6953_v36 = vld [vmem:[#allocation7 + $0x6cc] ss:$16 sps:$4 sm:$0xff]  }
 0x2e5   :  { %4992 = vmatprep.subr.bf16.mxu0 %v6926_v38 }
 0x2e7   :  { %5106 = vmatpush1.bf16.msra.mxu1 %v6846_v39 }
 0x2e8   :  { %5107 = vmatprep.subr.bf16.mxu1 %v6851_v41  ;;  %4993 = vmatpush1.bf16.msra.mxu0 %v6924_v46 }
 0x2e9   :  { %4994 = vmatprep.subr.bf16.mxu0 %v6932_v42  ;;  %v6951_v42 = vld [vmem:[#allocation7 + $0x6c8] ss:$16 sps:$4 sm:$0xff]  }
 0x2eb   :  { %5108 = vmatpush1.bf16.msra.mxu1 %v6849_v27 }
 0x2ec   :  { %5109 = vmatprep.subr.bf16.mxu1 %v6854_v43  ;;  %4995 = vmatpush1.bf16.msra.mxu0 %v6930_v44 }
 0x2ed   :  { %4996 = vmatprep.subr.bf16.mxu0 %v6938_v45  ;;  %v6959_v45 = vld [vmem:[#allocation7 + $0x6ec] ss:$16 sps:$4 sm:$0xff]  }
 0x2ef   :  { %5110 = vmatpush1.bf16.msra.mxu1 %v6852_v50 }
 0x2f0   :  { %5111 = vmatprep.subr.bf16.mxu1 %v6857_v47  ;;  %4997 = vmatpush1.bf16.msra.mxu0 %v6936_v54 }
 0x2f1   :  { %4998 = vmatprep.subr.bf16.mxu0 %v6944_v48  ;;  %v6957_v48 = vld [vmem:[#allocation7 + $0x6e8] ss:$16 sps:$4 sm:$0xff]  }
 0x2f3   :  { %5112 = vmatpush1.bf16.msra.mxu1 %v6855_v49 }
 0x2f4   :  { %5113 = vmatprep.subr.bf16.mxu1 %v6860_v51  ;;  %4999 = vmatpush1.bf16.msra.mxu0 %v6942_v53 }
 0x2f5   :  { %5000 = vmatprep.subr.bf16.mxu0 %v6950_v59 }
 0x2f7   :  { %5114 = vmatpush1.bf16.msra.mxu1 %v6858_v61 }
 0x2f8   :  { %5115 = vmatprep.subr.bf16.mxu1 %v6863_v56  ;;  %5001 = vmatpush1.bf16.msra.mxu0 %v6948_v57  ;;  %v6962_v56 = vld [vmem:[#allocation7 + $0x70c] ss:$16 sps:$4 sm:$0xff]  }
 0x2f9   :  { %5002 = vmatprep.subr.bf16.mxu0 %v6956_v58  ;;  %v6984_v58 = vld [vmem:[#allocation10] ss:$8 sps:$4 sm:$0xff]  }
 0x2fb   :  { %5116 = vmatpush1.bf16.msra.mxu1 %v6861_v3  ;;  %v6960_v3 = vld [vmem:[#allocation7 + $0x708] ss:$16 sps:$4 sm:$0xff]  }
 0x2fc   :  { %5117 = vmatprep.subr.bf16.mxu1 %v6869_v60  ;;  %5003 = vmatpush1.bf16.msra.mxu0 %v6954_v62  ;;  %v6989_v60 = vld [vmem:[#allocation10 + $0x14] ss:$8 sps:$4 sm:$0xff]   ;;  %v6965_v62 = vld [vmem:[#allocation7 + $0x72c] ss:$16 sps:$4 sm:$0xff]  }
 0x2fd   :  { %5611 = vmatprep.subr.bf16.mxu0 %v6986_v0  ;;  %v6987_v0 = vld [vmem:[#allocation10 + $0x10] ss:$8 sps:$4 sm:$0xff]  }
 0x2ff   :  { %5118 = vmatpush1.bf16.msra.mxu1 %v6867_v2  ;;  %v6963_v2 = vld [vmem:[#allocation7 + $0x728] ss:$16 sps:$4 sm:$0xff]  }
 0x300   :  { %5119 = vmatprep.subr.bf16.mxu1 %v6875_v4  ;;  %v6992_v4 = vld [vmem:[#allocation10 + $0x24] ss:$8 sps:$4 sm:$0xff]  }
 0x303   :  { %5120 = vmatpush1.bf16.msra.mxu1 %v6873_v5  ;;  %v6968_v5 = vld [vmem:[#allocation7 + $0x74c] ss:$16 sps:$4 sm:$0xff]  }
 0x304   :  { %5121 = vmatprep.subr.bf16.mxu1 %v6881_v6  ;;  %v6990_v6 = vld [vmem:[#allocation10 + $0x20] ss:$8 sps:$4 sm:$0xff]  }
 0x307   :  { %5122 = vmatpush1.bf16.msra.mxu1 %v6879_v7  ;;  %v6966_v7 = vld [vmem:[#allocation7 + $0x748] ss:$16 sps:$4 sm:$0xff]  }
 0x308   :  { %5123 = vmatprep.subr.bf16.mxu1 %v6887_v9  ;;  %v6995_v9 = vld [vmem:[#allocation10 + $0x34] ss:$8 sps:$4 sm:$0xff]  }
 0x30b   :  { %5124 = vmatpush1.bf16.msra.mxu1 %v6885_v1  ;;  %v6971_v1 = vld [vmem:[#allocation7 + $0x76c] ss:$16 sps:$4 sm:$0xff]  }
 0x30c   :  { %5125 = vmatprep.subr.bf16.mxu1 %v6893_v10  ;;  %v6993_v10 = vld [vmem:[#allocation10 + $0x30] ss:$8 sps:$4 sm:$0xff]  }
 0x30f   :  { %5126 = vmatpush1.bf16.msra.mxu1 %v6891_v11  ;;  %v6969_v11 = vld [vmem:[#allocation7 + $0x768] ss:$16 sps:$4 sm:$0xff]  }
 0x310   :  { %5127 = vmatprep.subr.bf16.mxu1 %v6899_v13  ;;  %v6998_v13 = vld [vmem:[#allocation10 + $0x44] ss:$8 sps:$4 sm:$0xff]  }
 0x313   :  { %5128 = vmatpush1.bf16.msra.mxu1 %v6897_v14  ;;  %v6974_v14 = vld [vmem:[#allocation7 + $0x78c] ss:$16 sps:$4 sm:$0xff]  }
 0x314   :  { %5129 = vmatprep.subr.bf16.mxu1 %v6905_v15  ;;  %v6996_v15 = vld [vmem:[#allocation10 + $0x40] ss:$8 sps:$4 sm:$0xff]  }
 0x317   :  { %5130 = vmatpush1.bf16.msra.mxu1 %v6903_v16  ;;  %v6972_v16 = vld [vmem:[#allocation7 + $0x788] ss:$16 sps:$4 sm:$0xff]  }
 0x318   :  { %5131 = vmatprep.subr.bf16.mxu1 %v6911_v17  ;;  %v7001_v17 = vld [vmem:[#allocation10 + $0x54] ss:$8 sps:$4 sm:$0xff]  }
 0x31b   :  { %5132 = vmatpush1.bf16.msra.mxu1 %v6909_v63  ;;  %v6977_v63 = vld [vmem:[#allocation7 + $0x7ac] ss:$16 sps:$4 sm:$0xff]  }
 0x31c   :  { %5144 = vmatprep.subr.bf16.mxu1 %v6917_v18  ;;  %v6999_v18 = vld [vmem:[#allocation10 + $0x50] ss:$8 sps:$4 sm:$0xff]  }
 0x31e   :  { %5134 = vmatmul.mubr.bf16.vlgmr.msra.gmra.mrb[12].mxu1 %v7557_v52  ;;  %v6947_v52 = vld [vmem:[#allocation7 + $0x6ac] ss:$16 sps:$4 sm:$0xff]  }
 0x31f   :  { %5145 = vmatpush1.bf16.msra.mxu1 %v6915_v19  ;;  %v6975_v19 = vld [vmem:[#allocation7 + $0x7a8] ss:$16 sps:$4 sm:$0xff]  }
 0x320   :  { %5146 = vmatprep.subr.bf16.mxu1 %v6923_v33  ;;  %v7004_v33 = vld [vmem:[#allocation10 + $0x64] ss:$8 sps:$4 sm:$0xff]  }
 0x323   :  { %5147 = vmatpush1.bf16.msra.mxu1 %v6921_v20  ;;  %v6980_v20 = vld [vmem:[#allocation7 + $0x7cc] ss:$16 sps:$4 sm:$0xff]  }
 0x324   :  { %5148 = vmatprep.subr.bf16.mxu1 %v6929_v21  ;;  %v7002_v21 = vld [vmem:[#allocation10 + $0x60] ss:$8 sps:$4 sm:$0xff]  }
 0x327   :  { %5149 = vmatpush1.bf16.msra.mxu1 %v6927_v23  ;;  %v6978_v23 = vld [vmem:[#allocation7 + $0x7c8] ss:$16 sps:$4 sm:$0xff]  }
 0x328   :  { %5150 = vmatprep.subr.bf16.mxu1 %v6935_v24  ;;  %v7007_v24 = vld [vmem:[#allocation10 + $0x74] ss:$8 sps:$4 sm:$0xff]  }
 0x32b   :  { %5151 = vmatpush1.bf16.msra.mxu1 %v6933_v25  ;;  %v6983_v25 = vld [vmem:[#allocation7 + $0x7ec] ss:$16 sps:$4 sm:$0xff]  }
 0x32c   :  { %5152 = vmatprep.subr.bf16.mxu1 %v6941_v26  ;;  %v7005_v26 = vld [vmem:[#allocation10 + $0x70] ss:$8 sps:$4 sm:$0xff]  }
 0x32f   :  { %5153 = vmatpush1.bf16.msra.mxu1 %v6939_v30  ;;  %v7010_v30 = vld [vmem:[#allocation10 + $0x84] ss:$8 sps:$4 sm:$0xff]  }
 0x330   :  { %5154 = vmatprep.subr.bf16.mxu1 %v6947_v52  ;;  %v7013_v52 = vld [vmem:[#allocation10 + $0x94] ss:$8 sps:$4 sm:$0xff]  }
 0x331   :  { %v3220_v37 = vpop.f32.mrb[8].mxu1 }
 0x332   :  { %v6498_v38 = vadd.f32 %v3220_v37, %v564_v32  ;;  %v3222_v39 = vpop.f32.mrb[9].mxu1  ;;  %v7017_v37 = vld [vmem:[#allocation10 + $0xb0] ss:$8 sps:$4 sm:$0xff]  }
 0x333   :  { %v6499_v41 = vadd.f32 %v3222_v39, %v568_v35  ;;  %5155 = vmatpush1.bf16.msra.mxu1 %v6945_v34  ;;  %v3224_v46 = vpop.f32.mrb[10].mxu1  ;;  %v7016_v34 = vld [vmem:[#allocation10 + $0xa4] ss:$8 sps:$4 sm:$0xff]   ;;  %v7020_v39 = vld [vmem:[#allocation10 + $0xc0] ss:$8 sps:$4 sm:$0xff]  }
 0x334   :  { %v3251_v27 = vmul.f32 0.2, %v6498_v38  ;;  %v6500_v43 = vadd.f32 %v3224_v46, %v564_v32  ;;  %v3226_v44 = vpop.f32.mrb[11].mxu1  ;;  %5156 = vmatprep.subr.bf16.mxu1 %v6953_v36  ;;  %vm3235_vm13 = vcmp.gt.f32.partialorder %v6498_v38, 0.0  ;;  %v7011_v32 = vld [vmem:[#allocation10 + $0x90] ss:$8 sps:$4 sm:$0xff]  }
 0x335   :  { %v3252_v50 = vmul.f32 0.2, %v6499_v41  ;;  %v6501_v47 = vadd.f32 %v3226_v44, %v568_v35  ;;  %vm3236_vm14 = vcmp.gt.f32.partialorder %v6499_v41, 0.0  ;;  %v7014_v35 = vld [vmem:[#allocation10 + $0xa0] ss:$8 sps:$4 sm:$0xff]  }
 0x336   :  { %vm3243_vm15 = vcmp.gt.f32.partialorder %v6500_v43, 0.0  ;;  %v3259_v28 = vmul.f32 0.2, %v6500_v43  ;;  %v3267_v49 = vsel %vm3235_vm13, %v6498_v38, %v3251_v27  ;;  %v7019_v36 = vld [vmem:[#allocation10 + $0xb4] ss:$8 sps:$4 sm:$0xff]   ;;  %vm5752_vm13 = vcmask 7168  }
 0x337   :  { %vm3244_vm0 = vcmp.gt.f32.partialorder %v6501_v47, 0.0  ;;  %v3260_v54 = vmul.f32 0.2, %v6501_v47  ;;  %5157 = vmatpush1.bf16.msra.mxu1 %v6951_v42  ;;  %v3268_v59 = vsel %vm3236_vm14, %v6499_v41, %v3252_v50  ;;  %v7022_v38 = vld [vmem:[#allocation10 + $0xc4] ss:$8 sps:$4 sm:$0xff]  }
 0x338   :  { %v3275_v51 = vsel %vm3243_vm15, %v6500_v43, %v3259_v28  ;;  %5158 = vmatprep.subr.bf16.mxu1 %v6959_v45  ;;  %v7025_v41 = vld [vmem:[#allocation10 + $0xd4] ss:$8 sps:$4 sm:$0xff]   ;;  %v7023_v46 = vld [vmem:[#allocation10 + $0xd0] ss:$8 sps:$4 sm:$0xff]   ;;  %v7028_v42 = vld [vmem:[#allocation10 + $0xe4] ss:$8 sps:$4 sm:$0xff]  }
 0x339   :  { %v7570_v53 = vpack.c.bf16 %v3275_v51, %v3267_v49  ;;  %v3276_v61 = vsel %vm3244_vm0, %v6501_v47, %v3260_v54  ;;  %v7026_v27 = vld [vmem:[#allocation10 + $0xe0] ss:$8 sps:$4 sm:$0xff]   ;;  %v7031_v43 = vld [vmem:[#allocation10 + $0xf4] ss:$8 sps:$4 sm:$0xff]   ;;  %v7029_v44 = vld [vmem:[#allocation10 + $0xf0] ss:$8 sps:$4 sm:$0xff]  }
 0x33a   :  { %v3284_v57 = vpack.c.bf16 %v3276_v61, %v3268_v59  ;;  %v7034_v45 = vld [vmem:[#allocation10 + $0x104] ss:$8 sps:$4 sm:$0xff]   ;;  %v3541_v50 = vld [vmem:[#allocation8] sm:$0xf] }
 0x33b   :  { %5159 = vmatpush1.bf16.msra.mxu1 %v6957_v48  ;;  %v3546_v47 = vrot.slane %v3541_v50, %v7504_v8  ;;  %v3550_v28 = vrot.slane %v3541_v50, %v7509_v12 }
 0x33c   :  { %5004 = vmatprep.mubr.bf16.mxu0 %v3284_v57  ;;  %5176 = vmatprep.mubr.bf16.mxu1 %v3284_v57 }
 0x33d   :  { %5005 = vmatmul.mubr.bf16.vlgmr.msra.gmra.mrb[8].mxu0 %v7570_v53  ;;  %5160 = vmatprep.subr.bf16.mxu1 %v6962_v56 }
 0x33e   :  { %5612 = vmatpush1.bf16.msra.mxu0 %v6984_v58 }
 0x33f   :  { %5161 = vmatpush1.bf16.msra.mxu1 %v6960_v3  ;;  %5613 = vmatprep.subr.bf16.mxu0 %v6989_v60 }
 0x340   :  { %5162 = vmatprep.subr.bf16.mxu1 %v6965_v62 }
 0x342   :  { %5614 = vmatpush1.bf16.msra.mxu0 %v6987_v0 }
 0x343   :  { %5163 = vmatpush1.bf16.msra.mxu1 %v6963_v2  ;;  %5615 = vmatprep.subr.bf16.mxu0 %v6992_v4 }
 0x344   :  { %5164 = vmatprep.subr.bf16.mxu1 %v6968_v5 }
 0x346   :  { %5616 = vmatpush1.bf16.msra.mxu0 %v6990_v6 }
 0x347   :  { %5165 = vmatpush1.bf16.msra.mxu1 %v6966_v7  ;;  %5617 = vmatprep.subr.bf16.mxu0 %v6995_v9  ;;  %v7032_v7 = vld [vmem:[#allocation10 + $0x100] ss:$8 sps:$4 sm:$0xff]   ;;  %v7037_v9 = vld [vmem:[#allocation10 + $0x114] ss:$8 sps:$4 sm:$0xff]  }
 0x348   :  { %5166 = vmatprep.subr.bf16.mxu1 %v6971_v1  ;;  %v7035_v1 = vld [vmem:[#allocation10 + $0x110] ss:$8 sps:$4 sm:$0xff]  }
 0x34a   :  { %5618 = vmatpush1.bf16.msra.mxu0 %v6993_v10  ;;  %v7040_v10 = vld [vmem:[#allocation10 + $0x124] ss:$8 sps:$4 sm:$0xff]  }
 0x34b   :  { %5167 = vmatpush1.bf16.msra.mxu1 %v6969_v11  ;;  %5619 = vmatprep.subr.bf16.mxu0 %v6998_v13  ;;  %v7038_v11 = vld [vmem:[#allocation10 + $0x120] ss:$8 sps:$4 sm:$0xff]   ;;  %v7043_v13 = vld [vmem:[#allocation10 + $0x134] ss:$8 sps:$4 sm:$0xff]  }
 0x34c   :  { %5168 = vmatprep.subr.bf16.mxu1 %v6974_v14  ;;  %v7041_v14 = vld [vmem:[#allocation10 + $0x130] ss:$8 sps:$4 sm:$0xff]  }
 0x34e   :  { %5620 = vmatpush1.bf16.msra.mxu0 %v6996_v15  ;;  %v7046_v15 = vld [vmem:[#allocation10 + $0x144] ss:$8 sps:$4 sm:$0xff]  }
 0x34f   :  { %5169 = vmatpush1.bf16.msra.mxu1 %v6972_v16  ;;  %5621 = vmatprep.subr.bf16.mxu0 %v7001_v17  ;;  %v7044_v16 = vld [vmem:[#allocation10 + $0x140] ss:$8 sps:$4 sm:$0xff]   ;;  %v7049_v17 = vld [vmem:[#allocation10 + $0x154] ss:$8 sps:$4 sm:$0xff]  }
 0x350   :  { %5170 = vmatprep.subr.bf16.mxu1 %v6977_v63  ;;  %v7047_v63 = vld [vmem:[#allocation10 + $0x150] ss:$8 sps:$4 sm:$0xff]  }
 0x352   :  { %5622 = vmatpush1.bf16.msra.mxu0 %v6999_v18  ;;  %v3554_v18 = vrot.slane %v3541_v50, %v547_v40  ;;  %v7053_v40 = vld [vmem:[#allocation10 + $0x170] ss:$8 sps:$4 sm:$0xff]  }
 0x353   :  { %5171 = vmatpush1.bf16.msra.mxu1 %v6975_v19  ;;  %5623 = vmatprep.subr.bf16.mxu0 %v7004_v33  ;;  %v7052_v19 = vld [vmem:[#allocation10 + $0x164] ss:$8 sps:$4 sm:$0xff]   ;;  %v3558_v33 = vrot.slane %v3541_v50, %v551_v55  ;;  %v7067_v50 = vld [vmem:[#allocation10 + $0x1b4] ss:$8 sps:$4 sm:$0xff]  }
 0x354   :  { %5172 = vmatprep.subr.bf16.mxu1 %v6980_v20  ;;  %v7058_v55 = vld [vmem:[#allocation10 + $0x184] ss:$8 sps:$4 sm:$0xff]  }
 0x356   :  { %5624 = vmatpush1.bf16.msra.mxu0 %v7002_v21  ;;  %v7050_v21 = vld [vmem:[#allocation10 + $0x160] ss:$8 sps:$4 sm:$0xff]  }
 0x357   :  { %5173 = vmatpush1.bf16.msra.mxu1 %v6978_v23  ;;  %5625 = vmatprep.subr.bf16.mxu0 %v7007_v24 }
 0x358   :  { %5174 = vmatprep.subr.bf16.mxu1 %v6983_v25  ;;  %v7055_v25 = vld [vmem:[#allocation10 + $0x174] ss:$8 sps:$4 sm:$0xff]  }
 0x35a   :  { %5626 = vmatpush1.bf16.msra.mxu0 %v7005_v26 }
 0x35b   :  { %5175 = vmatpush1.bf16.msra.mxu1 %v6981_v29  ;;  %5627 = vmatprep.subr.bf16.mxu0 %v7010_v30 }
 0x35e   :  { %5177 = vmatmul.mubr.bf16.vlgmr.msra.gmra.mrb[12].mxu1 %v7570_v53  ;;  %5628 = vmatpush1.bf16.msra.mxu0 %v7008_v31 }
 0x35f   :  { %5629 = vmatprep.subr.bf16.mxu0 %v7013_v52 }
 0x362   :  { %5630 = vmatpush1.bf16.msra.mxu0 %v7011_v32 }
 0x363   :  { %5631 = vmatprep.subr.bf16.mxu0 %v7016_v34 }
 0x366   :  { %5632 = vmatpush1.bf16.msra.mxu0 %v7014_v35 }
 0x367   :  { %5633 = vmatprep.subr.bf16.mxu0 %v7019_v36 }
 0x36a   :  { %5634 = vmatpush1.bf16.msra.mxu0 %v7017_v37 }
 0x36b   :  { %5635 = vmatprep.subr.bf16.mxu0 %v7022_v38 }
 0x36e   :  { %5636 = vmatpush1.bf16.msra.mxu0 %v7020_v39  ;;  %v7056_v39 = vld [vmem:[#allocation10 + $0x180] ss:$8 sps:$4 sm:$0xff]  }
 0x36f   :  { %5637 = vmatprep.subr.bf16.mxu0 %v7025_v41 }
 0x372   :  { %5638 = vmatpush1.bf16.msra.mxu0 %v7023_v46 }
 0x373   :  { %5639 = vmatprep.subr.bf16.mxu0 %v7028_v42 }
 0x376   :  { %5640 = vmatpush1.bf16.msra.mxu0 %v7026_v27  ;;  %v7061_v27 = vld [vmem:[#allocation10 + $0x194] ss:$8 sps:$4 sm:$0xff]  }
 0x377   :  { %5641 = vmatprep.subr.bf16.mxu0 %v7031_v43  ;;  %v7059_v43 = vld [vmem:[#allocation10 + $0x190] ss:$8 sps:$4 sm:$0xff]  }
 0x37a   :  { %5642 = vmatpush1.bf16.msra.mxu0 %v7029_v44  ;;  %v7064_v44 = vld [vmem:[#allocation10 + $0x1a4] ss:$8 sps:$4 sm:$0xff]  }
 0x37b   :  { %5654 = vmatprep.subr.bf16.mxu0 %v7034_v45  ;;  %v7062_v45 = vld [vmem:[#allocation10 + $0x1a0] ss:$8 sps:$4 sm:$0xff]  }
 0x410   :  { %v5006_v54 = vpop.f32.mrb[8].mxu0 }
 0x411   :  { %v6502_v48 = vadd.f32 %v5006_v54, %v3546_v47  ;;  %v5008_v49 = vpop.f32.mrb[9].mxu0  ;;  %v7068_v54 = vld [vmem:[#allocation10 + $0x1c0] ss:$8 sps:$4 sm:$0xff]  }
 0x412   :  { %v6503_v51 = vadd.f32 %v5008_v49, %v3550_v28  ;;  %v5010_v53 = vpop.f32.mrb[10].mxu0  ;;  %v7071_v49 = vld [vmem:[#allocation10 + $0x1d0] ss:$8 sps:$4 sm:$0xff]  }
 0x413   :  { %v5195_v59 = vmul.f32 0.2, %v6502_v48  ;;  %v6504_v61 = vadd.f32 %v5010_v53, %v3546_v47  ;;  %v5012_v56 = vpop.f32.mrb[11].mxu0  ;;  %vm5187_vm1 = vcmp.gt.f32.partialorder %v6502_v48, 0.0  ;;  %v7065_v47 = vld [vmem:[#allocation10 + $0x1b0] ss:$8 sps:$4 sm:$0xff]  }
 0x414   :  { %v5196_v57 = vmul.f32 0.2, %v6503_v51  ;;  %v6505_v58 = vadd.f32 %v5012_v56, %v3550_v28  ;;  %vm5188_vm2 = vcmp.gt.f32.partialorder %v6503_v51, 0.0  ;;  %v7070_v28 = vld [vmem:[#allocation10 + $0x1c4] ss:$8 sps:$4 sm:$0xff]  }
 0x415   :  { %vm5191_vm3 = vcmp.gt.f32.partialorder %v6504_v61, 0.0  ;;  %v5199_v3 = vmul.f32 0.2, %v6504_v61  ;;  %v5203_v62 = vsel %vm5187_vm1, %v6502_v48, %v5195_v59  ;;  %v7073_v48 = vld [vmem:[#allocation10 + $0x1d4] ss:$8 sps:$4 sm:$0xff]  }
 0x416   :  { %vm5192_vm4 = vcmp.gt.f32.partialorder %v6505_v58, 0.0  ;;  %v5200_v60 = vmul.f32 0.2, %v6505_v58  ;;  %v5204_v4 = vsel %vm5188_vm2, %v6503_v51, %v5196_v57  ;;  %v7076_v51 = vld [vmem:[#allocation10 + $0x1e4] ss:$8 sps:$4 sm:$0xff]  }
 0x417   :  { %v5207_v0 = vsel %vm5191_vm3, %v6504_v61, %v5199_v3  ;;  %v7074_v53 = vld [vmem:[#allocation10 + $0x1e0] ss:$8 sps:$4 sm:$0xff]   ;;  %v7079_v59 = vld [vmem:[#allocation10 + $0x1f4] ss:$8 sps:$4 sm:$0xff]   ;;  %v7077_v61 = vld [vmem:[#allocation10 + $0x1f0] ss:$8 sps:$4 sm:$0xff]  }
 0x418   :  { %v5211_v2 = vpack.c.bf16 %v5207_v0, %v5203_v62  ;;  %v5208_v5 = vsel %vm5192_vm4, %v6505_v58, %v5200_v60  ;;  %v5279_v56 = vld [vmem:[#allocation11] sm:$0x3]  ;;  %v5709_v3 = vld [vmem:[#allocation13] sm:$0x3] }
 0x419   :  { %v5212_v6 = vpack.c.bf16 %v5208_v5, %v5204_v4  ;;  %v5284_v57 = vrot.slane %v5279_v56, %v7504_v8  ;;  %v5288_v58 = vrot.slane %v5279_v56, %v7509_v12  ;;  %v5714_v5 = vrot.slane %v5709_v3, %v7504_v8 }
 0x41b   :  { %5643 = vmatprep.mubr.bf16.mxu0 %v5212_v6 }
 0x41c   :  { %5644 = vmatmul.mubr.bf16.vlgmr.msra.gmra.mrb[12].mxu0 %v5211_v2 }
 0x41d   :  { %5655 = vmatpush1.bf16.msra.mxu0 %v7032_v7 }
 0x41e   :  { %5656 = vmatprep.subr.bf16.mxu0 %v7037_v9 }
 0x421   :  { %5657 = vmatpush1.bf16.msra.mxu0 %v7035_v1  ;;  %v5718_v1 = vrot.slane %v5709_v3, %v7509_v12  ;;  %v6479_v12 = vld [vmem:[#allocation2] ss:$0 sm:$0xff] }
 0x422   :  { %5658 = vmatprep.subr.bf16.mxu0 %v7040_v10 }
 0x425   :  { %5659 = vmatpush1.bf16.msra.mxu0 %v7038_v11 }
 0x426   :  { %5660 = vmatprep.subr.bf16.mxu0 %v7043_v13 }
 0x429   :  { %5661 = vmatpush1.bf16.msra.mxu0 %v7041_v14 }
 0x42a   :  { %5662 = vmatprep.subr.bf16.mxu0 %v7046_v15 }
 0x42d   :  { %5663 = vmatpush1.bf16.msra.mxu0 %v7044_v16 }
 0x42e   :  { %5664 = vmatprep.subr.bf16.mxu0 %v7049_v17 }
 0x431   :  { %v5178_v20 = vpop.f32.mrb[12].mxu1  ;;  %5665 = vmatpush1.bf16.msra.mxu0 %v7047_v63 }
 0x432   :  { %v6506_v23 = vadd.f32 %v5178_v20, %v3554_v18  ;;  %v5180_v24 = vpop.f32.mrb[13].mxu1  ;;  %5666 = vmatprep.subr.bf16.mxu0 %v7052_v19 }
 0x433   :  { %v6507_v26 = vadd.f32 %v5180_v24, %v3558_v33  ;;  %v5182_v29 = vpop.f32.mrb[14].mxu1 }
 0x434   :  { %v5197_v30 = vmul.f32 0.2, %v6506_v23  ;;  %v6508_v31 = vadd.f32 %v5182_v29, %v3554_v18  ;;  %v5184_v52 = vpop.f32.mrb[15].mxu1  ;;  %vm5189_vm5 = vcmp.gt.f32.partialorder %v6506_v23, 0.0 }
 0x435   :  { %v5198_v32 = vmul.f32 0.2, %v6507_v26  ;;  %v6509_v34 = vadd.f32 %v5184_v52, %v3558_v33  ;;  %5667 = vmatpush1.bf16.msra.mxu0 %v7050_v21  ;;  %vm5190_vm6 = vcmp.gt.f32.partialorder %v6507_v26, 0.0 }
 0x436   :  { %vm5193_vm7 = vcmp.gt.f32.partialorder %v6508_v31, 0.0  ;;  %v5201_v22 = vmul.f32 0.2, %v6508_v31  ;;  %5668 = vmatprep.subr.bf16.mxu0 %v7055_v25  ;;  %v5205_v36 = vsel %vm5189_vm5, %v6506_v23, %v5197_v30 }
 0x437   :  { %vm5194_vm8 = vcmp.gt.f32.partialorder %v6509_v34, 0.0  ;;  %v5202_v35 = vmul.f32 0.2, %v6509_v34  ;;  %v5206_v41 = vsel %vm5190_vm6, %v6507_v26, %v5198_v32 }
 0x438   :  { %v5209_v37 = vsel %vm5193_vm7, %v6508_v31, %v5201_v22 }
 0x439   :  { %v5213_v38 = vpack.c.bf16 %v5209_v37, %v5205_v36  ;;  %5669 = vmatpush1.bf16.msra.mxu0 %v7053_v40  ;;  %v5210_v46 = vsel %vm5194_vm8, %v6509_v34, %v5202_v35 }
 0x43a   :  { %5670 = vmatprep.subr.bf16.mxu0 %v7058_v55  ;;  %v5214_v42 = vpack.c.bf16 %v5210_v46, %v5206_v41 }
 0x43c   :  { %5686 = vmatprep.mubr.bf16.mxu0 %v5214_v42 }
 0x43d   :  { %5671 = vmatpush1.bf16.msra.mxu0 %v7056_v39 }
 0x43e   :  { %5672 = vmatprep.subr.bf16.mxu0 %v7061_v27 }
 0x441   :  { %5673 = vmatpush1.bf16.msra.mxu0 %v7059_v43 }
 0x442   :  { %5674 = vmatprep.subr.bf16.mxu0 %v7064_v44 }
 0x445   :  { %5675 = vmatpush1.bf16.msra.mxu0 %v7062_v45 }
 0x446   :  { %5676 = vmatprep.subr.bf16.mxu0 %v7067_v50 }
 0x449   :  { %5677 = vmatpush1.bf16.msra.mxu0 %v7065_v47 }
 0x44a   :  { %5678 = vmatprep.subr.bf16.mxu0 %v7070_v28 }
 0x44d   :  { %5679 = vmatpush1.bf16.msra.mxu0 %v7068_v54 }
 0x44e   :  { %5680 = vmatprep.subr.bf16.mxu0 %v7073_v48 }
 0x451   :  { %5681 = vmatpush1.bf16.msra.mxu0 %v7071_v49 }
 0x452   :  { %5682 = vmatprep.subr.bf16.mxu0 %v7076_v51 }
 0x455   :  { %5683 = vmatpush1.bf16.msra.mxu0 %v7074_v53 }
 0x456   :  { %5684 = vmatprep.subr.bf16.mxu0 %v7079_v59 }
 0x459   :  { %5685 = vmatpush1.bf16.msra.mxu0 %v7077_v61 }
 0x45c   :  { %5687 = vmatmul.mubr.bf16.vlgmr.msra.gmra.mrb[12].mxu0 %v5213_v38 }
 0x52f   :  { %v5688_v60 = vpop.f32.mrb[12].mxu0 }
 0x530   :  { %v6510_v62 = vadd.f32 %v5688_v60, %v5284_v57  ;;  %v5690_v0 = vpop.f32.mrb[13].mxu0 }
 0x531   :  { %v6511_v2 = vadd.f32 %v5690_v0, %v5288_v58  ;;  %v5692_v4 = vpop.f32.mrb[14].mxu0 }
 0x532   :  { %vm5697_vm9 = vcmp.gt.f32.partialorder %v6510_v62, 0.0  ;;  %v5701_v6 = vmul.f32 0.2, %v6510_v62  ;;  %v6512_v7 = vadd.f32 %v5692_v4, %v5284_v57  ;;  %v5694_v9 = vpop.f32.mrb[15].mxu0 }
 0x533   :  { %vm5698_vm10 = vcmp.gt.f32.partialorder %v6511_v2, 0.0  ;;  %v5702_v10 = vmul.f32 0.2, %v6511_v2  ;;  %v6513_v11 = vadd.f32 %v5694_v9, %v5288_v58 }
 0x534   :  { %vm5699_vm11 = vcmp.gt.f32.partialorder %v6512_v7, 0.0  ;;  %v5703_v13 = vmul.f32 0.2, %v6512_v7  ;;  %v5705_v14 = vsel %vm5697_vm9, %v6510_v62, %v5701_v6 }
 0x535   :  { %vm5700_vm12 = vcmp.gt.f32.partialorder %v6513_v11, 0.0  ;;  %v5704_v15 = vmul.f32 0.2, %v6513_v11  ;;  %v5706_v16 = vsel %vm5698_vm10, %v6511_v2, %v5702_v10  ;;  %v5721_v17 = vmul.f32 %v5714_v5, %v5705_v14 }
 0x536   :  { %v5722_v63 = vmul.f32 %v5718_v1, %v5706_v16  ;;  %v5707_v18 = vsel %vm5699_vm11, %v6512_v7, %v5703_v13 }
 0x537   :  { %v5708_v19 = vsel %vm5700_vm12, %v6513_v11, %v5704_v15  ;;  %v5723_v8 = vmul.f32 %v5714_v5, %v5707_v18 }
 0x538   :  { %v5725_v33 = vadd.f32 %v5722_v63, %v5721_v17  ;;  %v5724_v20 = vmul.f32 %v5718_v1, %v5708_v19 }
 0x53a   :  { %5726 = vadd.xlane.f32.xlu0 %v5725_v33  ;;  %v5728_v21 = vadd.f32 %v5724_v20, %v5723_v8 }
 0x53e   :  { %5729 = vadd.xlane.f32.xlu0 %v5728_v21 }
 0x5c7   :  { %v5727_v23 = vpop.xlane.xlu0 %5726 }
 0x5c8   :  { %v5738_v24 = vadd.f32 %v6479_v12, %v5727_v23 }
 0x5ca   :  { %v6480_v25 = vmul.f32 -1.442695, %v5738_v24 }
 0x5cb   :  { %v5730_v26 = vpop.xlane.xlu0 %5729 }
 0x5cc   :  { %7080 = vpow2.f32 %v6480_v25  ;;  %v5739_v29 = vadd.f32 %v6479_v12, %v5730_v26 }
 0x5ce   :  { %v6481_v30 = vmul.f32 -1.442695, %v5739_v29 }
 0x5d0   :  { %7082 = vpow2.f32 %v6481_v30 }
 0x5d6   :  { %v7081_v31 = vpop.eup %7080 }
 0x5d7   :  { %v5746_v52 = vadd.f32 1.0, %v7081_v31 }
 0x5d9   :  { %7084 = vrcp.f32 %v5746_v52 }
 0x5da   :  { %v7083_v32 = vpop.eup %7082 }
 0x5db   :  { %v5747_v34 = vadd.f32 1.0, %v7083_v32 }
 0x5dd   :  { %7086 = vrcp.f32 %v5747_v34 }
 0x5e3   :  { %v7085_v40 = vpop.eup %7084 }
 0x5e4   :  { %5753 = vst.msk [vmem:[%s7599_s9] sm:$0xff] %vm5752_vm13, %v7085_v40 }
 0x5e7   :  { %v7087_v22 = vpop.eup %7086 }
 0x5e8   :  { %5754 = vst.msk [vmem:[%s7599_s9 + $0x8] sm:$0xff] %vm5752_vm13, %v7087_v22 }
 0x5e9   :  { %5759 = vsyncpa [#allocation4], 1 }
 0x5ea   :  { %5760 = vsyncpa [#allocation6], 1 }
 0x5eb   :  { %5761 = vsyncpa [#allocation9], 1 }
 0x5ec   :  { %5762 = vsyncpa [#allocation12], 1 }

</bundles_post_ra>
